<compile_context>
chip_gen: v5e
topology: v5e:2x2
jax: 0.10.0
libtpu: 0.0.40
codegen_flags: <defaults>
</compile_context>

<pallas_src>
import functools

import jax
import jax.numpy as jnp
from jax import lax
from jax.experimental import pallas as pl
from jax.experimental.pallas import tpu as pltpu

EPS = 1e-5  # torch nn.LayerNorm default


# ----------------------------- in-kernel helpers -----------------------------

def _erf(x):
    # Abramowitz & Stegun 7.1.26 rational approximation (|err| < 1.5e-7),
    # reproducing exact (erf-based) nn.GELU semantics without relying on an
    # erf lowering inside Mosaic.  The inner divide goes to the EUP via
    # pl.reciprocal (approx) — tiny extra deviation, well within fp32 tolerance.
    a1, a2, a3, a4, a5 = (0.254829592, -0.284496736, 1.421413741,
                          -1.453152027, 1.061405429)
    p = 0.3275911
    s = jnp.where(x < 0.0, -1.0, 1.0)
    ax = jnp.abs(x)
    t = pl.reciprocal(1.0 + p * ax, approx=True)
    poly = ((((a5 * t + a4) * t + a3) * t + a2) * t + a1) * t
    return s * (1.0 - poly * jnp.exp(-ax * ax))


def _gelu(x):
    # exact GELU: 0.5 * x * (1 + erf(x / sqrt(2)))
    return 0.5 * x * (1.0 + _erf(x * 0.7071067811865476))


def _layernorm(x, g, b):
    mu = jnp.mean(x, axis=-1, keepdims=True)
    var = jnp.mean((x - mu) ** 2, axis=-1, keepdims=True)
    return (x - mu) * lax.rsqrt(var + EPS) * g + b


# ------------------------------- fused kernel ---------------------------------

def fused_forward_kernel(patches_ref, pe_w_ref, pe_b_ref, pos_ref,
                         ln1g_ref, ln1b_ref, qkvw_ref, qkvb_ref,
                         projw_ref, projb_ref, ln2g_ref, ln2b_ref,
                         w1_ref, b1_ref, w2_ref, b2_ref,
                         normg_ref, normb_ref, headw_ref, headb_ref,
                         o_ref, *, depth, num_heads):
    # One batch element per grid step. patches_ref: (1, N, C*p*p).
    nh = num_heads

    # ---- patch embed + positional embedding ----
    x = (jnp.dot(patches_ref[0], pe_w_ref[...],
                 preferred_element_type=jnp.float32)
         + pe_b_ref[...] + pos_ref[...])                       # (N, D)

    # ---- transformer blocks (static unrolled loop, depth is tiny) ----
    for l in range(depth):
        # window attention branch
        xn = _layernorm(x, ln1g_ref[l], ln1b_ref[l])
        attn_out = jnp.zeros_like(x)
        for h in range(nh):
            qi = (l * 3 + 0) * nh + h
            ki = (l * 3 + 1) * nh + h
            vi = (l * 3 + 2) * nh + h
            # scale is already folded into the Q weight/bias host-side.
            q = jnp.dot(xn, qkvw_ref[qi],
                        preferred_element_type=jnp.float32) + qkvb_ref[qi]
            k = jnp.dot(xn, qkvw_ref[ki],
                        preferred_element_type=jnp.float32) + qkvb_ref[ki]
            v = jnp.dot(xn, qkvw_ref[vi],
                        preferred_element_type=jnp.float32) + qkvb_ref[vi]
            # q @ k^T without materializing k.T: contract on last dims.
            s = lax.dot_general(q, k, (((1,), (1,)), ((), ())),
                                preferred_element_type=jnp.float32)
            e = jnp.exp(s - jnp.max(s, axis=-1, keepdims=True))
            attn = e * pl.reciprocal(jnp.sum(e, axis=-1, keepdims=True),
                                     approx=True)
            ho = jnp.dot(attn, v, preferred_element_type=jnp.float32)
            # head-concat + proj  ==  sum_h (head_out_h @ proj_w[h])
            attn_out = attn_out + jnp.dot(ho, projw_ref[l * nh + h],
                                          preferred_element_type=jnp.float32)
        x = x + attn_out + projb_ref[l]

        # MLP branch
        xn2 = _layernorm(x, ln2g_ref[l], ln2b_ref[l])
        h1 = _gelu(jnp.dot(xn2, w1_ref[l],
                           preferred_element_type=jnp.float32) + b1_ref[l])
        x = x + jnp.dot(h1, w2_ref[l],
                        preferred_element_type=jnp.float32) + b2_ref[l]

    # ---- final norm + mean pool + classifier head ----
    xn = _layernorm(x, normg_ref[...], normb_ref[...])
    pooled = jnp.mean(xn, axis=0, keepdims=True)               # (1, D)
    o_ref[0] = (jnp.dot(pooled, headw_ref[...],
                        preferred_element_type=jnp.float32) + headb_ref[...])


# -------------------------------- wrappers ------------------------------------

def _rep_spec(shape):
    n = len(shape)
    return pl.BlockSpec(shape, lambda b, n=n: (0,) * n)


def patchify(x, p):
    # NCHW -> [B, N, C*p*p] with N = (H/p)*(W/p), matching
    # Conv2d(stride=p).flatten(2).transpose(1, 2) feature ordering (c, ph, pw).
    B, C, H, W = x.shape
    x = x.reshape(B, C, H // p, p, W // p, p)
    x = x.transpose(0, 2, 4, 1, 3, 5)               # B, H', W', C, p, p
    return x.reshape(B, (H // p) * (W // p), C * p * p)


def pack_params(params, num_heads):
    """Restructure PyTorch-layout params into the kernel's stacked layout.

    - qkv weights/bias become head-major: (depth*3*nh, D, hd) / (depth*3*nh, 1, hd)
    - proj weight becomes (depth*nh, hd, D) so head-concat+proj can be an
      accumulation over heads.
    - the attention scale (hd ** -0.5) is folded into the Q slice.
    Done once at init time; not part of the forward path.
    """
    blocks = params["blocks"]
    D = params["pe_w"].shape[1]
    hd = D // num_heads
    scale = float(hd ** -0.5)

    qkv_w, qkv_b, proj_w = [], [], []
    for blk in blocks:
        w = blk["qkv_w"].reshape(D, 3, num_heads, hd).transpose(1, 2, 0, 3)
        b = blk["qkv_b"].reshape(3, num_heads, 1, hd)
        w = w.at[0].multiply(scale)                 # fold scale into Q weight
        b = b.at[0].multiply(scale)                 # ... and Q bias
        qkv_w.append(w.reshape(3 * num_heads, D, hd))
        qkv_b.append(b.reshape(3 * num_heads, 1, hd))
        proj_w.append(blk["proj_w"].reshape(num_heads, hd, D))

    return dict(
        pe_w=params["pe_w"], pe_b=params["pe_b"], pos=params["pos"],
        ln1_g=jnp.stack([blk["ln1_g"] for blk in blocks]),     # (depth, 1, D)
        ln1_b=jnp.stack([blk["ln1_b"] for blk in blocks]),
        qkv_w=jnp.concatenate(qkv_w, axis=0),                  # (depth*3*nh, D, hd)
        qkv_b=jnp.concatenate(qkv_b, axis=0),                  # (depth*3*nh, 1, hd)
        proj_w=jnp.concatenate(proj_w, axis=0),                # (depth*nh, hd, D)
        proj_b=jnp.stack([blk["proj_b"] for blk in blocks]),
        ln2_g=jnp.stack([blk["ln2_g"] for blk in blocks]),
        ln2_b=jnp.stack([blk["ln2_b"] for blk in blocks]),
        w1=jnp.stack([blk["w1"] for blk in blocks]),           # (depth, D, 4D)
        b1=jnp.stack([blk["b1"] for blk in blocks]),
        w2=jnp.stack([blk["w2"] for blk in blocks]),           # (depth, 4D, D)
        b2=jnp.stack([blk["b2"] for blk in blocks]),
        norm_g=params["norm_g"], norm_b=params["norm_b"],
        head_w=params["head_w"], head_b=params["head_b"],
        depth=len(blocks),
    )


def mini_swin_forward(packed, x, *, patch_size, num_heads):
    B = x.shape[0]
    D = packed["pe_w"].shape[1]
    ncls = packed["head_w"].shape[1]
    depth = packed["depth"]

    patches = patchify(x, patch_size)               # host-side layout glue only
    _, N, Cpp = patches.shape

    weights = [packed["pe_w"], packed["pe_b"], packed["pos"],
               packed["ln1_g"], packed["ln1_b"], packed["qkv_w"], packed["qkv_b"],
               packed["proj_w"], packed["proj_b"], packed["ln2_g"], packed["ln2_b"],
               packed["w1"], packed["b1"], packed["w2"], packed["b2"],
               packed["norm_g"], packed["norm_b"],
               packed["head_w"], packed["head_b"]]

    in_specs = [pl.BlockSpec((1, N, Cpp), lambda b: (b, 0, 0))]
    in_specs += [_rep_spec(w.shape) for w in weights]

    out = pl.pallas_call(
        functools.partial(fused_forward_kernel, depth=depth, num_heads=num_heads),
        out_shape=jax.ShapeDtypeStruct((B, 1, ncls), jnp.float32),
        grid=(B,),
        in_specs=in_specs,
        out_specs=pl.BlockSpec((1, 1, ncls), lambda b: (b, 0, 0)),
        compiler_params=pltpu.CompilerParams(dimension_semantics=("parallel",)),
    )(patches, *weights)
    return out.reshape(B, ncls)


# ----------------------------- parameter init ---------------------------------

def init_params(key, *, in_chans, patch_size, embed_dim, depth, num_heads,
                num_classes, num_patches):
    del num_heads
    keys = jax.random.split(key, 2 + depth)

    def linear(k, fan_in, fan_out):
        lim = 1.0 / (fan_in ** 0.5)
        kw, kb = jax.random.split(k)
        w = jax.random.uniform(kw, (fan_in, fan_out), jnp.float32, -lim, lim)
        b = jax.random.uniform(kb, (1, fan_out), jnp.float32, -lim, lim)
        return w, b

    pe_w, pe_b = linear(keys[0], in_chans * patch_size * patch_size, embed_dim)
    pos = jnp.zeros((num_patches, embed_dim), jnp.float32)  # torch.zeros init

    blocks = []
    for i in range(depth):
        kb = jax.random.split(keys[1 + i], 4)
        qkv_w, qkv_b = linear(kb[0], embed_dim, embed_dim * 3)
        proj_w, proj_b = linear(kb[1], embed_dim, embed_dim)
        w1, b1 = linear(kb[2], embed_dim, embed_dim * 4)
        w2, b2 = linear(kb[3], embed_dim * 4, embed_dim)
        blocks.append(dict(
            ln1_g=jnp.ones((1, embed_dim), jnp.float32),
            ln1_b=jnp.zeros((1, embed_dim), jnp.float32),
            qkv_w=qkv_w, qkv_b=qkv_b, proj_w=proj_w, proj_b=proj_b,
            ln2_g=jnp.ones((1, embed_dim), jnp.float32),
            ln2_b=jnp.zeros((1, embed_dim), jnp.float32),
            w1=w1, b1=b1, w2=w2, b2=b2))

    head_w, head_b = linear(keys[-1], embed_dim, num_classes)
    return dict(pe_w=pe_w, pe_b=pe_b, pos=pos, blocks=blocks,
                norm_g=jnp.ones((1, embed_dim), jnp.float32),
                norm_b=jnp.zeros((1, embed_dim), jnp.float32),
                head_w=head_w, head_b=head_b)


# ----------------------------------- main --------------------------------------

if __name__ == "__main__":
    # Small config consistent with the module: 16x16 image, patch 4 -> 16 tokens.
    B, C, H, W = 2, 3, 16, 16
    patch_size, embed_dim, depth, num_heads, num_classes = 4, 96, 2, 3, 4
    num_patches = (H // patch_size) * (W // patch_size)

    key = jax.random.PRNGKey(0)
    kx, kp = jax.random.split(key)
    x = jax.random.normal(kx, (B, C, H, W), jnp.float32)   # NCHW, like PyTorch
    params = init_params(kp, in_chans=C, patch_size=patch_size,
                         embed_dim=embed_dim, depth=depth, num_heads=num_heads,
                         num_classes=num_classes, num_patches=num_patches)
    packed = pack_params(params, num_heads)                 # one-time repack

    # TODO(synk): attn_map caching (self.attn_map side effect of WindowAttention)
    # is not materialized; only the forward output is produced.
    logits = mini_swin_forward(packed, x, patch_size=patch_size,
                               num_heads=num_heads)
    jax.block_until_ready(logits)
    assert logits.shape == (B, num_classes)
    print("KERNEL_OK")
</pallas_src>

<mosaic_0001>
module attributes {stable_mosaic.version = 11 : i64} {
  func.func @fused_forward_kernel(%arg0: i32, %arg1: memref<1x16x48xf32, #tpu.memory_space<vmem>>, %arg2: memref<48x96xf32, #tpu.memory_space<vmem>>, %arg3: memref<1x96xf32, #tpu.memory_space<vmem>>, %arg4: memref<16x96xf32, #tpu.memory_space<vmem>>, %arg5: memref<2x1x96xf32, #tpu.memory_space<vmem>>, %arg6: memref<2x1x96xf32, #tpu.memory_space<vmem>>, %arg7: memref<18x96x32xf32, #tpu.memory_space<vmem>>, %arg8: memref<18x1x32xf32, #tpu.memory_space<vmem>>, %arg9: memref<6x32x96xf32, #tpu.memory_space<vmem>>, %arg10: memref<2x1x96xf32, #tpu.memory_space<vmem>>, %arg11: memref<2x1x96xf32, #tpu.memory_space<vmem>>, %arg12: memref<2x1x96xf32, #tpu.memory_space<vmem>>, %arg13: memref<2x96x384xf32, #tpu.memory_space<vmem>>, %arg14: memref<2x1x384xf32, #tpu.memory_space<vmem>>, %arg15: memref<2x384x96xf32, #tpu.memory_space<vmem>>, %arg16: memref<2x1x96xf32, #tpu.memory_space<vmem>>, %arg17: memref<1x96xf32, #tpu.memory_space<vmem>>, %arg18: memref<1x96xf32, #tpu.memory_space<vmem>>, %arg19: memref<96x4xf32, #tpu.memory_space<vmem>>, %arg20: memref<1x4xf32, #tpu.memory_space<vmem>>, %arg21: memref<1x1x4xf32, #tpu.memory_space<vmem>>) attributes {dimension_semantics = [#tpu.dimension_semantics<parallel>], iteration_bounds = array<i64: 2>, scalar_prefetch = 0 : i64, scratch_operands = 0 : i64, tpu.core_type = #tpu.core_type<tc>, window_params = [{transform_indices = @transform_0, window_bounds = array<i64: 1, 16, 48>}, {pipeline_mode = #tpu.pipeline_mode<synchronous>, transform_indices = @transform_1, window_bounds = array<i64: 48, 96>}, {pipeline_mode = #tpu.pipeline_mode<synchronous>, transform_indices = @transform_2, window_bounds = array<i64: 1, 96>}, {pipeline_mode = #tpu.pipeline_mode<synchronous>, transform_indices = @transform_3, window_bounds = array<i64: 16, 96>}, {pipeline_mode = #tpu.pipeline_mode<synchronous>, transform_indices = @transform_4, window_bounds = array<i64: 2, 1, 96>}, {pipeline_mode = #tpu.pipeline_mode<synchronous>, transform_indices = @transform_5, window_bounds = array<i64: 2, 1, 96>}, {pipeline_mode = #tpu.pipeline_mode<synchronous>, transform_indices = @transform_6, window_bounds = array<i64: 18, 96, 32>}, {pipeline_mode = #tpu.pipeline_mode<synchronous>, transform_indices = @transform_7, window_bounds = array<i64: 18, 1, 32>}, {pipeline_mode = #tpu.pipeline_mode<synchronous>, transform_indices = @transform_8, window_bounds = array<i64: 6, 32, 96>}, {pipeline_mode = #tpu.pipeline_mode<synchronous>, transform_indices = @transform_9, window_bounds = array<i64: 2, 1, 96>}, {pipeline_mode = #tpu.pipeline_mode<synchronous>, transform_indices = @transform_10, window_bounds = array<i64: 2, 1, 96>}, {pipeline_mode = #tpu.pipeline_mode<synchronous>, transform_indices = @transform_11, window_bounds = array<i64: 2, 1, 96>}, {pipeline_mode = #tpu.pipeline_mode<synchronous>, transform_indices = @transform_12, window_bounds = array<i64: 2, 96, 384>}, {pipeline_mode = #tpu.pipeline_mode<synchronous>, transform_indices = @transform_13, window_bounds = array<i64: 2, 1, 384>}, {pipeline_mode = #tpu.pipeline_mode<synchronous>, transform_indices = @transform_14, window_bounds = array<i64: 2, 384, 96>}, {pipeline_mode = #tpu.pipeline_mode<synchronous>, transform_indices = @transform_15, window_bounds = array<i64: 2, 1, 96>}, {pipeline_mode = #tpu.pipeline_mode<synchronous>, transform_indices = @transform_16, window_bounds = array<i64: 1, 96>}, {pipeline_mode = #tpu.pipeline_mode<synchronous>, transform_indices = @transform_17, window_bounds = array<i64: 1, 96>}, {pipeline_mode = #tpu.pipeline_mode<synchronous>, transform_indices = @transform_18, window_bounds = array<i64: 96, 4>}, {pipeline_mode = #tpu.pipeline_mode<synchronous>, transform_indices = @transform_19, window_bounds = array<i64: 1, 4>}, {transform_indices = @transform_20, window_bounds = array<i64: 1, 1, 4>}]} {
    %c0 = arith.constant 0 : index
    %c0_0 = arith.constant 0 : index
    %c0_1 = arith.constant 0 : index
    %0 = vector.load %arg1[%c0, %c0_0, %c0_1] : memref<1x16x48xf32, #tpu.memory_space<vmem>>, vector<1x16x48xf32>
    %1 = vector.shape_cast %0 : vector<1x16x48xf32> to vector<16x48xf32>
    %c0_2 = arith.constant 0 : index
    %c0_3 = arith.constant 0 : index
    %2 = vector.load %arg2[%c0_2, %c0_3] : memref<48x96xf32, #tpu.memory_space<vmem>>, vector<48x96xf32>
    %cst = arith.constant dense<0.000000e+00> : vector<16x96xf32>
    %3 = tpu.matmul %1, %2, %cst {dimension_numbers = #tpu.dot_dimension_numbers<[1], [0], [0], [1], [0, 0, 1, 1], [], []>} : vector<16x48xf32>, vector<48x96xf32>, vector<16x96xf32> -> vector<16x96xf32>
    %c0_4 = arith.constant 0 : index
    %c0_5 = arith.constant 0 : index
    %4 = vector.load %arg3[%c0_4, %c0_5] : memref<1x96xf32, #tpu.memory_space<vmem>>, vector<1x96xf32>
    %5 = vector.broadcast %4 : vector<1x96xf32> to vector<16x96xf32>
    %6 = arith.addf %3, %5 : vector<16x96xf32>
    %c0_6 = arith.constant 0 : index
    %c0_7 = arith.constant 0 : index
    %7 = vector.load %arg4[%c0_6, %c0_7] : memref<16x96xf32, #tpu.memory_space<vmem>>, vector<16x96xf32>
    %8 = arith.addf %6, %7 : vector<16x96xf32>
    %c0_8 = arith.constant 0 : index
    %c0_9 = arith.constant 0 : index
    %c0_10 = arith.constant 0 : index
    %9 = vector.load %arg5[%c0_8, %c0_9, %c0_10] : memref<2x1x96xf32, #tpu.memory_space<vmem>>, vector<1x1x96xf32>
    %10 = vector.shape_cast %9 : vector<1x1x96xf32> to vector<1x96xf32>
    %c0_11 = arith.constant 0 : index
    %c0_12 = arith.constant 0 : index
    %c0_13 = arith.constant 0 : index
    %11 = vector.load %arg6[%c0_11, %c0_12, %c0_13] : memref<2x1x96xf32, #tpu.memory_space<vmem>>, vector<1x1x96xf32>
    %12 = vector.shape_cast %11 : vector<1x1x96xf32> to vector<1x96xf32>
    %cst_14 = arith.constant dense<0.000000e+00> : vector<16xf32>
    %13 = vector.multi_reduction <add>, %8, %cst_14 [1] : vector<16x96xf32> to vector<16xf32>
    %14 = vector.shape_cast %13 : vector<16xf32> to vector<16x1xf32>
    %cst_15 = arith.constant 9.600000e+01 : f32
    %15 = vector.broadcast %cst_15 : f32 to vector<16x1xf32>
    %16 = arith.divf %14, %15 : vector<16x1xf32>
    %17 = vector.broadcast %16 : vector<16x1xf32> to vector<16x96xf32>
    %18 = arith.subf %8, %17 : vector<16x96xf32>
    %19 = arith.mulf %18, %18 : vector<16x96xf32>
    %cst_16 = arith.constant dense<0.000000e+00> : vector<16xf32>
    %20 = vector.multi_reduction <add>, %19, %cst_16 [1] : vector<16x96xf32> to vector<16xf32>
    %21 = vector.shape_cast %20 : vector<16xf32> to vector<16x1xf32>
    %cst_17 = arith.constant 9.600000e+01 : f32
    %22 = vector.broadcast %cst_17 : f32 to vector<16x1xf32>
    %23 = arith.divf %21, %22 : vector<16x1xf32>
    %24 = vector.broadcast %16 : vector<16x1xf32> to vector<16x96xf32>
    %25 = arith.subf %8, %24 : vector<16x96xf32>
    %cst_18 = arith.constant 9.99999974E-6 : f32
    %26 = vector.broadcast %cst_18 : f32 to vector<16x1xf32>
    %27 = arith.addf %23, %26 : vector<16x1xf32>
    %28 = math.rsqrt %27 : vector<16x1xf32>
    %29 = vector.broadcast %28 : vector<16x1xf32> to vector<16x96xf32>
    %30 = arith.mulf %25, %29 : vector<16x96xf32>
    %31 = vector.broadcast %10 : vector<1x96xf32> to vector<16x96xf32>
    %32 = arith.mulf %30, %31 : vector<16x96xf32>
    %33 = vector.broadcast %12 : vector<1x96xf32> to vector<16x96xf32>
    %34 = arith.addf %32, %33 : vector<16x96xf32>
    %cst_19 = arith.constant 0.000000e+00 : f32
    %35 = vector.broadcast %cst_19 : f32 to vector<16x96xf32>
    %c0_20 = arith.constant 0 : index
    %c0_21 = arith.constant 0 : index
    %c0_22 = arith.constant 0 : index
    %36 = vector.load %arg7[%c0_20, %c0_21, %c0_22] : memref<18x96x32xf32, #tpu.memory_space<vmem>>, vector<1x96x32xf32>
    %37 = vector.shape_cast %36 : vector<1x96x32xf32> to vector<96x32xf32>
    %cst_23 = arith.constant dense<0.000000e+00> : vector<16x32xf32>
    %38 = tpu.matmul %34, %37, %cst_23 {dimension_numbers = #tpu.dot_dimension_numbers<[1], [0], [0], [1], [0, 0, 1, 1], [], []>} : vector<16x96xf32>, vector<96x32xf32>, vector<16x32xf32> -> vector<16x32xf32>
    %c0_24 = arith.constant 0 : index
    %c0_25 = arith.constant 0 : index
    %c0_26 = arith.constant 0 : index
    %39 = vector.load %arg8[%c0_24, %c0_25, %c0_26] : memref<18x1x32xf32, #tpu.memory_space<vmem>>, vector<1x1x32xf32>
    %40 = vector.shape_cast %39 : vector<1x1x32xf32> to vector<1x32xf32>
    %41 = vector.broadcast %40 : vector<1x32xf32> to vector<16x32xf32>
    %42 = arith.addf %38, %41 : vector<16x32xf32>
    %c3 = arith.constant 3 : index
    %c0_27 = arith.constant 0 : index
    %c0_28 = arith.constant 0 : index
    %43 = vector.load %arg7[%c3, %c0_27, %c0_28] : memref<18x96x32xf32, #tpu.memory_space<vmem>>, vector<1x96x32xf32>
    %44 = vector.shape_cast %43 : vector<1x96x32xf32> to vector<96x32xf32>
    %cst_29 = arith.constant dense<0.000000e+00> : vector<16x32xf32>
    %45 = tpu.matmul %34, %44, %cst_29 {dimension_numbers = #tpu.dot_dimension_numbers<[1], [0], [0], [1], [0, 0, 1, 1], [], []>} : vector<16x96xf32>, vector<96x32xf32>, vector<16x32xf32> -> vector<16x32xf32>
    %c3_30 = arith.constant 3 : index
    %c0_31 = arith.constant 0 : index
    %c0_32 = arith.constant 0 : index
    %46 = vector.load %arg8[%c3_30, %c0_31, %c0_32] : memref<18x1x32xf32, #tpu.memory_space<vmem>>, vector<1x1x32xf32>
    %47 = vector.shape_cast %46 : vector<1x1x32xf32> to vector<1x32xf32>
    %48 = vector.broadcast %47 : vector<1x32xf32> to vector<16x32xf32>
    %49 = arith.addf %45, %48 : vector<16x32xf32>
    %c6 = arith.constant 6 : index
    %c0_33 = arith.constant 0 : index
    %c0_34 = arith.constant 0 : index
    %50 = vector.load %arg7[%c6, %c0_33, %c0_34] : memref<18x96x32xf32, #tpu.memory_space<vmem>>, vector<1x96x32xf32>
    %51 = vector.shape_cast %50 : vector<1x96x32xf32> to vector<96x32xf32>
    %cst_35 = arith.constant dense<0.000000e+00> : vector<16x32xf32>
    %52 = tpu.matmul %34, %51, %cst_35 {dimension_numbers = #tpu.dot_dimension_numbers<[1], [0], [0], [1], [0, 0, 1, 1], [], []>} : vector<16x96xf32>, vector<96x32xf32>, vector<16x32xf32> -> vector<16x32xf32>
    %c6_36 = arith.constant 6 : index
    %c0_37 = arith.constant 0 : index
    %c0_38 = arith.constant 0 : index
    %53 = vector.load %arg8[%c6_36, %c0_37, %c0_38] : memref<18x1x32xf32, #tpu.memory_space<vmem>>, vector<1x1x32xf32>
    %54 = vector.shape_cast %53 : vector<1x1x32xf32> to vector<1x32xf32>
    %55 = vector.broadcast %54 : vector<1x32xf32> to vector<16x32xf32>
    %56 = arith.addf %52, %55 : vector<16x32xf32>
    %cst_39 = arith.constant dense<0.000000e+00> : vector<16x16xf32>
    %57 = tpu.matmul %42, %49, %cst_39 {dimension_numbers = #tpu.dot_dimension_numbers<[1], [1], [0], [0], [0, 0, 1, 0], [], []>} : vector<16x32xf32>, vector<16x32xf32>, vector<16x16xf32> -> vector<16x16xf32>
    %cst_40 = arith.constant dense<0xFF800000> : vector<16xf32>
    %58 = vector.multi_reduction <maximumf>, %57, %cst_40 [1] : vector<16x16xf32> to vector<16xf32>
    %59 = vector.shape_cast %58 : vector<16xf32> to vector<16x1xf32>
    %60 = vector.broadcast %59 : vector<16x1xf32> to vector<16x16xf32>
    %61 = arith.subf %57, %60 : vector<16x16xf32>
    %62 = math.exp %61 : vector<16x16xf32>
    %cst_41 = arith.constant dense<0.000000e+00> : vector<16xf32>
    %63 = vector.multi_reduction <add>, %62, %cst_41 [1] : vector<16x16xf32> to vector<16xf32>
    %64 = vector.shape_cast %63 : vector<16xf32> to vector<16x1xf32>
    %65 = tpu.reciprocal %64 {approx = true} : vector<16x1xf32> -> vector<16x1xf32>
    %66 = vector.broadcast %65 : vector<16x1xf32> to vector<16x16xf32>
    %67 = arith.mulf %62, %66 : vector<16x16xf32>
    %cst_42 = arith.constant dense<0.000000e+00> : vector<16x32xf32>
    %68 = tpu.matmul %67, %56, %cst_42 {dimension_numbers = #tpu.dot_dimension_numbers<[1], [0], [0], [1], [0, 0, 1, 1], [], []>} : vector<16x16xf32>, vector<16x32xf32>, vector<16x32xf32> -> vector<16x32xf32>
    %c0_43 = arith.constant 0 : index
    %c0_44 = arith.constant 0 : index
    %c0_45 = arith.constant 0 : index
    %69 = vector.load %arg9[%c0_43, %c0_44, %c0_45] : memref<6x32x96xf32, #tpu.memory_space<vmem>>, vector<1x32x96xf32>
    %70 = vector.shape_cast %69 : vector<1x32x96xf32> to vector<32x96xf32>
    %cst_46 = arith.constant dense<0.000000e+00> : vector<16x96xf32>
    %71 = tpu.matmul %68, %70, %cst_46 {dimension_numbers = #tpu.dot_dimension_numbers<[1], [0], [0], [1], [0, 0, 1, 1], [], []>} : vector<16x32xf32>, vector<32x96xf32>, vector<16x96xf32> -> vector<16x96xf32>
    %72 = arith.addf %35, %71 : vector<16x96xf32>
    %c1 = arith.constant 1 : index
    %c0_47 = arith.constant 0 : index
    %c0_48 = arith.constant 0 : index
    %73 = vector.load %arg7[%c1, %c0_47, %c0_48] : memref<18x96x32xf32, #tpu.memory_space<vmem>>, vector<1x96x32xf32>
    %74 = vector.shape_cast %73 : vector<1x96x32xf32> to vector<96x32xf32>
    %cst_49 = arith.constant dense<0.000000e+00> : vector<16x32xf32>
    %75 = tpu.matmul %34, %74, %cst_49 {dimension_numbers = #tpu.dot_dimension_numbers<[1], [0], [0], [1], [0, 0, 1, 1], [], []>} : vector<16x96xf32>, vector<96x32xf32>, vector<16x32xf32> -> vector<16x32xf32>
    %c1_50 = arith.constant 1 : index
    %c0_51 = arith.constant 0 : index
    %c0_52 = arith.constant 0 : index
    %76 = vector.load %arg8[%c1_50, %c0_51, %c0_52] : memref<18x1x32xf32, #tpu.memory_space<vmem>>, vector<1x1x32xf32>
    %77 = vector.shape_cast %76 : vector<1x1x32xf32> to vector<1x32xf32>
    %78 = vector.broadcast %77 : vector<1x32xf32> to vector<16x32xf32>
    %79 = arith.addf %75, %78 : vector<16x32xf32>
    %c4 = arith.constant 4 : index
    %c0_53 = arith.constant 0 : index
    %c0_54 = arith.constant 0 : index
    %80 = vector.load %arg7[%c4, %c0_53, %c0_54] : memref<18x96x32xf32, #tpu.memory_space<vmem>>, vector<1x96x32xf32>
    %81 = vector.shape_cast %80 : vector<1x96x32xf32> to vector<96x32xf32>
    %cst_55 = arith.constant dense<0.000000e+00> : vector<16x32xf32>
    %82 = tpu.matmul %34, %81, %cst_55 {dimension_numbers = #tpu.dot_dimension_numbers<[1], [0], [0], [1], [0, 0, 1, 1], [], []>} : vector<16x96xf32>, vector<96x32xf32>, vector<16x32xf32> -> vector<16x32xf32>
    %c4_56 = arith.constant 4 : index
    %c0_57 = arith.constant 0 : index
    %c0_58 = arith.constant 0 : index
    %83 = vector.load %arg8[%c4_56, %c0_57, %c0_58] : memref<18x1x32xf32, #tpu.memory_space<vmem>>, vector<1x1x32xf32>
    %84 = vector.shape_cast %83 : vector<1x1x32xf32> to vector<1x32xf32>
    %85 = vector.broadcast %84 : vector<1x32xf32> to vector<16x32xf32>
    %86 = arith.addf %82, %85 : vector<16x32xf32>
    %c7 = arith.constant 7 : index
    %c0_59 = arith.constant 0 : index
    %c0_60 = arith.constant 0 : index
    %87 = vector.load %arg7[%c7, %c0_59, %c0_60] : memref<18x96x32xf32, #tpu.memory_space<vmem>>, vector<1x96x32xf32>
    %88 = vector.shape_cast %87 : vector<1x96x32xf32> to vector<96x32xf32>
    %cst_61 = arith.constant dense<0.000000e+00> : vector<16x32xf32>
    %89 = tpu.matmul %34, %88, %cst_61 {dimension_numbers = #tpu.dot_dimension_numbers<[1], [0], [0], [1], [0, 0, 1, 1], [], []>} : vector<16x96xf32>, vector<96x32xf32>, vector<16x32xf32> -> vector<16x32xf32>
    %c7_62 = arith.constant 7 : index
    %c0_63 = arith.constant 0 : index
    %c0_64 = arith.constant 0 : index
    %90 = vector.load %arg8[%c7_62, %c0_63, %c0_64] : memref<18x1x32xf32, #tpu.memory_space<vmem>>, vector<1x1x32xf32>
    %91 = vector.shape_cast %90 : vector<1x1x32xf32> to vector<1x32xf32>
    %92 = vector.broadcast %91 : vector<1x32xf32> to vector<16x32xf32>
    %93 = arith.addf %89, %92 : vector<16x32xf32>
    %cst_65 = arith.constant dense<0.000000e+00> : vector<16x16xf32>
    %94 = tpu.matmul %79, %86, %cst_65 {dimension_numbers = #tpu.dot_dimension_numbers<[1], [1], [0], [0], [0, 0, 1, 0], [], []>} : vector<16x32xf32>, vector<16x32xf32>, vector<16x16xf32> -> vector<16x16xf32>
    %cst_66 = arith.constant dense<0xFF800000> : vector<16xf32>
    %95 = vector.multi_reduction <maximumf>, %94, %cst_66 [1] : vector<16x16xf32> to vector<16xf32>
    %96 = vector.shape_cast %95 : vector<16xf32> to vector<16x1xf32>
    %97 = vector.broadcast %96 : vector<16x1xf32> to vector<16x16xf32>
    %98 = arith.subf %94, %97 : vector<16x16xf32>
    %99 = math.exp %98 : vector<16x16xf32>
    %cst_67 = arith.constant dense<0.000000e+00> : vector<16xf32>
    %100 = vector.multi_reduction <add>, %99, %cst_67 [1] : vector<16x16xf32> to vector<16xf32>
    %101 = vector.shape_cast %100 : vector<16xf32> to vector<16x1xf32>
    %102 = tpu.reciprocal %101 {approx = true} : vector<16x1xf32> -> vector<16x1xf32>
    %103 = vector.broadcast %102 : vector<16x1xf32> to vector<16x16xf32>
    %104 = arith.mulf %99, %103 : vector<16x16xf32>
    %cst_68 = arith.constant dense<0.000000e+00> : vector<16x32xf32>
    %105 = tpu.matmul %104, %93, %cst_68 {dimension_numbers = #tpu.dot_dimension_numbers<[1], [0], [0], [1], [0, 0, 1, 1], [], []>} : vector<16x16xf32>, vector<16x32xf32>, vector<16x32xf32> -> vector<16x32xf32>
    %c1_69 = arith.constant 1 : index
    %c0_70 = arith.constant 0 : index
    %c0_71 = arith.constant 0 : index
    %106 = vector.load %arg9[%c1_69, %c0_70, %c0_71] : memref<6x32x96xf32, #tpu.memory_space<vmem>>, vector<1x32x96xf32>
    %107 = vector.shape_cast %106 : vector<1x32x96xf32> to vector<32x96xf32>
    %cst_72 = arith.constant dense<0.000000e+00> : vector<16x96xf32>
    %108 = tpu.matmul %105, %107, %cst_72 {dimension_numbers = #tpu.dot_dimension_numbers<[1], [0], [0], [1], [0, 0, 1, 1], [], []>} : vector<16x32xf32>, vector<32x96xf32>, vector<16x96xf32> -> vector<16x96xf32>
    %109 = arith.addf %72, %108 : vector<16x96xf32>
    %c2 = arith.constant 2 : index
    %c0_73 = arith.constant 0 : index
    %c0_74 = arith.constant 0 : index
    %110 = vector.load %arg7[%c2, %c0_73, %c0_74] : memref<18x96x32xf32, #tpu.memory_space<vmem>>, vector<1x96x32xf32>
    %111 = vector.shape_cast %110 : vector<1x96x32xf32> to vector<96x32xf32>
    %cst_75 = arith.constant dense<0.000000e+00> : vector<16x32xf32>
    %112 = tpu.matmul %34, %111, %cst_75 {dimension_numbers = #tpu.dot_dimension_numbers<[1], [0], [0], [1], [0, 0, 1, 1], [], []>} : vector<16x96xf32>, vector<96x32xf32>, vector<16x32xf32> -> vector<16x32xf32>
    %c2_76 = arith.constant 2 : index
    %c0_77 = arith.constant 0 : index
    %c0_78 = arith.constant 0 : index
    %113 = vector.load %arg8[%c2_76, %c0_77, %c0_78] : memref<18x1x32xf32, #tpu.memory_space<vmem>>, vector<1x1x32xf32>
    %114 = vector.shape_cast %113 : vector<1x1x32xf32> to vector<1x32xf32>
    %115 = vector.broadcast %114 : vector<1x32xf32> to vector<16x32xf32>
    %116 = arith.addf %112, %115 : vector<16x32xf32>
    %c5 = arith.constant 5 : index
    %c0_79 = arith.constant 0 : index
    %c0_80 = arith.constant 0 : index
    %117 = vector.load %arg7[%c5, %c0_79, %c0_80] : memref<18x96x32xf32, #tpu.memory_space<vmem>>, vector<1x96x32xf32>
    %118 = vector.shape_cast %117 : vector<1x96x32xf32> to vector<96x32xf32>
    %cst_81 = arith.constant dense<0.000000e+00> : vector<16x32xf32>
    %119 = tpu.matmul %34, %118, %cst_81 {dimension_numbers = #tpu.dot_dimension_numbers<[1], [0], [0], [1], [0, 0, 1, 1], [], []>} : vector<16x96xf32>, vector<96x32xf32>, vector<16x32xf32> -> vector<16x32xf32>
    %c5_82 = arith.constant 5 : index
    %c0_83 = arith.constant 0 : index
    %c0_84 = arith.constant 0 : index
    %120 = vector.load %arg8[%c5_82, %c0_83, %c0_84] : memref<18x1x32xf32, #tpu.memory_space<vmem>>, vector<1x1x32xf32>
    %121 = vector.shape_cast %120 : vector<1x1x32xf32> to vector<1x32xf32>
    %122 = vector.broadcast %121 : vector<1x32xf32> to vector<16x32xf32>
    %123 = arith.addf %119, %122 : vector<16x32xf32>
    %c8 = arith.constant 8 : index
    %c0_85 = arith.constant 0 : index
    %c0_86 = arith.constant 0 : index
    %124 = vector.load %arg7[%c8, %c0_85, %c0_86] : memref<18x96x32xf32, #tpu.memory_space<vmem>>, vector<1x96x32xf32>
    %125 = vector.shape_cast %124 : vector<1x96x32xf32> to vector<96x32xf32>
    %cst_87 = arith.constant dense<0.000000e+00> : vector<16x32xf32>
    %126 = tpu.matmul %34, %125, %cst_87 {dimension_numbers = #tpu.dot_dimension_numbers<[1], [0], [0], [1], [0, 0, 1, 1], [], []>} : vector<16x96xf32>, vector<96x32xf32>, vector<16x32xf32> -> vector<16x32xf32>
    %c8_88 = arith.constant 8 : index
    %c0_89 = arith.constant 0 : index
    %c0_90 = arith.constant 0 : index
    %127 = vector.load %arg8[%c8_88, %c0_89, %c0_90] : memref<18x1x32xf32, #tpu.memory_space<vmem>>, vector<1x1x32xf32>
    %128 = vector.shape_cast %127 : vector<1x1x32xf32> to vector<1x32xf32>
    %129 = vector.broadcast %128 : vector<1x32xf32> to vector<16x32xf32>
    %130 = arith.addf %126, %129 : vector<16x32xf32>
    %cst_91 = arith.constant dense<0.000000e+00> : vector<16x16xf32>
    %131 = tpu.matmul %116, %123, %cst_91 {dimension_numbers = #tpu.dot_dimension_numbers<[1], [1], [0], [0], [0, 0, 1, 0], [], []>} : vector<16x32xf32>, vector<16x32xf32>, vector<16x16xf32> -> vector<16x16xf32>
    %cst_92 = arith.constant dense<0xFF800000> : vector<16xf32>
    %132 = vector.multi_reduction <maximumf>, %131, %cst_92 [1] : vector<16x16xf32> to vector<16xf32>
    %133 = vector.shape_cast %132 : vector<16xf32> to vector<16x1xf32>
    %134 = vector.broadcast %133 : vector<16x1xf32> to vector<16x16xf32>
    %135 = arith.subf %131, %134 : vector<16x16xf32>
    %136 = math.exp %135 : vector<16x16xf32>
    %cst_93 = arith.constant dense<0.000000e+00> : vector<16xf32>
    %137 = vector.multi_reduction <add>, %136, %cst_93 [1] : vector<16x16xf32> to vector<16xf32>
    %138 = vector.shape_cast %137 : vector<16xf32> to vector<16x1xf32>
    %139 = tpu.reciprocal %138 {approx = true} : vector<16x1xf32> -> vector<16x1xf32>
    %140 = vector.broadcast %139 : vector<16x1xf32> to vector<16x16xf32>
    %141 = arith.mulf %136, %140 : vector<16x16xf32>
    %cst_94 = arith.constant dense<0.000000e+00> : vector<16x32xf32>
    %142 = tpu.matmul %141, %130, %cst_94 {dimension_numbers = #tpu.dot_dimension_numbers<[1], [0], [0], [1], [0, 0, 1, 1], [], []>} : vector<16x16xf32>, vector<16x32xf32>, vector<16x32xf32> -> vector<16x32xf32>
    %c2_95 = arith.constant 2 : index
    %c0_96 = arith.constant 0 : index
    %c0_97 = arith.constant 0 : index
    %143 = vector.load %arg9[%c2_95, %c0_96, %c0_97] : memref<6x32x96xf32, #tpu.memory_space<vmem>>, vector<1x32x96xf32>
    %144 = vector.shape_cast %143 : vector<1x32x96xf32> to vector<32x96xf32>
    %cst_98 = arith.constant dense<0.000000e+00> : vector<16x96xf32>
    %145 = tpu.matmul %142, %144, %cst_98 {dimension_numbers = #tpu.dot_dimension_numbers<[1], [0], [0], [1], [0, 0, 1, 1], [], []>} : vector<16x32xf32>, vector<32x96xf32>, vector<16x96xf32> -> vector<16x96xf32>
    %146 = arith.addf %109, %145 : vector<16x96xf32>
    %147 = arith.addf %8, %146 : vector<16x96xf32>
    %c0_99 = arith.constant 0 : index
    %c0_100 = arith.constant 0 : index
    %c0_101 = arith.constant 0 : index
    %148 = vector.load %arg10[%c0_99, %c0_100, %c0_101] : memref<2x1x96xf32, #tpu.memory_space<vmem>>, vector<1x1x96xf32>
    %149 = vector.shape_cast %148 : vector<1x1x96xf32> to vector<1x96xf32>
    %150 = vector.broadcast %149 : vector<1x96xf32> to vector<16x96xf32>
    %151 = arith.addf %147, %150 : vector<16x96xf32>
    %c0_102 = arith.constant 0 : index
    %c0_103 = arith.constant 0 : index
    %c0_104 = arith.constant 0 : index
    %152 = vector.load %arg11[%c0_102, %c0_103, %c0_104] : memref<2x1x96xf32, #tpu.memory_space<vmem>>, vector<1x1x96xf32>
    %153 = vector.shape_cast %152 : vector<1x1x96xf32> to vector<1x96xf32>
    %c0_105 = arith.constant 0 : index
    %c0_106 = arith.constant 0 : index
    %c0_107 = arith.constant 0 : index
    %154 = vector.load %arg12[%c0_105, %c0_106, %c0_107] : memref<2x1x96xf32, #tpu.memory_space<vmem>>, vector<1x1x96xf32>
    %155 = vector.shape_cast %154 : vector<1x1x96xf32> to vector<1x96xf32>
    %cst_108 = arith.constant dense<0.000000e+00> : vector<16xf32>
    %156 = vector.multi_reduction <add>, %151, %cst_108 [1] : vector<16x96xf32> to vector<16xf32>
    %157 = vector.shape_cast %156 : vector<16xf32> to vector<16x1xf32>
    %cst_109 = arith.constant 9.600000e+01 : f32
    %158 = vector.broadcast %cst_109 : f32 to vector<16x1xf32>
    %159 = arith.divf %157, %158 : vector<16x1xf32>
    %160 = vector.broadcast %159 : vector<16x1xf32> to vector<16x96xf32>
    %161 = arith.subf %151, %160 : vector<16x96xf32>
    %162 = arith.mulf %161, %161 : vector<16x96xf32>
    %cst_110 = arith.constant dense<0.000000e+00> : vector<16xf32>
    %163 = vector.multi_reduction <add>, %162, %cst_110 [1] : vector<16x96xf32> to vector<16xf32>
    %164 = vector.shape_cast %163 : vector<16xf32> to vector<16x1xf32>
    %cst_111 = arith.constant 9.600000e+01 : f32
    %165 = vector.broadcast %cst_111 : f32 to vector<16x1xf32>
    %166 = arith.divf %164, %165 : vector<16x1xf32>
    %167 = vector.broadcast %159 : vector<16x1xf32> to vector<16x96xf32>
    %168 = arith.subf %151, %167 : vector<16x96xf32>
    %cst_112 = arith.constant 9.99999974E-6 : f32
    %169 = vector.broadcast %cst_112 : f32 to vector<16x1xf32>
    %170 = arith.addf %166, %169 : vector<16x1xf32>
    %171 = math.rsqrt %170 : vector<16x1xf32>
    %172 = vector.broadcast %171 : vector<16x1xf32> to vector<16x96xf32>
    %173 = arith.mulf %168, %172 : vector<16x96xf32>
    %174 = vector.broadcast %153 : vector<1x96xf32> to vector<16x96xf32>
    %175 = arith.mulf %173, %174 : vector<16x96xf32>
    %176 = vector.broadcast %155 : vector<1x96xf32> to vector<16x96xf32>
    %177 = arith.addf %175, %176 : vector<16x96xf32>
    %c0_113 = arith.constant 0 : index
    %c0_114 = arith.constant 0 : index
    %c0_115 = arith.constant 0 : index
    %178 = vector.load %arg13[%c0_113, %c0_114, %c0_115] : memref<2x96x384xf32, #tpu.memory_space<vmem>>, vector<1x96x384xf32>
    %179 = vector.shape_cast %178 : vector<1x96x384xf32> to vector<96x384xf32>
    %cst_116 = arith.constant dense<0.000000e+00> : vector<16x384xf32>
    %180 = tpu.matmul %177, %179, %cst_116 {dimension_numbers = #tpu.dot_dimension_numbers<[1], [0], [0], [1], [0, 0, 1, 1], [], []>} : vector<16x96xf32>, vector<96x384xf32>, vector<16x384xf32> -> vector<16x384xf32>
    %c0_117 = arith.constant 0 : index
    %c0_118 = arith.constant 0 : index
    %c0_119 = arith.constant 0 : index
    %181 = vector.load %arg14[%c0_117, %c0_118, %c0_119] : memref<2x1x384xf32, #tpu.memory_space<vmem>>, vector<1x1x384xf32>
    %182 = vector.shape_cast %181 : vector<1x1x384xf32> to vector<1x384xf32>
    %183 = vector.broadcast %182 : vector<1x384xf32> to vector<16x384xf32>
    %184 = arith.addf %180, %183 : vector<16x384xf32>
    %cst_120 = arith.constant 5.000000e-01 : f32
    %185 = vector.broadcast %cst_120 : f32 to vector<16x384xf32>
    %186 = arith.mulf %185, %184 : vector<16x384xf32>
    %cst_121 = arith.constant 0.707106769 : f32
    %187 = vector.broadcast %cst_121 : f32 to vector<16x384xf32>
    %188 = arith.mulf %184, %187 : vector<16x384xf32>
    %cst_122 = arith.constant 0.000000e+00 : f32
    %189 = vector.broadcast %cst_122 : f32 to vector<16x384xf32>
    %190 = arith.cmpf olt, %188, %189 : vector<16x384xf32>
    %cst_123 = arith.constant -1.000000e+00 : f32
    %cst_124 = arith.constant 1.000000e+00 : f32
    %191 = vector.broadcast %cst_123 : f32 to vector<16x384xf32>
    %192 = vector.broadcast %cst_124 : f32 to vector<16x384xf32>
    %193 = arith.select %190, %191, %192 : vector<16x384xi1>, vector<16x384xf32>
    %194 = math.absf %188 : vector<16x384xf32>
    %cst_125 = arith.constant 0.327591091 : f32
    %195 = vector.broadcast %cst_125 : f32 to vector<16x384xf32>
    %196 = arith.mulf %195, %194 : vector<16x384xf32>
    %cst_126 = arith.constant 1.000000e+00 : f32
    %197 = vector.broadcast %cst_126 : f32 to vector<16x384xf32>
    %198 = arith.addf %197, %196 : vector<16x384xf32>
    %199 = tpu.reciprocal %198 {approx = true} : vector<16x384xf32> -> vector<16x384xf32>
    %cst_127 = arith.constant 1.06140542 : f32
    %200 = vector.broadcast %cst_127 : f32 to vector<16x384xf32>
    %201 = arith.mulf %200, %199 : vector<16x384xf32>
    %cst_128 = arith.constant -1.45315206 : f32
    %202 = vector.broadcast %cst_128 : f32 to vector<16x384xf32>
    %203 = arith.addf %201, %202 : vector<16x384xf32>
    %204 = arith.mulf %203, %199 : vector<16x384xf32>
    %cst_129 = arith.constant 1.42141378 : f32
    %205 = vector.broadcast %cst_129 : f32 to vector<16x384xf32>
    %206 = arith.addf %204, %205 : vector<16x384xf32>
    %207 = arith.mulf %206, %199 : vector<16x384xf32>
    %cst_130 = arith.constant -0.284496725 : f32
    %208 = vector.broadcast %cst_130 : f32 to vector<16x384xf32>
    %209 = arith.addf %207, %208 : vector<16x384xf32>
    %210 = arith.mulf %209, %199 : vector<16x384xf32>
    %cst_131 = arith.constant 0.254829586 : f32
    %211 = vector.broadcast %cst_131 : f32 to vector<16x384xf32>
    %212 = arith.addf %210, %211 : vector<16x384xf32>
    %213 = arith.mulf %212, %199 : vector<16x384xf32>
    %cst_132 = arith.constant 0.000000e+00 : f32
    %214 = vector.broadcast %cst_132 : f32 to vector<16x384xf32>
    %215 = arith.subf %214, %194 : vector<16x384xf32>
    %216 = arith.mulf %215, %194 : vector<16x384xf32>
    %217 = math.exp %216 : vector<16x384xf32>
    %218 = arith.mulf %213, %217 : vector<16x384xf32>
    %cst_133 = arith.constant 1.000000e+00 : f32
    %219 = vector.broadcast %cst_133 : f32 to vector<16x384xf32>
    %220 = arith.subf %219, %218 : vector<16x384xf32>
    %221 = arith.mulf %193, %220 : vector<16x384xf32>
    %cst_134 = arith.constant 1.000000e+00 : f32
    %222 = vector.broadcast %cst_134 : f32 to vector<16x384xf32>
    %223 = arith.addf %222, %221 : vector<16x384xf32>
    %224 = arith.mulf %186, %223 : vector<16x384xf32>
    %c0_135 = arith.constant 0 : index
    %c0_136 = arith.constant 0 : index
    %c0_137 = arith.constant 0 : index
    %225 = vector.load %arg15[%c0_135, %c0_136, %c0_137] : memref<2x384x96xf32, #tpu.memory_space<vmem>>, vector<1x384x96xf32>
    %226 = vector.shape_cast %225 : vector<1x384x96xf32> to vector<384x96xf32>
    %cst_138 = arith.constant dense<0.000000e+00> : vector<16x96xf32>
    %227 = tpu.matmul %224, %226, %cst_138 {dimension_numbers = #tpu.dot_dimension_numbers<[1], [0], [0], [1], [0, 0, 1, 1], [], []>} : vector<16x384xf32>, vector<384x96xf32>, vector<16x96xf32> -> vector<16x96xf32>
    %228 = arith.addf %151, %227 : vector<16x96xf32>
    %c0_139 = arith.constant 0 : index
    %c0_140 = arith.constant 0 : index
    %c0_141 = arith.constant 0 : index
    %229 = vector.load %arg16[%c0_139, %c0_140, %c0_141] : memref<2x1x96xf32, #tpu.memory_space<vmem>>, vector<1x1x96xf32>
    %230 = vector.shape_cast %229 : vector<1x1x96xf32> to vector<1x96xf32>
    %231 = vector.broadcast %230 : vector<1x96xf32> to vector<16x96xf32>
    %232 = arith.addf %228, %231 : vector<16x96xf32>
    %c1_142 = arith.constant 1 : index
    %c0_143 = arith.constant 0 : index
    %c0_144 = arith.constant 0 : index
    %233 = vector.load %arg5[%c1_142, %c0_143, %c0_144] : memref<2x1x96xf32, #tpu.memory_space<vmem>>, vector<1x1x96xf32>
    %234 = vector.shape_cast %233 : vector<1x1x96xf32> to vector<1x96xf32>
    %c1_145 = arith.constant 1 : index
    %c0_146 = arith.constant 0 : index
    %c0_147 = arith.constant 0 : index
    %235 = vector.load %arg6[%c1_145, %c0_146, %c0_147] : memref<2x1x96xf32, #tpu.memory_space<vmem>>, vector<1x1x96xf32>
    %236 = vector.shape_cast %235 : vector<1x1x96xf32> to vector<1x96xf32>
    %cst_148 = arith.constant dense<0.000000e+00> : vector<16xf32>
    %237 = vector.multi_reduction <add>, %232, %cst_148 [1] : vector<16x96xf32> to vector<16xf32>
    %238 = vector.shape_cast %237 : vector<16xf32> to vector<16x1xf32>
    %cst_149 = arith.constant 9.600000e+01 : f32
    %239 = vector.broadcast %cst_149 : f32 to vector<16x1xf32>
    %240 = arith.divf %238, %239 : vector<16x1xf32>
    %241 = vector.broadcast %240 : vector<16x1xf32> to vector<16x96xf32>
    %242 = arith.subf %232, %241 : vector<16x96xf32>
    %243 = arith.mulf %242, %242 : vector<16x96xf32>
    %cst_150 = arith.constant dense<0.000000e+00> : vector<16xf32>
    %244 = vector.multi_reduction <add>, %243, %cst_150 [1] : vector<16x96xf32> to vector<16xf32>
    %245 = vector.shape_cast %244 : vector<16xf32> to vector<16x1xf32>
    %cst_151 = arith.constant 9.600000e+01 : f32
    %246 = vector.broadcast %cst_151 : f32 to vector<16x1xf32>
    %247 = arith.divf %245, %246 : vector<16x1xf32>
    %248 = vector.broadcast %240 : vector<16x1xf32> to vector<16x96xf32>
    %249 = arith.subf %232, %248 : vector<16x96xf32>
    %cst_152 = arith.constant 9.99999974E-6 : f32
    %250 = vector.broadcast %cst_152 : f32 to vector<16x1xf32>
    %251 = arith.addf %247, %250 : vector<16x1xf32>
    %252 = math.rsqrt %251 : vector<16x1xf32>
    %253 = vector.broadcast %252 : vector<16x1xf32> to vector<16x96xf32>
    %254 = arith.mulf %249, %253 : vector<16x96xf32>
    %255 = vector.broadcast %234 : vector<1x96xf32> to vector<16x96xf32>
    %256 = arith.mulf %254, %255 : vector<16x96xf32>
    %257 = vector.broadcast %236 : vector<1x96xf32> to vector<16x96xf32>
    %258 = arith.addf %256, %257 : vector<16x96xf32>
    %cst_153 = arith.constant 0.000000e+00 : f32
    %259 = vector.broadcast %cst_153 : f32 to vector<16x96xf32>
    %c9 = arith.constant 9 : index
    %c0_154 = arith.constant 0 : index
    %c0_155 = arith.constant 0 : index
    %260 = vector.load %arg7[%c9, %c0_154, %c0_155] : memref<18x96x32xf32, #tpu.memory_space<vmem>>, vector<1x96x32xf32>
    %261 = vector.shape_cast %260 : vector<1x96x32xf32> to vector<96x32xf32>
    %cst_156 = arith.constant dense<0.000000e+00> : vector<16x32xf32>
    %262 = tpu.matmul %258, %261, %cst_156 {dimension_numbers = #tpu.dot_dimension_numbers<[1], [0], [0], [1], [0, 0, 1, 1], [], []>} : vector<16x96xf32>, vector<96x32xf32>, vector<16x32xf32> -> vector<16x32xf32>
    %c9_157 = arith.constant 9 : index
    %c0_158 = arith.constant 0 : index
    %c0_159 = arith.constant 0 : index
    %263 = vector.load %arg8[%c9_157, %c0_158, %c0_159] : memref<18x1x32xf32, #tpu.memory_space<vmem>>, vector<1x1x32xf32>
    %264 = vector.shape_cast %263 : vector<1x1x32xf32> to vector<1x32xf32>
    %265 = vector.broadcast %264 : vector<1x32xf32> to vector<16x32xf32>
    %266 = arith.addf %262, %265 : vector<16x32xf32>
    %c12 = arith.constant 12 : index
    %c0_160 = arith.constant 0 : index
    %c0_161 = arith.constant 0 : index
    %267 = vector.load %arg7[%c12, %c0_160, %c0_161] : memref<18x96x32xf32, #tpu.memory_space<vmem>>, vector<1x96x32xf32>
    %268 = vector.shape_cast %267 : vector<1x96x32xf32> to vector<96x32xf32>
    %cst_162 = arith.constant dense<0.000000e+00> : vector<16x32xf32>
    %269 = tpu.matmul %258, %268, %cst_162 {dimension_numbers = #tpu.dot_dimension_numbers<[1], [0], [0], [1], [0, 0, 1, 1], [], []>} : vector<16x96xf32>, vector<96x32xf32>, vector<16x32xf32> -> vector<16x32xf32>
    %c12_163 = arith.constant 12 : index
    %c0_164 = arith.constant 0 : index
    %c0_165 = arith.constant 0 : index
    %270 = vector.load %arg8[%c12_163, %c0_164, %c0_165] : memref<18x1x32xf32, #tpu.memory_space<vmem>>, vector<1x1x32xf32>
    %271 = vector.shape_cast %270 : vector<1x1x32xf32> to vector<1x32xf32>
    %272 = vector.broadcast %271 : vector<1x32xf32> to vector<16x32xf32>
    %273 = arith.addf %269, %272 : vector<16x32xf32>
    %c15 = arith.constant 15 : index
    %c0_166 = arith.constant 0 : index
    %c0_167 = arith.constant 0 : index
    %274 = vector.load %arg7[%c15, %c0_166, %c0_167] : memref<18x96x32xf32, #tpu.memory_space<vmem>>, vector<1x96x32xf32>
    %275 = vector.shape_cast %274 : vector<1x96x32xf32> to vector<96x32xf32>
    %cst_168 = arith.constant dense<0.000000e+00> : vector<16x32xf32>
    %276 = tpu.matmul %258, %275, %cst_168 {dimension_numbers = #tpu.dot_dimension_numbers<[1], [0], [0], [1], [0, 0, 1, 1], [], []>} : vector<16x96xf32>, vector<96x32xf32>, vector<16x32xf32> -> vector<16x32xf32>
    %c15_169 = arith.constant 15 : index
    %c0_170 = arith.constant 0 : index
    %c0_171 = arith.constant 0 : index
    %277 = vector.load %arg8[%c15_169, %c0_170, %c0_171] : memref<18x1x32xf32, #tpu.memory_space<vmem>>, vector<1x1x32xf32>
    %278 = vector.shape_cast %277 : vector<1x1x32xf32> to vector<1x32xf32>
    %279 = vector.broadcast %278 : vector<1x32xf32> to vector<16x32xf32>
    %280 = arith.addf %276, %279 : vector<16x32xf32>
    %cst_172 = arith.constant dense<0.000000e+00> : vector<16x16xf32>
    %281 = tpu.matmul %266, %273, %cst_172 {dimension_numbers = #tpu.dot_dimension_numbers<[1], [1], [0], [0], [0, 0, 1, 0], [], []>} : vector<16x32xf32>, vector<16x32xf32>, vector<16x16xf32> -> vector<16x16xf32>
    %cst_173 = arith.constant dense<0xFF800000> : vector<16xf32>
    %282 = vector.multi_reduction <maximumf>, %281, %cst_173 [1] : vector<16x16xf32> to vector<16xf32>
    %283 = vector.shape_cast %282 : vector<16xf32> to vector<16x1xf32>
    %284 = vector.broadcast %283 : vector<16x1xf32> to vector<16x16xf32>
    %285 = arith.subf %281, %284 : vector<16x16xf32>
    %286 = math.exp %285 : vector<16x16xf32>
    %cst_174 = arith.constant dense<0.000000e+00> : vector<16xf32>
    %287 = vector.multi_reduction <add>, %286, %cst_174 [1] : vector<16x16xf32> to vector<16xf32>
    %288 = vector.shape_cast %287 : vector<16xf32> to vector<16x1xf32>
    %289 = tpu.reciprocal %288 {approx = true} : vector<16x1xf32> -> vector<16x1xf32>
    %290 = vector.broadcast %289 : vector<16x1xf32> to vector<16x16xf32>
    %291 = arith.mulf %286, %290 : vector<16x16xf32>
    %cst_175 = arith.constant dense<0.000000e+00> : vector<16x32xf32>
    %292 = tpu.matmul %291, %280, %cst_175 {dimension_numbers = #tpu.dot_dimension_numbers<[1], [0], [0], [1], [0, 0, 1, 1], [], []>} : vector<16x16xf32>, vector<16x32xf32>, vector<16x32xf32> -> vector<16x32xf32>
    %c3_176 = arith.constant 3 : index
    %c0_177 = arith.constant 0 : index
    %c0_178 = arith.constant 0 : index
    %293 = vector.load %arg9[%c3_176, %c0_177, %c0_178] : memref<6x32x96xf32, #tpu.memory_space<vmem>>, vector<1x32x96xf32>
    %294 = vector.shape_cast %293 : vector<1x32x96xf32> to vector<32x96xf32>
    %cst_179 = arith.constant dense<0.000000e+00> : vector<16x96xf32>
    %295 = tpu.matmul %292, %294, %cst_179 {dimension_numbers = #tpu.dot_dimension_numbers<[1], [0], [0], [1], [0, 0, 1, 1], [], []>} : vector<16x32xf32>, vector<32x96xf32>, vector<16x96xf32> -> vector<16x96xf32>
    %296 = arith.addf %259, %295 : vector<16x96xf32>
    %c10 = arith.constant 10 : index
    %c0_180 = arith.constant 0 : index
    %c0_181 = arith.constant 0 : index
    %297 = vector.load %arg7[%c10, %c0_180, %c0_181] : memref<18x96x32xf32, #tpu.memory_space<vmem>>, vector<1x96x32xf32>
    %298 = vector.shape_cast %297 : vector<1x96x32xf32> to vector<96x32xf32>
    %cst_182 = arith.constant dense<0.000000e+00> : vector<16x32xf32>
    %299 = tpu.matmul %258, %298, %cst_182 {dimension_numbers = #tpu.dot_dimension_numbers<[1], [0], [0], [1], [0, 0, 1, 1], [], []>} : vector<16x96xf32>, vector<96x32xf32>, vector<16x32xf32> -> vector<16x32xf32>
    %c10_183 = arith.constant 10 : index
    %c0_184 = arith.constant 0 : index
    %c0_185 = arith.constant 0 : index
    %300 = vector.load %arg8[%c10_183, %c0_184, %c0_185] : memref<18x1x32xf32, #tpu.memory_space<vmem>>, vector<1x1x32xf32>
    %301 = vector.shape_cast %300 : vector<1x1x32xf32> to vector<1x32xf32>
    %302 = vector.broadcast %301 : vector<1x32xf32> to vector<16x32xf32>
    %303 = arith.addf %299, %302 : vector<16x32xf32>
    %c13 = arith.constant 13 : index
    %c0_186 = arith.constant 0 : index
    %c0_187 = arith.constant 0 : index
    %304 = vector.load %arg7[%c13, %c0_186, %c0_187] : memref<18x96x32xf32, #tpu.memory_space<vmem>>, vector<1x96x32xf32>
    %305 = vector.shape_cast %304 : vector<1x96x32xf32> to vector<96x32xf32>
    %cst_188 = arith.constant dense<0.000000e+00> : vector<16x32xf32>
    %306 = tpu.matmul %258, %305, %cst_188 {dimension_numbers = #tpu.dot_dimension_numbers<[1], [0], [0], [1], [0, 0, 1, 1], [], []>} : vector<16x96xf32>, vector<96x32xf32>, vector<16x32xf32> -> vector<16x32xf32>
    %c13_189 = arith.constant 13 : index
    %c0_190 = arith.constant 0 : index
    %c0_191 = arith.constant 0 : index
    %307 = vector.load %arg8[%c13_189, %c0_190, %c0_191] : memref<18x1x32xf32, #tpu.memory_space<vmem>>, vector<1x1x32xf32>
    %308 = vector.shape_cast %307 : vector<1x1x32xf32> to vector<1x32xf32>
    %309 = vector.broadcast %308 : vector<1x32xf32> to vector<16x32xf32>
    %310 = arith.addf %306, %309 : vector<16x32xf32>
    %c16 = arith.constant 16 : index
    %c0_192 = arith.constant 0 : index
    %c0_193 = arith.constant 0 : index
    %311 = vector.load %arg7[%c16, %c0_192, %c0_193] : memref<18x96x32xf32, #tpu.memory_space<vmem>>, vector<1x96x32xf32>
    %312 = vector.shape_cast %311 : vector<1x96x32xf32> to vector<96x32xf32>
    %cst_194 = arith.constant dense<0.000000e+00> : vector<16x32xf32>
    %313 = tpu.matmul %258, %312, %cst_194 {dimension_numbers = #tpu.dot_dimension_numbers<[1], [0], [0], [1], [0, 0, 1, 1], [], []>} : vector<16x96xf32>, vector<96x32xf32>, vector<16x32xf32> -> vector<16x32xf32>
    %c16_195 = arith.constant 16 : index
    %c0_196 = arith.constant 0 : index
    %c0_197 = arith.constant 0 : index
    %314 = vector.load %arg8[%c16_195, %c0_196, %c0_197] : memref<18x1x32xf32, #tpu.memory_space<vmem>>, vector<1x1x32xf32>
    %315 = vector.shape_cast %314 : vector<1x1x32xf32> to vector<1x32xf32>
    %316 = vector.broadcast %315 : vector<1x32xf32> to vector<16x32xf32>
    %317 = arith.addf %313, %316 : vector<16x32xf32>
    %cst_198 = arith.constant dense<0.000000e+00> : vector<16x16xf32>
    %318 = tpu.matmul %303, %310, %cst_198 {dimension_numbers = #tpu.dot_dimension_numbers<[1], [1], [0], [0], [0, 0, 1, 0], [], []>} : vector<16x32xf32>, vector<16x32xf32>, vector<16x16xf32> -> vector<16x16xf32>
    %cst_199 = arith.constant dense<0xFF800000> : vector<16xf32>
    %319 = vector.multi_reduction <maximumf>, %318, %cst_199 [1] : vector<16x16xf32> to vector<16xf32>
    %320 = vector.shape_cast %319 : vector<16xf32> to vector<16x1xf32>
    %321 = vector.broadcast %320 : vector<16x1xf32> to vector<16x16xf32>
    %322 = arith.subf %318, %321 : vector<16x16xf32>
    %323 = math.exp %322 : vector<16x16xf32>
    %cst_200 = arith.constant dense<0.000000e+00> : vector<16xf32>
    %324 = vector.multi_reduction <add>, %323, %cst_200 [1] : vector<16x16xf32> to vector<16xf32>
    %325 = vector.shape_cast %324 : vector<16xf32> to vector<16x1xf32>
    %326 = tpu.reciprocal %325 {approx = true} : vector<16x1xf32> -> vector<16x1xf32>
    %327 = vector.broadcast %326 : vector<16x1xf32> to vector<16x16xf32>
    %328 = arith.mulf %323, %327 : vector<16x16xf32>
    %cst_201 = arith.constant dense<0.000000e+00> : vector<16x32xf32>
    %329 = tpu.matmul %328, %317, %cst_201 {dimension_numbers = #tpu.dot_dimension_numbers<[1], [0], [0], [1], [0, 0, 1, 1], [], []>} : vector<16x16xf32>, vector<16x32xf32>, vector<16x32xf32> -> vector<16x32xf32>
    %c4_202 = arith.constant 4 : index
    %c0_203 = arith.constant 0 : index
    %c0_204 = arith.constant 0 : index
    %330 = vector.load %arg9[%c4_202, %c0_203, %c0_204] : memref<6x32x96xf32, #tpu.memory_space<vmem>>, vector<1x32x96xf32>
    %331 = vector.shape_cast %330 : vector<1x32x96xf32> to vector<32x96xf32>
    %cst_205 = arith.constant dense<0.000000e+00> : vector<16x96xf32>
    %332 = tpu.matmul %329, %331, %cst_205 {dimension_numbers = #tpu.dot_dimension_numbers<[1], [0], [0], [1], [0, 0, 1, 1], [], []>} : vector<16x32xf32>, vector<32x96xf32>, vector<16x96xf32> -> vector<16x96xf32>
    %333 = arith.addf %296, %332 : vector<16x96xf32>
    %c11 = arith.constant 11 : index
    %c0_206 = arith.constant 0 : index
    %c0_207 = arith.constant 0 : index
    %334 = vector.load %arg7[%c11, %c0_206, %c0_207] : memref<18x96x32xf32, #tpu.memory_space<vmem>>, vector<1x96x32xf32>
    %335 = vector.shape_cast %334 : vector<1x96x32xf32> to vector<96x32xf32>
    %cst_208 = arith.constant dense<0.000000e+00> : vector<16x32xf32>
    %336 = tpu.matmul %258, %335, %cst_208 {dimension_numbers = #tpu.dot_dimension_numbers<[1], [0], [0], [1], [0, 0, 1, 1], [], []>} : vector<16x96xf32>, vector<96x32xf32>, vector<16x32xf32> -> vector<16x32xf32>
    %c11_209 = arith.constant 11 : index
    %c0_210 = arith.constant 0 : index
    %c0_211 = arith.constant 0 : index
    %337 = vector.load %arg8[%c11_209, %c0_210, %c0_211] : memref<18x1x32xf32, #tpu.memory_space<vmem>>, vector<1x1x32xf32>
    %338 = vector.shape_cast %337 : vector<1x1x32xf32> to vector<1x32xf32>
    %339 = vector.broadcast %338 : vector<1x32xf32> to vector<16x32xf32>
    %340 = arith.addf %336, %339 : vector<16x32xf32>
    %c14 = arith.constant 14 : index
    %c0_212 = arith.constant 0 : index
    %c0_213 = arith.constant 0 : index
    %341 = vector.load %arg7[%c14, %c0_212, %c0_213] : memref<18x96x32xf32, #tpu.memory_space<vmem>>, vector<1x96x32xf32>
    %342 = vector.shape_cast %341 : vector<1x96x32xf32> to vector<96x32xf32>
    %cst_214 = arith.constant dense<0.000000e+00> : vector<16x32xf32>
    %343 = tpu.matmul %258, %342, %cst_214 {dimension_numbers = #tpu.dot_dimension_numbers<[1], [0], [0], [1], [0, 0, 1, 1], [], []>} : vector<16x96xf32>, vector<96x32xf32>, vector<16x32xf32> -> vector<16x32xf32>
    %c14_215 = arith.constant 14 : index
    %c0_216 = arith.constant 0 : index
    %c0_217 = arith.constant 0 : index
    %344 = vector.load %arg8[%c14_215, %c0_216, %c0_217] : memref<18x1x32xf32, #tpu.memory_space<vmem>>, vector<1x1x32xf32>
    %345 = vector.shape_cast %344 : vector<1x1x32xf32> to vector<1x32xf32>
    %346 = vector.broadcast %345 : vector<1x32xf32> to vector<16x32xf32>
    %347 = arith.addf %343, %346 : vector<16x32xf32>
    %c17 = arith.constant 17 : index
    %c0_218 = arith.constant 0 : index
    %c0_219 = arith.constant 0 : index
    %348 = vector.load %arg7[%c17, %c0_218, %c0_219] : memref<18x96x32xf32, #tpu.memory_space<vmem>>, vector<1x96x32xf32>
    %349 = vector.shape_cast %348 : vector<1x96x32xf32> to vector<96x32xf32>
    %cst_220 = arith.constant dense<0.000000e+00> : vector<16x32xf32>
    %350 = tpu.matmul %258, %349, %cst_220 {dimension_numbers = #tpu.dot_dimension_numbers<[1], [0], [0], [1], [0, 0, 1, 1], [], []>} : vector<16x96xf32>, vector<96x32xf32>, vector<16x32xf32> -> vector<16x32xf32>
    %c17_221 = arith.constant 17 : index
    %c0_222 = arith.constant 0 : index
    %c0_223 = arith.constant 0 : index
    %351 = vector.load %arg8[%c17_221, %c0_222, %c0_223] : memref<18x1x32xf32, #tpu.memory_space<vmem>>, vector<1x1x32xf32>
    %352 = vector.shape_cast %351 : vector<1x1x32xf32> to vector<1x32xf32>
    %353 = vector.broadcast %352 : vector<1x32xf32> to vector<16x32xf32>
    %354 = arith.addf %350, %353 : vector<16x32xf32>
    %cst_224 = arith.constant dense<0.000000e+00> : vector<16x16xf32>
    %355 = tpu.matmul %340, %347, %cst_224 {dimension_numbers = #tpu.dot_dimension_numbers<[1], [1], [0], [0], [0, 0, 1, 0], [], []>} : vector<16x32xf32>, vector<16x32xf32>, vector<16x16xf32> -> vector<16x16xf32>
    %cst_225 = arith.constant dense<0xFF800000> : vector<16xf32>
    %356 = vector.multi_reduction <maximumf>, %355, %cst_225 [1] : vector<16x16xf32> to vector<16xf32>
    %357 = vector.shape_cast %356 : vector<16xf32> to vector<16x1xf32>
    %358 = vector.broadcast %357 : vector<16x1xf32> to vector<16x16xf32>
    %359 = arith.subf %355, %358 : vector<16x16xf32>
    %360 = math.exp %359 : vector<16x16xf32>
    %cst_226 = arith.constant dense<0.000000e+00> : vector<16xf32>
    %361 = vector.multi_reduction <add>, %360, %cst_226 [1] : vector<16x16xf32> to vector<16xf32>
    %362 = vector.shape_cast %361 : vector<16xf32> to vector<16x1xf32>
    %363 = tpu.reciprocal %362 {approx = true} : vector<16x1xf32> -> vector<16x1xf32>
    %364 = vector.broadcast %363 : vector<16x1xf32> to vector<16x16xf32>
    %365 = arith.mulf %360, %364 : vector<16x16xf32>
    %cst_227 = arith.constant dense<0.000000e+00> : vector<16x32xf32>
    %366 = tpu.matmul %365, %354, %cst_227 {dimension_numbers = #tpu.dot_dimension_numbers<[1], [0], [0], [1], [0, 0, 1, 1], [], []>} : vector<16x16xf32>, vector<16x32xf32>, vector<16x32xf32> -> vector<16x32xf32>
    %c5_228 = arith.constant 5 : index
    %c0_229 = arith.constant 0 : index
    %c0_230 = arith.constant 0 : index
    %367 = vector.load %arg9[%c5_228, %c0_229, %c0_230] : memref<6x32x96xf32, #tpu.memory_space<vmem>>, vector<1x32x96xf32>
    %368 = vector.shape_cast %367 : vector<1x32x96xf32> to vector<32x96xf32>
    %cst_231 = arith.constant dense<0.000000e+00> : vector<16x96xf32>
    %369 = tpu.matmul %366, %368, %cst_231 {dimension_numbers = #tpu.dot_dimension_numbers<[1], [0], [0], [1], [0, 0, 1, 1], [], []>} : vector<16x32xf32>, vector<32x96xf32>, vector<16x96xf32> -> vector<16x96xf32>
    %370 = arith.addf %333, %369 : vector<16x96xf32>
    %371 = arith.addf %232, %370 : vector<16x96xf32>
    %c1_232 = arith.constant 1 : index
    %c0_233 = arith.constant 0 : index
    %c0_234 = arith.constant 0 : index
    %372 = vector.load %arg10[%c1_232, %c0_233, %c0_234] : memref<2x1x96xf32, #tpu.memory_space<vmem>>, vector<1x1x96xf32>
    %373 = vector.shape_cast %372 : vector<1x1x96xf32> to vector<1x96xf32>
    %374 = vector.broadcast %373 : vector<1x96xf32> to vector<16x96xf32>
    %375 = arith.addf %371, %374 : vector<16x96xf32>
    %c1_235 = arith.constant 1 : index
    %c0_236 = arith.constant 0 : index
    %c0_237 = arith.constant 0 : index
    %376 = vector.load %arg11[%c1_235, %c0_236, %c0_237] : memref<2x1x96xf32, #tpu.memory_space<vmem>>, vector<1x1x96xf32>
    %377 = vector.shape_cast %376 : vector<1x1x96xf32> to vector<1x96xf32>
    %c1_238 = arith.constant 1 : index
    %c0_239 = arith.constant 0 : index
    %c0_240 = arith.constant 0 : index
    %378 = vector.load %arg12[%c1_238, %c0_239, %c0_240] : memref<2x1x96xf32, #tpu.memory_space<vmem>>, vector<1x1x96xf32>
    %379 = vector.shape_cast %378 : vector<1x1x96xf32> to vector<1x96xf32>
    %cst_241 = arith.constant dense<0.000000e+00> : vector<16xf32>
    %380 = vector.multi_reduction <add>, %375, %cst_241 [1] : vector<16x96xf32> to vector<16xf32>
    %381 = vector.shape_cast %380 : vector<16xf32> to vector<16x1xf32>
    %cst_242 = arith.constant 9.600000e+01 : f32
    %382 = vector.broadcast %cst_242 : f32 to vector<16x1xf32>
    %383 = arith.divf %381, %382 : vector<16x1xf32>
    %384 = vector.broadcast %383 : vector<16x1xf32> to vector<16x96xf32>
    %385 = arith.subf %375, %384 : vector<16x96xf32>
    %386 = arith.mulf %385, %385 : vector<16x96xf32>
    %cst_243 = arith.constant dense<0.000000e+00> : vector<16xf32>
    %387 = vector.multi_reduction <add>, %386, %cst_243 [1] : vector<16x96xf32> to vector<16xf32>
    %388 = vector.shape_cast %387 : vector<16xf32> to vector<16x1xf32>
    %cst_244 = arith.constant 9.600000e+01 : f32
    %389 = vector.broadcast %cst_244 : f32 to vector<16x1xf32>
    %390 = arith.divf %388, %389 : vector<16x1xf32>
    %391 = vector.broadcast %383 : vector<16x1xf32> to vector<16x96xf32>
    %392 = arith.subf %375, %391 : vector<16x96xf32>
    %cst_245 = arith.constant 9.99999974E-6 : f32
    %393 = vector.broadcast %cst_245 : f32 to vector<16x1xf32>
    %394 = arith.addf %390, %393 : vector<16x1xf32>
    %395 = math.rsqrt %394 : vector<16x1xf32>
    %396 = vector.broadcast %395 : vector<16x1xf32> to vector<16x96xf32>
    %397 = arith.mulf %392, %396 : vector<16x96xf32>
    %398 = vector.broadcast %377 : vector<1x96xf32> to vector<16x96xf32>
    %399 = arith.mulf %397, %398 : vector<16x96xf32>
    %400 = vector.broadcast %379 : vector<1x96xf32> to vector<16x96xf32>
    %401 = arith.addf %399, %400 : vector<16x96xf32>
    %c1_246 = arith.constant 1 : index
    %c0_247 = arith.constant 0 : index
    %c0_248 = arith.constant 0 : index
    %402 = vector.load %arg13[%c1_246, %c0_247, %c0_248] : memref<2x96x384xf32, #tpu.memory_space<vmem>>, vector<1x96x384xf32>
    %403 = vector.shape_cast %402 : vector<1x96x384xf32> to vector<96x384xf32>
    %cst_249 = arith.constant dense<0.000000e+00> : vector<16x384xf32>
    %404 = tpu.matmul %401, %403, %cst_249 {dimension_numbers = #tpu.dot_dimension_numbers<[1], [0], [0], [1], [0, 0, 1, 1], [], []>} : vector<16x96xf32>, vector<96x384xf32>, vector<16x384xf32> -> vector<16x384xf32>
    %c1_250 = arith.constant 1 : index
    %c0_251 = arith.constant 0 : index
    %c0_252 = arith.constant 0 : index
    %405 = vector.load %arg14[%c1_250, %c0_251, %c0_252] : memref<2x1x384xf32, #tpu.memory_space<vmem>>, vector<1x1x384xf32>
    %406 = vector.shape_cast %405 : vector<1x1x384xf32> to vector<1x384xf32>
    %407 = vector.broadcast %406 : vector<1x384xf32> to vector<16x384xf32>
    %408 = arith.addf %404, %407 : vector<16x384xf32>
    %cst_253 = arith.constant 5.000000e-01 : f32
    %409 = vector.broadcast %cst_253 : f32 to vector<16x384xf32>
    %410 = arith.mulf %409, %408 : vector<16x384xf32>
    %cst_254 = arith.constant 0.707106769 : f32
    %411 = vector.broadcast %cst_254 : f32 to vector<16x384xf32>
    %412 = arith.mulf %408, %411 : vector<16x384xf32>
    %cst_255 = arith.constant 0.000000e+00 : f32
    %413 = vector.broadcast %cst_255 : f32 to vector<16x384xf32>
    %414 = arith.cmpf olt, %412, %413 : vector<16x384xf32>
    %cst_256 = arith.constant -1.000000e+00 : f32
    %cst_257 = arith.constant 1.000000e+00 : f32
    %415 = vector.broadcast %cst_256 : f32 to vector<16x384xf32>
    %416 = vector.broadcast %cst_257 : f32 to vector<16x384xf32>
    %417 = arith.select %414, %415, %416 : vector<16x384xi1>, vector<16x384xf32>
    %418 = math.absf %412 : vector<16x384xf32>
    %cst_258 = arith.constant 0.327591091 : f32
    %419 = vector.broadcast %cst_258 : f32 to vector<16x384xf32>
    %420 = arith.mulf %419, %418 : vector<16x384xf32>
    %cst_259 = arith.constant 1.000000e+00 : f32
    %421 = vector.broadcast %cst_259 : f32 to vector<16x384xf32>
    %422 = arith.addf %421, %420 : vector<16x384xf32>
    %423 = tpu.reciprocal %422 {approx = true} : vector<16x384xf32> -> vector<16x384xf32>
    %cst_260 = arith.constant 1.06140542 : f32
    %424 = vector.broadcast %cst_260 : f32 to vector<16x384xf32>
    %425 = arith.mulf %424, %423 : vector<16x384xf32>
    %cst_261 = arith.constant -1.45315206 : f32
    %426 = vector.broadcast %cst_261 : f32 to vector<16x384xf32>
    %427 = arith.addf %425, %426 : vector<16x384xf32>
    %428 = arith.mulf %427, %423 : vector<16x384xf32>
    %cst_262 = arith.constant 1.42141378 : f32
    %429 = vector.broadcast %cst_262 : f32 to vector<16x384xf32>
    %430 = arith.addf %428, %429 : vector<16x384xf32>
    %431 = arith.mulf %430, %423 : vector<16x384xf32>
    %cst_263 = arith.constant -0.284496725 : f32
    %432 = vector.broadcast %cst_263 : f32 to vector<16x384xf32>
    %433 = arith.addf %431, %432 : vector<16x384xf32>
    %434 = arith.mulf %433, %423 : vector<16x384xf32>
    %cst_264 = arith.constant 0.254829586 : f32
    %435 = vector.broadcast %cst_264 : f32 to vector<16x384xf32>
    %436 = arith.addf %434, %435 : vector<16x384xf32>
    %437 = arith.mulf %436, %423 : vector<16x384xf32>
    %cst_265 = arith.constant 0.000000e+00 : f32
    %438 = vector.broadcast %cst_265 : f32 to vector<16x384xf32>
    %439 = arith.subf %438, %418 : vector<16x384xf32>
    %440 = arith.mulf %439, %418 : vector<16x384xf32>
    %441 = math.exp %440 : vector<16x384xf32>
    %442 = arith.mulf %437, %441 : vector<16x384xf32>
    %cst_266 = arith.constant 1.000000e+00 : f32
    %443 = vector.broadcast %cst_266 : f32 to vector<16x384xf32>
    %444 = arith.subf %443, %442 : vector<16x384xf32>
    %445 = arith.mulf %417, %444 : vector<16x384xf32>
    %cst_267 = arith.constant 1.000000e+00 : f32
    %446 = vector.broadcast %cst_267 : f32 to vector<16x384xf32>
    %447 = arith.addf %446, %445 : vector<16x384xf32>
    %448 = arith.mulf %410, %447 : vector<16x384xf32>
    %c1_268 = arith.constant 1 : index
    %c0_269 = arith.constant 0 : index
    %c0_270 = arith.constant 0 : index
    %449 = vector.load %arg15[%c1_268, %c0_269, %c0_270] : memref<2x384x96xf32, #tpu.memory_space<vmem>>, vector<1x384x96xf32>
    %450 = vector.shape_cast %449 : vector<1x384x96xf32> to vector<384x96xf32>
    %cst_271 = arith.constant dense<0.000000e+00> : vector<16x96xf32>
    %451 = tpu.matmul %448, %450, %cst_271 {dimension_numbers = #tpu.dot_dimension_numbers<[1], [0], [0], [1], [0, 0, 1, 1], [], []>} : vector<16x384xf32>, vector<384x96xf32>, vector<16x96xf32> -> vector<16x96xf32>
    %452 = arith.addf %375, %451 : vector<16x96xf32>
    %c1_272 = arith.constant 1 : index
    %c0_273 = arith.constant 0 : index
    %c0_274 = arith.constant 0 : index
    %453 = vector.load %arg16[%c1_272, %c0_273, %c0_274] : memref<2x1x96xf32, #tpu.memory_space<vmem>>, vector<1x1x96xf32>
    %454 = vector.shape_cast %453 : vector<1x1x96xf32> to vector<1x96xf32>
    %455 = vector.broadcast %454 : vector<1x96xf32> to vector<16x96xf32>
    %456 = arith.addf %452, %455 : vector<16x96xf32>
    %c0_275 = arith.constant 0 : index
    %c0_276 = arith.constant 0 : index
    %457 = vector.load %arg17[%c0_275, %c0_276] : memref<1x96xf32, #tpu.memory_space<vmem>>, vector<1x96xf32>
    %c0_277 = arith.constant 0 : index
    %c0_278 = arith.constant 0 : index
    %458 = vector.load %arg18[%c0_277, %c0_278] : memref<1x96xf32, #tpu.memory_space<vmem>>, vector<1x96xf32>
    %cst_279 = arith.constant dense<0.000000e+00> : vector<16xf32>
    %459 = vector.multi_reduction <add>, %456, %cst_279 [1] : vector<16x96xf32> to vector<16xf32>
    %460 = vector.shape_cast %459 : vector<16xf32> to vector<16x1xf32>
    %cst_280 = arith.constant 9.600000e+01 : f32
    %461 = vector.broadcast %cst_280 : f32 to vector<16x1xf32>
    %462 = arith.divf %460, %461 : vector<16x1xf32>
    %463 = vector.broadcast %462 : vector<16x1xf32> to vector<16x96xf32>
    %464 = arith.subf %456, %463 : vector<16x96xf32>
    %465 = arith.mulf %464, %464 : vector<16x96xf32>
    %cst_281 = arith.constant dense<0.000000e+00> : vector<16xf32>
    %466 = vector.multi_reduction <add>, %465, %cst_281 [1] : vector<16x96xf32> to vector<16xf32>
    %467 = vector.shape_cast %466 : vector<16xf32> to vector<16x1xf32>
    %cst_282 = arith.constant 9.600000e+01 : f32
    %468 = vector.broadcast %cst_282 : f32 to vector<16x1xf32>
    %469 = arith.divf %467, %468 : vector<16x1xf32>
    %470 = vector.broadcast %462 : vector<16x1xf32> to vector<16x96xf32>
    %471 = arith.subf %456, %470 : vector<16x96xf32>
    %cst_283 = arith.constant 9.99999974E-6 : f32
    %472 = vector.broadcast %cst_283 : f32 to vector<16x1xf32>
    %473 = arith.addf %469, %472 : vector<16x1xf32>
    %474 = math.rsqrt %473 : vector<16x1xf32>
    %475 = vector.broadcast %474 : vector<16x1xf32> to vector<16x96xf32>
    %476 = arith.mulf %471, %475 : vector<16x96xf32>
    %477 = vector.broadcast %457 : vector<1x96xf32> to vector<16x96xf32>
    %478 = arith.mulf %476, %477 : vector<16x96xf32>
    %479 = vector.broadcast %458 : vector<1x96xf32> to vector<16x96xf32>
    %480 = arith.addf %478, %479 : vector<16x96xf32>
    %cst_284 = arith.constant dense<0.000000e+00> : vector<96xf32>
    %481 = vector.multi_reduction <add>, %480, %cst_284 [0] : vector<16x96xf32> to vector<96xf32>
    %482 = vector.shape_cast %481 : vector<96xf32> to vector<1x96xf32>
    %cst_285 = arith.constant 1.600000e+01 : f32
    %483 = vector.broadcast %cst_285 : f32 to vector<1x96xf32>
    %484 = arith.divf %482, %483 : vector<1x96xf32>
    %c0_286 = arith.constant 0 : index
    %c0_287 = arith.constant 0 : index
    %485 = vector.load %arg19[%c0_286, %c0_287] : memref<96x4xf32, #tpu.memory_space<vmem>>, vector<96x4xf32>
    %cst_288 = arith.constant dense<0.000000e+00> : vector<1x4xf32>
    %486 = tpu.matmul %484, %485, %cst_288 {dimension_numbers = #tpu.dot_dimension_numbers<[1], [0], [0], [1], [0, 0, 1, 1], [], []>} : vector<1x96xf32>, vector<96x4xf32>, vector<1x4xf32> -> vector<1x4xf32>
    %c0_289 = arith.constant 0 : index
    %c0_290 = arith.constant 0 : index
    %487 = vector.load %arg20[%c0_289, %c0_290] : memref<1x4xf32, #tpu.memory_space<vmem>>, vector<1x4xf32>
    %488 = arith.addf %486, %487 : vector<1x4xf32>
    %c0_291 = arith.constant 0 : index
    %c0_292 = arith.constant 0 : index
    %c0_293 = arith.constant 0 : index
    %489 = vector.load %arg21[%c0_291, %c0_292, %c0_293] : memref<1x1x4xf32, #tpu.memory_space<vmem>>, vector<1x1x4xf32>
    %490 = vector.shape_cast %489 : vector<1x1x4xf32> to vector<1x4xf32>
    %491 = vector.shape_cast %488 : vector<1x4xf32> to vector<1x1x4xf32>
    tpu.vector_store %arg21[%c0_291, %c0_292, %c0_293], %491 {strides = array<i32>} : memref<1x1x4xf32, #tpu.memory_space<vmem>>, vector<1x1x4xf32>,
    return
  }
  func.func @transform_0(%arg0: i32) -> (i32, i32, i32) {
    %c0_i32 = arith.constant 0 : i32
    %c0_i32_0 = arith.constant 0 : i32
    %c0_i32_1 = arith.constant 0 : i32
    return %arg0, %c0_i32, %c0_i32_0 : i32, i32, i32
  }
  func.func @transform_1(%arg0: i32) -> (i32, i32) {
    %c0_i32 = arith.constant 0 : i32
    %c0_i32_0 = arith.constant 0 : i32
    %c0_i32_1 = arith.constant 0 : i32
    return %c0_i32, %c0_i32_0 : i32, i32
  }
  func.func @transform_2(%arg0: i32) -> (i32, i32) {
    %c0_i32 = arith.constant 0 : i32
    %c0_i32_0 = arith.constant 0 : i32
    %c0_i32_1 = arith.constant 0 : i32
    return %c0_i32, %c0_i32_0 : i32, i32
  }
  func.func @transform_3(%arg0: i32) -> (i32, i32) {
    %c0_i32 = arith.constant 0 : i32
    %c0_i32_0 = arith.constant 0 : i32
    %c0_i32_1 = arith.constant 0 : i32
    return %c0_i32, %c0_i32_0 : i32, i32
  }
  func.func @transform_4(%arg0: i32) -> (i32, i32, i32) {
    %c0_i32 = arith.constant 0 : i32
    %c0_i32_0 = arith.constant 0 : i32
    %c0_i32_1 = arith.constant 0 : i32
    %c0_i32_2 = arith.constant 0 : i32
    return %c0_i32, %c0_i32_0, %c0_i32_1 : i32, i32, i32
  }
  func.func @transform_5(%arg0: i32) -> (i32, i32, i32) {
    %c0_i32 = arith.constant 0 : i32
    %c0_i32_0 = arith.constant 0 : i32
    %c0_i32_1 = arith.constant 0 : i32
    %c0_i32_2 = arith.constant 0 : i32
    return %c0_i32, %c0_i32_0, %c0_i32_1 : i32, i32, i32
  }
  func.func @transform_6(%arg0: i32) -> (i32, i32, i32) {
    %c0_i32 = arith.constant 0 : i32
    %c0_i32_0 = arith.constant 0 : i32
    %c0_i32_1 = arith.constant 0 : i32
    %c0_i32_2 = arith.constant 0 : i32
    return %c0_i32, %c0_i32_0, %c0_i32_1 : i32, i32, i32
  }
  func.func @transform_7(%arg0: i32) -> (i32, i32, i32) {
    %c0_i32 = arith.constant 0 : i32
    %c0_i32_0 = arith.constant 0 : i32
    %c0_i32_1 = arith.constant 0 : i32
    %c0_i32_2 = arith.constant 0 : i32
    return %c0_i32, %c0_i32_0, %c0_i32_1 : i32, i32, i32
  }
  func.func @transform_8(%arg0: i32) -> (i32, i32, i32) {
    %c0_i32 = arith.constant 0 : i32
    %c0_i32_0 = arith.constant 0 : i32
    %c0_i32_1 = arith.constant 0 : i32
    %c0_i32_2 = arith.constant 0 : i32
    return %c0_i32, %c0_i32_0, %c0_i32_1 : i32, i32, i32
  }
  func.func @transform_9(%arg0: i32) -> (i32, i32, i32) {
    %c0_i32 = arith.constant 0 : i32
    %c0_i32_0 = arith.constant 0 : i32
    %c0_i32_1 = arith.constant 0 : i32
    %c0_i32_2 = arith.constant 0 : i32
    return %c0_i32, %c0_i32_0, %c0_i32_1 : i32, i32, i32
  }
  func.func @transform_10(%arg0: i32) -> (i32, i32, i32) {
    %c0_i32 = arith.constant 0 : i32
    %c0_i32_0 = arith.constant 0 : i32
    %c0_i32_1 = arith.constant 0 : i32
    %c0_i32_2 = arith.constant 0 : i32
    return %c0_i32, %c0_i32_0, %c0_i32_1 : i32, i32, i32
  }
  func.func @transform_11(%arg0: i32) -> (i32, i32, i32) {
    %c0_i32 = arith.constant 0 : i32
    %c0_i32_0 = arith.constant 0 : i32
    %c0_i32_1 = arith.constant 0 : i32
    %c0_i32_2 = arith.constant 0 : i32
    return %c0_i32, %c0_i32_0, %c0_i32_1 : i32, i32, i32
  }
  func.func @transform_12(%arg0: i32) -> (i32, i32, i32) {
    %c0_i32 = arith.constant 0 : i32
    %c0_i32_0 = arith.constant 0 : i32
    %c0_i32_1 = arith.constant 0 : i32
    %c0_i32_2 = arith.constant 0 : i32
    return %c0_i32, %c0_i32_0, %c0_i32_1 : i32, i32, i32
  }
  func.func @transform_13(%arg0: i32) -> (i32, i32, i32) {
    %c0_i32 = arith.constant 0 : i32
    %c0_i32_0 = arith.constant 0 : i32
    %c0_i32_1 = arith.constant 0 : i32
    %c0_i32_2 = arith.constant 0 : i32
    return %c0_i32, %c0_i32_0, %c0_i32_1 : i32, i32, i32
  }
  func.func @transform_14(%arg0: i32) -> (i32, i32, i32) {
    %c0_i32 = arith.constant 0 : i32
    %c0_i32_0 = arith.constant 0 : i32
    %c0_i32_1 = arith.constant 0 : i32
    %c0_i32_2 = arith.constant 0 : i32
    return %c0_i32, %c0_i32_0, %c0_i32_1 : i32, i32, i32
  }
  func.func @transform_15(%arg0: i32) -> (i32, i32, i32) {
    %c0_i32 = arith.constant 0 : i32
    %c0_i32_0 = arith.constant 0 : i32
    %c0_i32_1 = arith.constant 0 : i32
    %c0_i32_2 = arith.constant 0 : i32
    return %c0_i32, %c0_i32_0, %c0_i32_1 : i32, i32, i32
  }
  func.func @transform_16(%arg0: i32) -> (i32, i32) {
    %c0_i32 = arith.constant 0 : i32
    %c0_i32_0 = arith.constant 0 : i32
    %c0_i32_1 = arith.constant 0 : i32
    return %c0_i32, %c0_i32_0 : i32, i32
  }
  func.func @transform_17(%arg0: i32) -> (i32, i32) {
    %c0_i32 = arith.constant 0 : i32
    %c0_i32_0 = arith.constant 0 : i32
    %c0_i32_1 = arith.constant 0 : i32
    return %c0_i32, %c0_i32_0 : i32, i32
  }
  func.func @transform_18(%arg0: i32) -> (i32, i32) {
    %c0_i32 = arith.constant 0 : i32
    %c0_i32_0 = arith.constant 0 : i32
    %c0_i32_1 = arith.constant 0 : i32
    return %c0_i32, %c0_i32_0 : i32, i32
  }
  func.func @transform_19(%arg0: i32) -> (i32, i32) {
    %c0_i32 = arith.constant 0 : i32
    %c0_i32_0 = arith.constant 0 : i32
    %c0_i32_1 = arith.constant 0 : i32
    return %c0_i32, %c0_i32_0 : i32, i32
  }
  func.func @transform_20(%arg0: i32) -> (i32, i32, i32) {
    %c0_i32 = arith.constant 0 : i32
    %c0_i32_0 = arith.constant 0 : i32
    %c0_i32_1 = arith.constant 0 : i32
    return %arg0, %c0_i32, %c0_i32_0 : i32, i32, i32
  }
}

</mosaic_0001>

<bundles_post_ra>
// kernel: tpu_custom_call.1
= control target key start
LH: loop header
LB: loop body
LE: loop exit
PB: predicated region body
PF: predicated region fallthrough
CT: control target
= control target key end

     0   :  { %s6253_s0 = inlined_call_operand.vmem [shape: f32[2,16,48], index: 0, kind: input, shape index: {}]   ;;  %s6254_s1 = inlined_call_operand.vmem [shape: f32[48,96], index: 1, kind: input, shape index: {}]   ;;  %s6255_s2 = inlined_call_operand.vmem [shape: f32[1,96], index: 2, kind: input, shape index: {}]   ;;  %s6256_s3 = inlined_call_operand.vmem [shape: f32[16,96], index: 3, kind: input, shape index: {}]   ;;  %s6257_s4 = inlined_call_operand.vmem [shape: f32[2,1,96], index: 4, kind: input, shape index: {}]   ;;  %s6258_s5 = inlined_call_operand.vmem [shape: f32[2,1,96], index: 5, kind: input, shape index: {}]   ;;  %s6259_s6 = inlined_call_operand.vmem [shape: f32[18,96,32], index: 6, kind: input, shape index: {}]   ;;  %s6260_s7 = inlined_call_operand.vmem [shape: f32[18,1,32], index: 7, kind: input, shape index: {}]   ;;  %s6261_s8 = inlined_call_operand.vmem [shape: f32[6,32,96], index: 8, kind: input, shape index: {}]   ;;  %s6262_s9 = inlined_call_operand.vmem [shape: f32[2,1,96], index: 9, kind: input, shape index: {}]   ;;  %s6263_s10 = inlined_call_operand.vmem [shape: f32[2,1,96], index: 10, kind: input, shape index: {}]   ;;  %s6264_s11 = inlined_call_operand.vmem [shape: f32[2,1,96], index: 11, kind: input, shape index: {}]   ;;  %s6265_s12 = inlined_call_operand.vmem [shape: f32[2,96,384], index: 12, kind: input, shape index: {}]   ;;  %s6266_s13 = inlined_call_operand.vmem [shape: f32[2,1,384], index: 13, kind: input, shape index: {}]   ;;  %s6267_s14 = inlined_call_operand.vmem [shape: f32[2,384,96], index: 14, kind: input, shape index: {}]   ;;  %s6268_s15 = inlined_call_operand.vmem [shape: f32[2,1,96], index: 15, kind: input, shape index: {}]   ;;  %s6269_s16 = inlined_call_operand.vmem [shape: f32[1,96], index: 16, kind: input, shape index: {}]   ;;  %s6270_s17 = inlined_call_operand.vmem [shape: f32[1,96], index: 17, kind: input, shape index: {}]   ;;  %s6271_s18 = inlined_call_operand.vmem [shape: f32[96,4], index: 18, kind: input, shape index: {}]   ;;  %s6272_s19 = inlined_call_operand.vmem [shape: f32[1,4], index: 19, kind: input, shape index: {}]   ;;  %s6273_s20 = inlined_call_operand.hbm [shape: f32[2,1,4], index: 20, kind: output, shape index: {}]  }
   0x1   :  { %6286 = sst [smem:[#allocation12_spill]] %s6253_s0 }
   0x2   :  { %6287 = sst [smem:[#allocation13_spill]] %s6254_s1 }
   0x3   :  { %6288 = sst [smem:[#allocation14_spill]] %s6255_s2 }
   0x4   :  { %6289 = sst [smem:[#allocation15_spill]] %s6256_s3 }
   0x5   :  { %6290 = sst [smem:[#allocation16_spill]] %s6257_s4 }
   0x6   :  { %6291 = sst [smem:[#allocation17_spill]] %s6258_s5 }
   0x7   :  { %6292 = sst [smem:[#allocation18_spill]] %s6259_s6 }
   0x8   :  { %6293 = sst [smem:[#allocation19_spill]] %s6260_s7 }
   0x9   :  { %6294 = sst [smem:[#allocation20_spill]] %s6272_s19 }
   0xa   :  { %6295 = sst [smem:[#allocation21_spill]] %s6273_s20 }
   0xb   :  { %25 = vsyncpa [#allocation3], 0 }
   0xc   :  { %27 = vsyncpa [#allocation3 + $0x1], 0  ;;  %s4191_s1 = smov 0   ;;  %s4193_s22 = smov 0  }
   0xd   :  { %s4195_s23 = smov 0   ;;  %s4197_s24 = smov 0  }
   0xe LB: > { %6296 = sst [smem:[#allocation5_spill]] %s4069_s1  ;;  %s4212_s2 = sadd.s32 4294967295, %s4081_s24   ;;  %s4081_s24 = sphi %s4197_s24, %s6319_s24   ;;  %s4077_s23 = sphi %s4195_s23, %s6321_s23   ;;  %s4073_s22 = sphi %s4193_s22, %s6323_s22   ;;  %s4069_s1 = sphi %s4191_s1, %s6322_s1  }
   0xf   : > { %6297 = sst [smem:[#allocation6_spill]] %s4077_s23  ;;  %s3382_s25 = sadd.s32 4294967294, %s4081_s24  }
  0x10   : > { %6298 = sst [smem:[#allocation7_spill]] %s4081_s24  ;;  %s4216_s3 = sadd.s32 1, %s4081_s24  }
  0x11   : > { %6299 = sst [smem:[#allocation8_spill]] %s4216_s3  ;;  %s465_s26 = sadd.s32 1, %s4077_s23 }
  0x12   : > { %s462_s27 = ssub.s32 %s4081_s24, %s4216_s3  ;;  %p475_p0 = scmp.ne.s32.totalorder %s4077_s23, %s4073_s22 }
  0x13   : > { %p463_p1 = scmp.eq.s32.totalorder %s462_s27, 0  ;;  %p476_p2 = scmp.eq.s32.totalorder %s4212_s2, 1 }
  0x14   : > { %p481_p3 = scmp.ne.s32.totalorder %s4073_s22, %s4069_s1  ;;  %p482_p4 = scmp.eq.s32.totalorder %s3382_s25, 1 }
  0x15   : > { %s4227_s28 = scalar_select %p463_p1, %s4077_s23, %s465_s26  }
  0x16   : > { %p4229_p5 = por %p476_p2, %p475_p0  ;;  %p4233_p6 = por %p482_p4, %p481_p3 }
  0x17   : > { %6300 = sst [smem:[#allocation9_spill]] %s4227_s28  ;;  %p3385_p7 = scmp.ge.s32.totalorder %s4081_s24, 1 }
  0x18   : > { %s6301_s4 = scalar_select %p4229_p5, 1, 0 }
  0x19   : > { %s6303_s29 = scalar_select %p4233_p6, 1, 0 }
  0x1a   : > { %6302 = sst [smem:[#allocation10_spill]] %s6301_s4  ;;  %p565_p8 = scmp.lt.s32.totalorder %s4081_s24, 3 }
  0x1b   : > { %6304 = sst [smem:[#allocation11_spill]] %s6303_s29 }
  0x1c   : > { %p566_p9 = pnand %p3385_p7, %p565_p8 }
  0x1d   : > { %s6305_s21 = sld [smem:[#allocation13_spill]] (!%p566_p9)  ;;  %p622_p10 = scmp.lt.s32.totalorder (!%p566_p9), %s4212_s2, 1 }
  0x1e   : > { %569 = sbr.rel (%p566_p9) target bundleno = 5549 (0x15ad), region = 100  ;;  %s6306_s24 = sld [smem:[#allocation12_spill]] (!%p566_p9) }
  0x1f   : > { %s6307_s1 = sld [smem:[#allocation14_spill]] (!%p566_p9)  ;;  %s620_s20 = sand.u32 (!%p566_p9), 1, %s4073_s22  }
  0x20   : > { %s6308_s29 = sld [smem:[#allocation15_spill]] (!%p566_p9) }
  0x21   : > { %s6309_s6 = sld [smem:[#allocation18_spill]] (!%p566_p9) }
  0x22   : > { %s6310_s26 = sld [smem:[#allocation16_spill]] (!%p566_p9) }
  0x23   : > { %v634_v0 = vld [vmem:[%s6305_s21 + $0x28] sm:$0xff]  ;;  %v633_v1 = vld [vmem:[%s6305_s21 + $0x20] sm:$0xff]  ;;  %v632_v2 = vld [vmem:[%s6305_s21 + $0x18] sm:$0xff]  ;;  %s623_s23 = scalar_select %p622_p10, %s4212_s2, 1  ;;  %vm639_vm0 = vcmask 392192   ;;  %vm675_vm1 = vcmask 785408  }
  0x24   : > { %656 = vmatpush.msra.mxu0 %v634_v0  ;;  %v631_v3 = vld [vmem:[%s6305_s21 + $0x10] sm:$0xff]  ;;  %v630_v4 = vld [vmem:[%s6305_s21 + $0x8] sm:$0xff]  ;;  %v629_v5 = vld [vmem:[%s6305_s21] sm:$0xff]  ;;  %v4083_v19 = vmov 96.0   ;;  %s6311_s5 = sld [smem:[#allocation17_spill]]  ;;  %vm864_vm9 = vcmask 261120  }
  0x25   : > { %s3821_s30 = sshll.u32 %s623_s23, 4  ;;  %v3866_v8 = vld [vmem:[%s6307_s1] ss:$0 sm:$0xff]  ;;  %3899 = vrcp.f32 %v4083_v19  ;;  %s6312_s7 = sld [smem:[#allocation19_spill]]  ;;  %vm900_vm10 = vcmask 130048  }
  0x26   : > { %657 = vmatpush.msra.mxu0 %v633_v1  ;;  %s626_s4 = scalar_lea.vmem %s6306_s24, %s3821_s30  ;;  %v669_v10 = vld [vmem:[%s6308_s29] sm:$0xff]  ;;  %v670_v15 = vld [vmem:[%s6308_s29 + $0x8] sm:$0xff]  ;;  %s6313_s30 = sld [smem:[#allocation21_spill]] }
  0x27   : > { %v627_v6 = vld [vmem:[%s626_s4] sm:$0xff]  ;;  %v628_v7 = vld [vmem:[%s626_s4 + $0x8] sm:$0xff]  ;;  %v3403_v22 = vld [vmem:[%s6309_s6 + $0x178] sm:$0xff]  ;;  %s6314_s3 = sld [smem:[#allocation20_spill]]  ;;  %s621_s24 = scalar_lea.vmem [#allocation2], %s620_s20 }
  0x28   : > { %658 = vmatpush.msra.mxu0 %v632_v2  ;;  %v3418_v23 = vld [vmem:[%s6309_s6 + $0x298] sm:$0xff]  ;;  %804 = vmatpush.msra.mxu2 %v3403_v22  ;;  %v3402_v38 = vld [vmem:[%s6309_s6 + $0x170] sm:$0xff]  ;;  %v3401_v40 = vld [vmem:[%s6309_s6 + $0x168] sm:$0xff]  ;;  %s3325_s28 = sshll.u32 %s621_s24, 4  ;;  %s3326_s28 = int_to_ptr.vmem [resolvable:$true] %s3325_s28 }
  0x29   : > { %845 = vmatpush.msra.mxu3 %v3418_v23  ;;  %v3417_v39 = vld [vmem:[%s6309_s6 + $0x290] sm:$0xff]  ;;  %v3416_v41 = vld [vmem:[%s6309_s6 + $0x288] sm:$0xff]  ;;  %v3400_v42 = vld [vmem:[%s6309_s6 + $0x160] sm:$0xff] }
  0x2a   : > { %659 = vmatpush.msra.mxu0 %v631_v3  ;;  %805 = vmatpush.msra.mxu2 %v3402_v38  ;;  %v3415_v43 = vld [vmem:[%s6309_s6 + $0x280] sm:$0xff]  ;;  %v748_v44 = vld [vmem:[%s6309_s6 + $0x58] sm:$0xff]  ;;  %v747_v47 = vld [vmem:[%s6309_s6 + $0x50] sm:$0xff] }
  0x2b   : > { %v3900_v20 = vpop.eup %3899  ;;  %846 = vmatpush.msra.mxu3 %v3417_v39  ;;  %763 = vmatpush.msra.mxu1 %v748_v44  ;;  %v3399_v45 = vld [vmem:[%s6309_s6 + $0x158] sm:$0xff]  ;;  %v3398_v48 = vld [vmem:[%s6309_s6 + $0x150] sm:$0xff]  ;;  %v746_v50 = vld [vmem:[%s6309_s6 + $0x48] sm:$0xff] }
  0x2c   : > { %660 = vmatpush.msra.mxu0 %v630_v4  ;;  %v683_v21 = vmul.f32 96.0, %v3900_v20  ;;  %vm687_vm2 = vweird.f32 %v3900_v20  ;;  %806 = vmatpush.msra.mxu2 %v3401_v40  ;;  %v3414_v46 = vld [vmem:[%s6309_s6 + $0x278] sm:$0xff]  ;;  %v3413_v49 = vld [vmem:[%s6309_s6 + $0x270] sm:$0xff]  ;;  %v3397_v51 = vld [vmem:[%s6309_s6 + $0x148] sm:$0xff]  ;;  %s3323_s0 = scalar_lea.hbm %s6313_s30, %s4212_s2  ;;  %s4039_s27 = scalar_lea.hbm %s6313_s30, 2 }
  0x2d   : > { %847 = vmatpush.msra.mxu3 %v3416_v41  ;;  %764 = vmatpush.msra.mxu1 %v747_v47  ;;  %v3412_v52 = vld [vmem:[%s6309_s6 + $0x268] sm:$0xff]  ;;  %v745_v53 = vld [vmem:[%s6309_s6 + $0x40] sm:$0xff]  ;;  %v744_v56 = vld [vmem:[%s6309_s6 + $0x38] sm:$0xff]  ;;  %s3327_s19 = sshll.u32 %s3323_s0, 4  ;;  %s3328_s19 = int_to_ptr.hbm [resolvable:$true] %s3327_s19 }
  0x2e   : > { %661 = vmatpush.msra.mxu0 %v629_v5  ;;  %v684_v24 = vsub.f32 1.0, %v683_v21  ;;  %807 = vmatpush.msra.mxu2 %v3400_v42  ;;  %v3396_v54 = vld [vmem:[%s6309_s6 + $0x140] sm:$0xff]  ;;  %v3395_v57 = vld [vmem:[%s6309_s6 + $0x138] sm:$0xff]  ;;  %v743_v59 = vld [vmem:[%s6309_s6 + $0x30] sm:$0xff] }
  0x2f   : > { %3388 = vmatmul.msk.f32.vlgmr.msra.gmra.mxu0 %vm639_vm0, %v627_v6  ;;  %848 = vmatpush.msra.mxu3 %v3415_v43  ;;  %v3411_v55 = vld [vmem:[%s6309_s6 + $0x260] sm:$0xff]  ;;  %v3410_v58 = vld [vmem:[%s6309_s6 + $0x258] sm:$0xff]  ;;  %v3394_v60 = vld [vmem:[%s6309_s6 + $0x130] sm:$0xff] }
  0x30   : > { %v685_v25 = vmul.f32 %v3900_v20, %v684_v24  ;;  %808 = vmatpush.msra.mxu2 %v3399_v45  ;;  %765 = vmatpush.msra.mxu1 %v746_v50  ;;  %v3409_v61 = vld [vmem:[%s6309_s6 + $0x250] sm:$0xff]  ;;  %v742_v62 = vld [vmem:[%s6309_s6 + $0x28] sm:$0xff]  ;;  %v741_v1 = vld [vmem:[%s6309_s6 + $0x20] sm:$0xff] }
  0x31   : > { %849 = vmatpush.msra.mxu3 %v3414_v46  ;;  %v3393_v63 = vld [vmem:[%s6309_s6 + $0x128] sm:$0xff]  ;;  %v3392_v2 = vld [vmem:[%s6309_s6 + $0x120] sm:$0xff]  ;;  %v740_v4 = vld [vmem:[%s6309_s6 + $0x18] sm:$0xff] }
  0x32   : > { %v686_v26 = vadd.f32 %v3900_v20, %v685_v25  ;;  %809 = vmatpush.msra.mxu2 %v3398_v48  ;;  %766 = vmatpush.msra.mxu1 %v745_v53  ;;  %v3408_v0 = vld [vmem:[%s6309_s6 + $0x248] sm:$0xff]  ;;  %v3407_v3 = vld [vmem:[%s6309_s6 + $0x240] sm:$0xff]  ;;  %v3439_v5 = vld [vmem:[%s6309_s6 + $0xb8] sm:$0xff] }
  0x33   : > { %850 = vmatpush.msra.mxu3 %v3413_v49  ;;  %v3454_v6 = vld [vmem:[%s6309_s6 + $0x1d8] sm:$0xff]  ;;  %v3434_v21 = vld [vmem:[%s6309_s6 + $0x90] sm:$0xff]  ;;  %v3433_v24 = vld [vmem:[%s6309_s6 + $0x88] sm:$0xff] }
  0x34   : > { %v4285_v27 = vsel %vm687_vm2, %v3900_v20, %v686_v26  ;;  %810 = vmatpush.msra.mxu2 %v3397_v51  ;;  %767 = vmatpush.msra.mxu1 %v744_v56  ;;  %v3450_v19 = vld [vmem:[%s6309_s6 + $0x1b8] sm:$0xff]  ;;  %v3449_v22 = vld [vmem:[%s6309_s6 + $0x1b0] sm:$0xff]  ;;  %v3448_v25 = vld [vmem:[%s6309_s6 + $0x1a8] sm:$0xff] }
  0x35   : > { %851 = vmatpush.msra.mxu3 %v3412_v52  ;;  %v3444_v38 = vld [vmem:[%s6309_s6 + $0x188] sm:$0xff]  ;;  %v3428_v40 = vld [vmem:[%s6309_s6 + $0x60] sm:$0xff] }
  0x36   : > { %811 = vmatpush.msra.mxu2 %v3396_v54  ;;  %768 = vmatpush.msra.mxu1 %v743_v59  ;;  %v3443_v41 = vld [vmem:[%s6309_s6 + $0x180] sm:$0xff] }
  0x37   : > { %3389 = vmatmul.msk.f32.gmra.mxu0 %vm639_vm0, %v628_v7  ;;  %852 = vmatpush.msra.mxu3 %v3411_v55  ;;  %v739_v7 = vld [vmem:[%s6309_s6 + $0x10] sm:$0xff]  ;;  %v3867_v51 = vld [vmem:[%s6310_s26] ss:$0 sm:$0xff] }
  0x38   : > { %812 = vmatpush.msra.mxu2 %v3395_v57  ;;  %769 = vmatpush.msra.mxu1 %v742_v62  ;;  %v3868_v54 = vld [vmem:[%s6311_s5] ss:$0 sm:$0xff] }
  0x39   : > { %853 = vmatpush.msra.mxu3 %v3410_v58 }
  0x3a   : > { %813 = vmatpush.msra.mxu2 %v3394_v60  ;;  %770 = vmatpush.msra.mxu1 %v741_v1  ;;  %v3870_v1 = vld [vmem:[%s6312_s7 + $0x3] ss:$0 sm:$0xff] }
  0x3b   : > { %854 = vmatpush.msra.mxu3 %v3409_v61 }
  0x3c   : > { %814 = vmatpush.msra.mxu2 %v3393_v63  ;;  %771 = vmatpush.msra.mxu1 %v740_v4 }
  0x3d   : > { %855 = vmatpush.msra.mxu3 %v3408_v0 }
  0x3e   : > { %815 = vmatpush.msra.mxu2 %v3392_v2  ;;  %772 = vmatpush.msra.mxu1 %v739_v7  ;;  %v3871_v2 = vld [vmem:[%s6312_s7 + $0x6] ss:$0 sm:$0xff] }
  0x3f   : > { %856 = vmatpush.msra.mxu3 %v3407_v3 }
  0x40   : > { %978 = vmatpush.msrb.mxu2 %v3439_v5 }
  0x41   : > { %1019 = vmatpush.msrb.mxu3 %v3454_v6 }
  0xac   : > { %v663_v9 = vpop.f32.mrf.mxu0 }
  0xad   : > { %v664_v11 = vadd.f32 %v3866_v8, %v663_v9  ;;  %v3453_v9 = vld [vmem:[%s6309_s6 + $0x1d0] sm:$0xff] }
  0xae   : > { %1020 = vmatpush.msrb.mxu3 %v3453_v9 }
  0xaf   : > { %v4268_v12 = vadd.f32 %v669_v10, %v664_v11  ;;  %v738_v10 = vld [vmem:[%s6309_s6 + $0x8] sm:$0xff] }
  0xb0   : > { %v3437_v11 = vld [vmem:[%s6309_s6 + $0xa8] sm:$0xff]  ;;  %773 = vmatpush.msra.mxu1 %v738_v10 }
  0xb1   : > { %v676_v13 = vsel %vm675_vm1, %v4268_v12, 0.0 }
  0xb2   : > { %677 = vadd.xlane.f32.xlu0 %v676_v13  ;;  %v3452_v13 = vld [vmem:[%s6309_s6 + $0x1c8] sm:$0xff] }
  0xb3   : > { %1021 = vmatpush.msrb.mxu3 %v3452_v13 }
  0xb4   : > { %v666_v14 = vpop.f32.mrf.mxu0 }
  0xb5   : > { %v667_v16 = vadd.f32 %v3866_v8, %v666_v14  ;;  %v3438_v8 = vld [vmem:[%s6309_s6 + $0xb0] sm:$0xff]  ;;  %v737_v14 = vld [vmem:[%s6309_s6] sm:$0xff] }
  0xb6   : > { %979 = vmatpush.msrb.mxu2 %v3438_v8  ;;  %774 = vmatpush.msra.mxu1 %v737_v14  ;;  %v3869_v8 = vld [vmem:[%s6312_s7] ss:$0 sm:$0xff]  ;;  %v3468_v14 = vld [vmem:[%s6309_s6 + $0x2f0] sm:$0xff] }
  0xb7   : > { %v4275_v17 = vadd.f32 %v670_v15, %v667_v16  ;;  %v3436_v15 = vld [vmem:[%s6309_s6 + $0xa0] sm:$0xff] }
  0xb8   : > { %980 = vmatpush.msrb.mxu2 %v3437_v11  ;;  %v3451_v16 = vld [vmem:[%s6309_s6 + $0x1c0] sm:$0xff]  ;;  %v3469_v11 = vld [vmem:[%s6309_s6 + $0x2f8] sm:$0xff] }
  0xb9   : > { %v679_v18 = vsel %vm675_vm1, %v4275_v17, 0.0  ;;  %1022 = vmatpush.msrb.mxu3 %v3451_v16  ;;  %v3467_v16 = vld [vmem:[%s6309_s6 + $0x2e8] sm:$0xff] }
  0xba   : > { %680 = vadd.xlane.f32.xlu0 %v679_v18  ;;  %981 = vmatpush.msrb.mxu2 %v3436_v15  ;;  %v3435_v18 = vld [vmem:[%s6309_s6 + $0x98] sm:$0xff] }
  0xbb   : > { %1023 = vmatpush.msrb.mxu3 %v3450_v19 }
  0xbc   : > { %982 = vmatpush.msrb.mxu2 %v3435_v18  ;;  %v3466_v18 = vld [vmem:[%s6309_s6 + $0x2e0] sm:$0xff] }
  0xbd   : > { %1024 = vmatpush.msrb.mxu3 %v3449_v22  ;;  %v3873_v22 = vld [vmem:[%s6312_s7 + $0x4] ss:$0 sm:$0xff] }
  0xbe   : > { %983 = vmatpush.msrb.mxu2 %v3434_v21 }
  0xbf   : > { %1025 = vmatpush.msrb.mxu3 %v3448_v25 }
  0xc0   : > { %984 = vmatpush.msrb.mxu2 %v3433_v24 }
 0x125   : > { %v678_v28 = vpop.xlane.xlu0 %677 }
 0x126   : > { %v689_v29 = vmul.f32 %v4285_v27, %v678_v28  ;;  %v3432_v28 = vld [vmem:[%s6309_s6 + $0x80] sm:$0xff] }
 0x127   : > { %985 = vmatpush.msrb.mxu2 %v3432_v28  ;;  %v3462_v28 = vld [vmem:[%s6309_s6 + $0x2c0] sm:$0xff] }
 0x128   : > { %v4289_v30 = vsub.f32 %v4268_v12, %v689_v29  ;;  %v3447_v29 = vld [vmem:[%s6309_s6 + $0x1a0] sm:$0xff] }
 0x129   : > { %1026 = vmatpush.msrb.mxu3 %v3447_v29 }
 0x12a   : > { %v693_v31 = vmul.f32 %v4289_v30, %v4289_v30 }
 0x12c   : > { %v695_v32 = vsel %vm675_vm1, %v693_v31, 0.0  ;;  %v3431_v31 = vld [vmem:[%s6309_s6 + $0x78] sm:$0xff] }
 0x12d   : > { %696 = vadd.xlane.f32.xlu1 %v695_v32  ;;  %v681_v33 = vpop.xlane.xlu0 %680  ;;  %v3446_v32 = vld [vmem:[%s6309_s6 + $0x198] sm:$0xff]  ;;  %986 = vmatpush.msrb.mxu2 %v3431_v31 }
 0x12e   : > { %v690_v34 = vmul.f32 %v4285_v27, %v681_v33  ;;  %v3430_v33 = vld [vmem:[%s6309_s6 + $0x70] sm:$0xff]  ;;  %1027 = vmatpush.msrb.mxu3 %v3446_v32  ;;  %v3461_v31 = vld [vmem:[%s6309_s6 + $0x2b8] sm:$0xff] }
 0x12f   : > { %987 = vmatpush.msrb.mxu2 %v3430_v33  ;;  %v3460_v32 = vld [vmem:[%s6309_s6 + $0x2b0] sm:$0xff]  ;;  %v3459_v33 = vld [vmem:[%s6309_s6 + $0x2a8] sm:$0xff] }
 0x130   : > { %v4296_v35 = vsub.f32 %v4275_v17, %v690_v34  ;;  %v3445_v34 = vld [vmem:[%s6309_s6 + $0x190] sm:$0xff] }
 0x131   : > { %1028 = vmatpush.msrb.mxu3 %v3445_v34  ;;  %v3458_v34 = vld [vmem:[%s6309_s6 + $0x2a0] sm:$0xff] }
 0x132   : > { %v694_v36 = vmul.f32 %v4296_v35, %v4296_v35 }
 0x133   : > { %1029 = vmatpush.msrb.mxu3 %v3444_v38 }
 0x134   : > { %v698_v37 = vsel %vm675_vm1, %v694_v36, 0.0 }
 0x135   : > { %699 = vadd.xlane.f32.xlu1 %v698_v37  ;;  %v3429_v37 = vld [vmem:[%s6309_s6 + $0x68] sm:$0xff]  ;;  %1030 = vmatpush.msrb.mxu3 %v3443_v41  ;;  %v3874_v41 = vld [vmem:[%s6312_s7 + $0x7] ss:$0 sm:$0xff] }
 0x136   : > { %988 = vmatpush.msrb.mxu2 %v3429_v37 }
 0x138   : > { %989 = vmatpush.msrb.mxu2 %v3428_v40 }
 0x1a0   : > { %v697_v20 = vpop.xlane.xlu1 %696 }
 0x1a1   : > { %v701_v23 = vmul.f32 %v697_v20, %v4285_v27  ;;  %v3465_v20 = vld [vmem:[%s6309_s6 + $0x2d8] sm:$0xff] }
 0x1a3   : > { %v703_v26 = vadd.f32 1e-05, %v701_v23  ;;  %v3464_v23 = vld [vmem:[%s6309_s6 + $0x2d0] sm:$0xff] }
 0x1a5   : > { %3901 = vrsqrt.f32 %v703_v26  ;;  %vm711_vm4 = vweird.f32 %v703_v26 }
 0x1a8   : > { %v700_v36 = vpop.xlane.xlu1 %699 }
 0x1a9   : > { %v702_v39 = vmul.f32 %v700_v36, %v4285_v27 }
 0x1ab   : > { %v3902_v42 = vpop.eup %3901  ;;  %v704_v43 = vadd.f32 1e-05, %v702_v39 }
 0x1ac   : > { %v706_v44 = vmul.f32 %v3902_v42, %v703_v26  ;;  %vm712_vm3 = vweird.f32 %v3902_v42  ;;  %v3463_v26 = vld [vmem:[%s6309_s6 + $0x2c8] sm:$0xff] }
 0x1ad   : > { %3903 = vrsqrt.f32 %v704_v43  ;;  %vm713_vm5 = vmor %vm711_vm4, %vm712_vm3  ;;  %vm721_vm7 = vweird.f32 %v704_v43 }
 0x1ae   : > { %v707_v45 = vmul.f32 %v3902_v42, %v706_v44 }
 0x1b0   : > { %v708_v46 = vmul.f32 0.5, %v707_v45 }
 0x1b2   : > { %v709_v47 = vsub.f32 1.5, %v708_v46 }
 0x1b3   : > { %v3904_v48 = vpop.eup %3903 }
 0x1b4   : > { %v710_v49 = vmul.f32 %v3902_v42, %v709_v47  ;;  %v716_v50 = vmul.f32 %v3904_v48, %v704_v43  ;;  %vm722_vm6 = vweird.f32 %v3904_v48 }
 0x1b5   : > { %vm723_vm8 = vmor %vm721_vm7, %vm722_vm6 }
 0x1b6   : > { %v714_v52 = vsel %vm713_vm5, %v3902_v42, %v710_v49  ;;  %v717_v53 = vmul.f32 %v3904_v48, %v716_v50 }
 0x1b7   : > { %v725_v55 = vmul.f32 %v714_v52, %v4289_v30 }
 0x1b8   : > { %v718_v56 = vmul.f32 0.5, %v717_v53 }
 0x1b9   : > { %v730_v57 = vmul.f32 %v3867_v51, %v725_v55 }
 0x1ba   : > { %v719_v58 = vsub.f32 1.5, %v718_v56 }
 0x1bb   : > { %v4484_v59 = vadd.f32 %v3868_v54, %v730_v57 }
 0x1bc   : > { %v720_v60 = vmul.f32 %v3904_v48, %v719_v58 }
 0x1bd   : > { %3390 = vmatmul.msk.f32.vlgmr.msra.gmra.mxu1 %vm675_vm1, %v4484_v59  ;;  %3405 = vmatmul.msk.f32.vlgmr.msra.gmra.mxu2 %vm675_vm1, %v4484_v59 }
 0x1be   : > { %v724_v61 = vsel %vm723_vm8, %v3904_v48, %v720_v60  ;;  %3420 = vmatmul.msk.f32.vlgmr.msra.gmra.mxu3 %vm675_vm1, %v4484_v59  ;;  %v3498_v60 = vld [vmem:[%s6309_s6 + $0x118] sm:$0xff] }
 0x1bf   : > { %v726_v30 = vmul.f32 %v724_v61, %v4296_v35  ;;  %v3497_v61 = vld [vmem:[%s6309_s6 + $0x110] sm:$0xff] }
 0x1c1   : > { %v731_v62 = vmul.f32 %v3867_v51, %v726_v30  ;;  %v3496_v30 = vld [vmem:[%s6309_s6 + $0x108] sm:$0xff] }
 0x1c3   : > { %v4493_v63 = vadd.f32 %v3868_v54, %v731_v62  ;;  %v3495_v62 = vld [vmem:[%s6309_s6 + $0x100] sm:$0xff] }
 0x1c5   : > { %3391 = vmatmul.msk.f32.gmra.mxu1 %vm675_vm1, %v4493_v63  ;;  %3406 = vmatmul.msk.f32.gmra.mxu2 %vm675_vm1, %v4493_v63 }
 0x1c6   : > { %3421 = vmatmul.msk.f32.gmra.mxu3 %vm675_vm1, %v4493_v63 }
 0x1cd   : > { %3441 = vmatmul.msk.f32.vlgmr.msrb.gmra.mxu2 %vm675_vm1, %v4484_v59 }
 0x1ce   : > { %3456 = vmatmul.msk.f32.vlgmr.msrb.gmra.mxu3 %vm675_vm1, %v4484_v59 }
 0x1d5   : > { %3442 = vmatmul.msk.f32.gmra.mxu2 %vm675_vm1, %v4493_v63 }
 0x1d6   : > { %3457 = vmatmul.msk.f32.gmra.mxu3 %vm675_vm1, %v4493_v63 }
 0x23a   : > { %v776_v7 = vpop.f32.mrf.mxu1 }
 0x23b   : > { %v777_v13 = vadd.f32 %v3869_v8, %v776_v7  ;;  %v3492_v7 = vld [vmem:[%s6309_s6 + $0xe8] sm:$0xff] }
 0x240   : > { %v817_v35 = vpop.f32.mrf.mxu2 }
 0x241   : > { %v858_v0 = vpop.f32.mrf.mxu3  ;;  %v818_v10 = vadd.f32 %v3870_v1, %v817_v35 }
 0x242   : > { %v859_v9 = vadd.f32 %v3871_v2, %v858_v0  ;;  %v779_v19 = vpop.f32.mrf.mxu1 }
 0x243   : > { %v780_v21 = vadd.f32 %v3869_v8, %v779_v19  ;;  %v953_v8 = vld [vmem:[%s6261_s8 + $0x8] sm:$0xff]  ;;  %v952_v19 = vld [vmem:[%s6261_s8] sm:$0xff] }
 0x248   : > { %v820_v3 = vpop.f32.mrf.mxu2 }
 0x249   : > { %v821_v4 = vadd.f32 %v3870_v1, %v820_v3  ;;  %v861_v5 = vpop.f32.mrf.mxu3  ;;  %v3494_v1 = vld [vmem:[%s6309_s6 + $0xf8] sm:$0xff] }
 0x24a   : > { %v862_v6 = vadd.f32 %v3871_v2, %v861_v5  ;;  %v3493_v2 = vld [vmem:[%s6309_s6 + $0xf0] sm:$0xff]  ;;  %v955_v3 = vld [vmem:[%s6261_s8 + $0x18] sm:$0xff] }
 0x24b   : > { %3422 = vmatpush.xpose.msk.msrb.mxu0 %vm864_vm9, %v821_v4  ;;  %v954_v4 = vld [vmem:[%s6261_s8 + $0x10] sm:$0xff] }
 0x24c   : > { %943 = vmatpush.msrb.mxu1 %v862_v6  ;;  %v3872_v6 = vld [vmem:[%s6312_s7 + $0x1] ss:$0 sm:$0xff] }
 0x24e   : > { %944 = vmatpush.msrb.mxu1 %v859_v9  ;;  %v3491_v9 = vld [vmem:[%s6309_s6 + $0xe0] sm:$0xff] }
 0x24f   : > { %3423 = vmatpush.xpose.msk.msrb.mxu0 %vm864_vm9, %v818_v10 }
 0x250   : > { %v991_v5 = vpop.f32.mrf.mxu2 }
 0x251   : > { %v1032_v15 = vpop.f32.mrf.mxu3  ;;  %v992_v10 = vadd.f32 %v3872_v6, %v991_v5  ;;  %v3520_v5 = vld [vmem:[%s6309_s6 + $0x318] sm:$0xff] }
 0x252   : > { %3424 = vmatmul.msk.f32.vlgmr.msrb.gmra.mxu0 %vm864_vm9, %v777_v13  ;;  %v1033_v29 = vadd.f32 %v3873_v22, %v1032_v15  ;;  %v3489_v13 = vld [vmem:[%s6309_s6 + $0xd0] sm:$0xff] }
 0x253   : > { %1060 = vmatpush.msra.mxu0 %v3469_v11  ;;  %v3490_v11 = vld [vmem:[%s6309_s6 + $0xd8] sm:$0xff] }
 0x255   : > { %1061 = vmatpush.msra.mxu0 %v3468_v14  ;;  %v3488_v14 = vld [vmem:[%s6309_s6 + $0xc8] sm:$0xff] }
 0x257   : > { %1062 = vmatpush.msra.mxu0 %v3467_v16  ;;  %v3487_v16 = vld [vmem:[%s6309_s6 + $0xc0] sm:$0xff] }
 0x258   : > { %v994_v15 = vpop.f32.mrf.mxu2 }
 0x259   : > { %1063 = vmatpush.msra.mxu0 %v3466_v18  ;;  %v1035_v24 = vpop.f32.mrf.mxu3  ;;  %v995_v18 = vadd.f32 %v3872_v6, %v994_v15  ;;  %v3519_v6 = vld [vmem:[%s6309_s6 + $0x310] sm:$0xff] }
 0x25a   : > { %v1036_v25 = vadd.f32 %v3873_v22, %v1035_v24  ;;  %3425 = vmatmul.msk.f32.gmra.mxu0 %vm864_vm9, %v780_v21 }
 0x25b   : > { %1064 = vmatpush.msra.mxu0 %v3465_v20 }
 0x25c   : > { %3473 = vmatpush.xpose.msk.msra.mxu1 %vm864_vm9, %v1036_v25 }
 0x25d   : > { %1065 = vmatpush.msra.mxu0 %v3464_v23 }
 0x25f   : > { %1066 = vmatpush.msra.mxu0 %v3463_v26 }
 0x260   : > { %3474 = vmatpush.xpose.msk.msra.mxu1 %vm864_vm9, %v1033_v29 }
 0x261   : > { %1067 = vmatpush.msra.mxu0 %v3462_v28 }
 0x263   : > { %1068 = vmatpush.msra.mxu0 %v3461_v31 }
 0x265   : > { %1069 = vmatpush.msra.mxu0 %v3460_v32 }
 0x267   : > { %1070 = vmatpush.msra.mxu0 %v3459_v33 }
 0x269   : > { %1071 = vmatpush.msra.mxu0 %v3458_v34 }
 0x26a   : > { %3471 = vmatmul.msk.f32.vlgmr.msra.gmra.mxu0 %vm675_vm1, %v4484_v59 }
 0x26b   : > { %1217 = vmatpush.msrb.mxu0 %v955_v3  ;;  %v3522_v3 = vld [vmem:[%s6309_s6 + $0x328] sm:$0xff] }
 0x26d   : > { %1218 = vmatpush.msrb.mxu0 %v954_v4  ;;  %v3521_v4 = vld [vmem:[%s6309_s6 + $0x320] sm:$0xff] }
 0x26f   : > { %1219 = vmatpush.msrb.mxu0 %v953_v8  ;;  %v3517_v8 = vld [vmem:[%s6309_s6 + $0x300] sm:$0xff] }
 0x271   : > { %1220 = vmatpush.msrb.mxu0 %v952_v19 }
 0x272   : > { %3472 = vmatmul.msk.f32.gmra.mxu0 %vm675_vm1, %v4493_v63 }
 0x2cf   : > { %v894_v36 = vpop.f32.mrf.mxu0 }
 0x2d0   : > { %v901_v37 = vsel %vm900_vm10, %v894_v36, -inf }
 0x2d1   : > { %902 = vmax.xlane.f32.xlu2 %v901_v37 }
 0x2d7   : > { %v897_v38 = vpop.f32.mrf.mxu0 }
 0x2d8   : > { %v904_v39 = vsel %vm900_vm10, %v897_v38, -inf }
 0x2d9   : > { %905 = vmax.xlane.f32.xlu2 %v904_v39  ;;  %v3513_v39 = vld [vmem:[%s6309_s6 + $0x238] sm:$0xff] }
 0x2e7   : > { %v1073_v40 = vpop.f32.mrf.mxu0 }
 0x2e8   : > { %v1074_v44 = vadd.f32 %v3874_v41, %v1073_v40  ;;  %v3512_v40 = vld [vmem:[%s6309_s6 + $0x230] sm:$0xff] }
 0x2ef   : > { %v1076_v42 = vpop.f32.mrf.mxu0 }
 0x2f0   : > { %v1077_v43 = vadd.f32 %v3874_v41, %v1076_v42  ;;  %v3511_v41 = vld [vmem:[%s6309_s6 + $0x228] sm:$0xff]  ;;  %v3510_v42 = vld [vmem:[%s6309_s6 + $0x220] sm:$0xff] }
 0x2f2   : > { %1156 = vmatpush.msra.mxu2 %v1077_v43  ;;  %v3509_v43 = vld [vmem:[%s6309_s6 + $0x218] sm:$0xff] }
 0x2f4   : > { %1157 = vmatpush.msra.mxu2 %v1074_v44  ;;  %v3508_v44 = vld [vmem:[%s6309_s6 + $0x210] sm:$0xff] }
 0x2f6   : > { %1291 = vmatpush.msrb.mxu2 %v3513_v39 }
 0x2f8   : > { %1292 = vmatpush.msrb.mxu2 %v3512_v40 }
 0x2fa   : > { %1293 = vmatpush.msrb.mxu2 %v3511_v41 }
 0x2fc   : > { %1294 = vmatpush.msrb.mxu2 %v3510_v42 }
 0x2fe   : > { %1295 = vmatpush.msrb.mxu2 %v3509_v43 }
 0x300   : > { %1296 = vmatpush.msrb.mxu2 %v3508_v44 }
 0x344   : > { %v903_v45 = vpop.xlane.xlu2 %902 }
 0x345   : > { %v907_v46 = vsub.f32 %v894_v36, %v903_v45  ;;  %v3507_v45 = vld [vmem:[%s6309_s6 + $0x208] sm:$0xff] }
 0x346   : > { %1297 = vmatpush.msrb.mxu2 %v3507_v45 }
 0x347   : > { %v909_v47 = vmul.f32 1.442695, %v907_v46  ;;  %v3506_v46 = vld [vmem:[%s6309_s6 + $0x200] sm:$0xff] }
 0x348   : > { %1298 = vmatpush.msrb.mxu2 %v3506_v46 }
 0x349   : > { %3905 = vpow2.f32 %v909_v47  ;;  %v3505_v47 = vld [vmem:[%s6309_s6 + $0x1f8] sm:$0xff] }
 0x34a   : > { %1299 = vmatpush.msrb.mxu2 %v3505_v47 }
 0x34c   : > { %v906_v48 = vpop.xlane.xlu2 %905 }
 0x34d   : > { %v908_v49 = vsub.f32 %v897_v38, %v906_v48  ;;  %v3504_v48 = vld [vmem:[%s6309_s6 + $0x1f0] sm:$0xff] }
 0x34e   : > { %1300 = vmatpush.msrb.mxu2 %v3504_v48  ;;  %v3541_v48 = vld [vmem:[%s6261_s8 + $0x58] sm:$0xff] }
 0x34f   : > { %v3906_v50 = vpop.eup %3905  ;;  %v911_v51 = vmul.f32 1.442695, %v908_v49  ;;  %v3503_v49 = vld [vmem:[%s6309_s6 + $0x1e8] sm:$0xff] }
 0x350   : > { %v913_v52 = vsel %vm900_vm10, %v3906_v50, 0.0  ;;  %1301 = vmatpush.msrb.mxu2 %v3503_v49  ;;  %v3540_v49 = vld [vmem:[%s6261_s8 + $0x50] sm:$0xff] }
 0x351   : > { %3907 = vpow2.f32 %v911_v51  ;;  %914 = vadd.xlane.f32.xlu0 %v913_v52  ;;  %v3482_v52 = vld [vmem:[%s6261_s8 + $0x38] sm:$0xff] }
 0x352   : > { %1188 = vmatpush.msra.mxu3 %v3482_v52 }
 0x357   : > { %v3908_v53 = vpop.eup %3907 }
 0x358   : > { %v916_v54 = vsel %vm900_vm10, %v3908_v53, 0.0 }
 0x359   : > { %917 = vadd.xlane.f32.xlu1 %v916_v54  ;;  %v3480_v54 = vld [vmem:[%s6261_s8 + $0x28] sm:$0xff] }
 0x3c4   : > { %v915_v55 = vpop.xlane.xlu0 %914 }
 0x3c5   : > { %3909 = vrcp.f32 %v915_v55  ;;  %v3479_v55 = vld [vmem:[%s6261_s8 + $0x20] sm:$0xff] }
 0x3cb   : > { %v3910_v56 = vpop.eup %3909 }
 0x3cc   : > { %v918_v57 = vpop.xlane.xlu1 %917  ;;  %v921_v58 = vmul.f32 %v3910_v56, %v3906_v50  ;;  %v3502_v50 = vld [vmem:[%s6309_s6 + $0x1e0] sm:$0xff] }
 0x3cd   : > { %3911 = vrcp.f32 %v918_v57  ;;  %1302 = vmatpush.msrb.mxu2 %v3502_v50  ;;  %v3528_v57 = vld [vmem:[%s6309_s6 + $0x358] sm:$0xff]  ;;  %v3539_v50 = vld [vmem:[%s6261_s8 + $0x48] sm:$0xff] }
 0x3ce   : > { %3426 = vmatmul.msk.f32.vlgmr.msrb.gmra.mxu1 %vm900_vm10, %v921_v58 }
 0x3cf   : > { %1250 = vmatpush.msrb.mxu1 %v3498_v60 }
 0x3d1   : > { %1251 = vmatpush.msrb.mxu1 %v3497_v61  ;;  %v3527_v61 = vld [vmem:[%s6309_s6 + $0x350] sm:$0xff] }
 0x3d3   : > { %v3912_v35 = vpop.eup %3911  ;;  %1252 = vmatpush.msrb.mxu1 %v3496_v30  ;;  %v3526_v30 = vld [vmem:[%s6309_s6 + $0x348] sm:$0xff] }
 0x3d4   : > { %v922_v0 = vmul.f32 %v3912_v35, %v3908_v53  ;;  %v3481_v53 = vld [vmem:[%s6261_s8 + $0x30] sm:$0xff] }
 0x3d5   : > { %1253 = vmatpush.msrb.mxu1 %v3495_v62  ;;  %1189 = vmatpush.msra.mxu3 %v3481_v53 }
 0x3d6   : > { %3427 = vmatmul.msk.f32.gmra.mxu1 %vm900_vm10, %v922_v0  ;;  %v3525_v0 = vld [vmem:[%s6309_s6 + $0x340] sm:$0xff] }
 0x3d7   : > { %1254 = vmatpush.msrb.mxu1 %v3494_v1  ;;  %1190 = vmatpush.msra.mxu3 %v3480_v54  ;;  %v3524_v1 = vld [vmem:[%s6309_s6 + $0x338] sm:$0xff] }
 0x3d9   : > { %1255 = vmatpush.msrb.mxu1 %v3493_v2  ;;  %1191 = vmatpush.msra.mxu3 %v3479_v55  ;;  %v3523_v2 = vld [vmem:[%s6309_s6 + $0x330] sm:$0xff] }
 0x3db   : > { %1256 = vmatpush.msrb.mxu1 %v3492_v7  ;;  %1332 = vmatpush.msrb.mxu3 %v3528_v57  ;;  %v3518_v7 = vld [vmem:[%s6309_s6 + $0x308] sm:$0xff]  ;;  %v3538_v57 = vld [vmem:[%s6261_s8 + $0x40] sm:$0xff] }
 0x3dd   : > { %1257 = vmatpush.msrb.mxu1 %v3491_v9  ;;  %1333 = vmatpush.msrb.mxu3 %v3527_v61 }
 0x3de   : > { %3475 = vmatmul.msk.f32.vlgmr.msra.gmra.mxu1 %vm864_vm9, %v992_v10 }
 0x3df   : > { %1258 = vmatpush.msrb.mxu1 %v3490_v11  ;;  %1334 = vmatpush.msrb.mxu3 %v3526_v30 }
 0x3e1   : > { %1259 = vmatpush.msrb.mxu1 %v3489_v13  ;;  %1335 = vmatpush.msrb.mxu3 %v3525_v0  ;;  %v3876_v13 = vld [vmem:[%s6312_s7 + $0x5] ss:$0 sm:$0xff] }
 0x3e3   : > { %1260 = vmatpush.msrb.mxu1 %v3488_v14  ;;  %1336 = vmatpush.msrb.mxu3 %v3524_v1 }
 0x3e5   : > { %1261 = vmatpush.msrb.mxu1 %v3487_v16  ;;  %1337 = vmatpush.msrb.mxu3 %v3523_v2 }
 0x3e6   : > { %3476 = vmatmul.msk.f32.gmra.mxu1 %vm864_vm9, %v995_v18  ;;  %v3875_v18 = vld [vmem:[%s6312_s7 + $0x2] ss:$0 sm:$0xff] }
 0x3e7   : > { %1338 = vmatpush.msrb.mxu3 %v3522_v3 }
 0x3e9   : > { %1339 = vmatpush.msrb.mxu3 %v3521_v4 }
 0x3eb   : > { %1340 = vmatpush.msrb.mxu3 %v3520_v5 }
 0x3ed   : > { %1341 = vmatpush.msrb.mxu3 %v3519_v6 }
 0x3ee   : > { %3500 = vmatmul.msk.f32.vlgmr.msrb.gmra.mxu1 %vm675_vm1, %v4484_v59 }
 0x3ef   : > { %1342 = vmatpush.msrb.mxu3 %v3518_v7 }
 0x3f1   : > { %1343 = vmatpush.msrb.mxu3 %v3517_v8 }
 0x3f6   : > { %3501 = vmatmul.msk.f32.gmra.mxu1 %vm675_vm1, %v4493_v63 }
 0x44b   : > { %v946_v20 = vpop.f32.mrf.mxu1 }
 0x44c   : > { %3485 = vmatmul.msk.f32.vlgmr.msrb.gmra.mxu0 %vm864_vm9, %v946_v20 }
 0x453   : > { %v949_v21 = vpop.f32.mrf.mxu1 }
 0x454   : > { %3486 = vmatmul.msk.f32.gmra.mxu0 %vm864_vm9, %v949_v21 }
 0x45b   : > { %v1108_v22 = vpop.f32.mrf.mxu1 }
 0x45c   : > { %v1114_v23 = vsel %vm900_vm10, %v1108_v22, -inf }
 0x45d   : > { %1115 = vmax.xlane.f32.xlu2 %v1114_v23 }
 0x463   : > { %v1111_v24 = vpop.f32.mrf.mxu1 }
 0x464   : > { %v1117_v25 = vsel %vm900_vm10, %v1111_v24, -inf }
 0x465   : > { %1118 = vmax.xlane.f32.xlu0 %v1117_v25 }
 0x46b   : > { %v1263_v16 = vpop.f32.mrf.mxu1 }
 0x473   : > { %v1266_v20 = vpop.f32.mrf.mxu1 }
 0x474   : > { %v1267_v21 = vadd.f32 %v3875_v18, %v1266_v20  ;;  %v1567_v20 = vld [vmem:[%s6265_s12 + $0xf0] sm:$0xff] }
 0x4d0   : > { %v1116_v26 = vpop.xlane.xlu2 %1115 }
 0x4d1   : > { %v1120_v28 = vsub.f32 %v1108_v22, %v1116_v26  ;;  %v1222_v22 = vpop.f32.mrf.mxu0 }
 0x4d3   : > { %v1122_v29 = vmul.f32 1.442695, %v1120_v28  ;;  %v3877_v28 = vld [vmem:[%s6312_s7 + $0x8] ss:$0 sm:$0xff] }
 0x4d5   : > { %3913 = vpow2.f32 %v1122_v29 }
 0x4d8   : > { %v1119_v31 = vpop.xlane.xlu0 %1118 }
 0x4d9   : > { %v1121_v32 = vsub.f32 %v1111_v24, %v1119_v31 }
 0x4db   : > { %v3914_v33 = vpop.eup %3913  ;;  %v1124_v34 = vmul.f32 1.442695, %v1121_v32 }
 0x4dc   : > { %v1126_v36 = vsel %vm900_vm10, %v3914_v33, 0.0 }
 0x4dd   : > { %3915 = vpow2.f32 %v1124_v34  ;;  %1127 = vadd.xlane.f32.xlu1 %v1126_v36 }
 0x4e3   : > { %v3916_v37 = vpop.eup %3915 }
 0x4e4   : > { %v1129_v38 = vsel %vm900_vm10, %v3916_v37, 0.0 }
 0x4e5   : > { %1130 = vadd.xlane.f32.xlu2 %v1129_v38 }
 0x550   : > { %v1128_v51 = vpop.xlane.xlu1 %1127 }
 0x551   : > { %3917 = vrcp.f32 %v1128_v51 }
 0x557   : > { %v3918_v56 = vpop.eup %3917 }
 0x558   : > { %v1134_v58 = vmul.f32 %v3918_v56, %v3914_v33  ;;  %v1131_v60 = vpop.xlane.xlu2 %1130 }
 0x559   : > { %3919 = vrcp.f32 %v1131_v60 }
 0x55a   : > { %3477 = vmatmul.msk.f32.vlgmr.msra.gmra.mxu2 %vm900_vm10, %v1134_v58 }
 0x55f   : > { %v3920_v62 = vpop.eup %3919 }
 0x560   : > { %v1135_v35 = vmul.f32 %v3920_v62, %v3916_v37 }
 0x562   : > { %3478 = vmatmul.msk.f32.gmra.mxu2 %vm900_vm10, %v1135_v35  ;;  %v3878_v35 = vld [vmem:[%s6262_s9] ss:$0 sm:$0xff] }
 0x56a   : > { %3515 = vmatmul.msk.f32.vlgmr.msrb.gmra.mxu2 %vm675_vm1, %v4484_v59 }
 0x572   : > { %3516 = vmatmul.msk.f32.gmra.mxu2 %vm675_vm1, %v4493_v63 }
 0x5dd   : > { %v1159_v9 = vpop.f32.mrf.mxu2 }
 0x5de   : > { %3483 = vmatmul.msk.f32.vlgmr.msra.gmra.mxu3 %vm864_vm9, %v1159_v9 }
 0x5e5   : > { %v1162_v10 = vpop.f32.mrf.mxu2 }
 0x5e6   : > { %3484 = vmatmul.msk.f32.gmra.mxu3 %vm864_vm9, %v1162_v10 }
 0x5ed   : > { %v1304_v11 = vpop.f32.mrf.mxu2 }
 0x5ee   : > { %3530 = vmatmul.msk.f32.vlgmr.msrb.gmra.mxu3 %vm675_vm1, %v4484_v59  ;;  %v1305_v19 = vadd.f32 %v3876_v13, %v1304_v11  ;;  %v1264_v59 = vadd.f32 %v3875_v18, %v1263_v16  ;;  %v1570_v18 = vld [vmem:[%s6265_s12 + $0x108] sm:$0xff] }
 0x5ef   : > { %1591 = vmatpush.msra.mxu2 %v1570_v18 }
 0x5f1   : > { %1592 = vmatpush.msra.mxu2 %v1567_v20 }
 0x5f5   : > { %v1307_v14 = vpop.f32.mrf.mxu2 }
 0x5f6   : > { %v1308_v15 = vadd.f32 %v3876_v13, %v1307_v14  ;;  %3531 = vmatmul.msk.f32.gmra.mxu3 %vm675_vm1, %v4493_v63  ;;  %v1225_v63 = vpop.f32.mrf.mxu0 }
 0x5f8   : > { %3532 = vmatpush.xpose.msk.msra.mxu0 %vm864_vm9, %v1308_v15 }
 0x5fc   : > { %3533 = vmatpush.xpose.msk.msra.mxu0 %vm864_vm9, %v1305_v19  ;;  %v1571_v19 = vld [vmem:[%s6265_s12 + $0x110] sm:$0xff] }
 0x5fd   : > { %1614 = vmatpush.msra.mxu3 %v1571_v19 }
 0x5ff   : > { %3534 = vmatmul.msk.f32.vlgmr.msra.gmra.mxu0 %vm864_vm9, %v1264_v59  ;;  %v1572_v59 = vld [vmem:[%s6265_s12 + $0x118] sm:$0xff] }
 0x600   : > { %1460 = vmatpush.msrb.mxu0 %v3541_v48  ;;  %v1545_v48 = vld [vmem:[%s6265_s12 + $0x40] sm:$0xff] }
 0x602   : > { %1461 = vmatpush.msrb.mxu0 %v3540_v49  ;;  %v1540_v49 = vld [vmem:[%s6265_s12 + $0x18] sm:$0xff] }
 0x604   : > { %1462 = vmatpush.msrb.mxu0 %v3539_v50  ;;  %v1541_v50 = vld [vmem:[%s6265_s12 + $0x20] sm:$0xff] }
 0x606   : > { %1463 = vmatpush.msrb.mxu0 %v3538_v57 }
 0x607   : > { %3535 = vmatmul.msk.f32.gmra.mxu0 %vm864_vm9, %v1267_v21  ;;  %v1568_v21 = vld [vmem:[%s6265_s12 + $0xf8] sm:$0xff] }
 0x608   : > { %1615 = vmatpush.msra.mxu3 %v1568_v21  ;;  %v1859_v21 = vld [vmem:[%s6267_s14 + $0x178] sm:$0xff] }
 0x661   : > { %v1193_v23 = vpop.f32.mrf.mxu3 }
 0x662   : > { %v1223_v61 = vadd.f32 %v1222_v22, %v1193_v23  ;;  %v1569_v22 = vld [vmem:[%s6265_s12 + $0x100] sm:$0xff]  ;;  %v1564_v23 = vld [vmem:[%s6265_s12 + $0xd8] sm:$0xff] }
 0x663   : > { %1593 = vmatpush.msra.mxu2 %v1564_v23  ;;  %v1827_v23 = vld [vmem:[%s6267_s14 + $0x78] sm:$0xff] }
 0x664   : > { %1860 = vmatpush.msra.mxu0 %v1827_v23 }
 0x669   : > { %v1196_v24 = vpop.f32.mrf.mxu3 }
 0x66a   : > { %v1226_v25 = vadd.f32 %v1225_v63, %v1196_v24  ;;  %v1565_v63 = vld [vmem:[%s6265_s12 + $0xe0] sm:$0xff]  ;;  %v1566_v24 = vld [vmem:[%s6265_s12 + $0xe8] sm:$0xff] }
 0x66b   : > { %1616 = vmatpush.msra.mxu3 %v1565_v63  ;;  %v1843_v63 = vld [vmem:[%s6267_s14 + $0xf8] sm:$0xff] }
 0x671   : > { %v1345_v26 = vpop.f32.mrf.mxu3 }
 0x672   : > { %v1346_v32 = vadd.f32 %v3877_v28, %v1345_v26  ;;  %v1562_v26 = vld [vmem:[%s6265_s12 + $0xc8] sm:$0xff] }
 0x673   : > { %1617 = vmatpush.msra.mxu3 %v1562_v26  ;;  %v1842_v26 = vld [vmem:[%s6267_s14 + $0xf0] sm:$0xff] }
 0x679   : > { %v1348_v29 = vpop.f32.mrf.mxu3 }
 0x67a   : > { %v1349_v31 = vadd.f32 %v3877_v28, %v1348_v29  ;;  %v1563_v28 = vld [vmem:[%s6265_s12 + $0xd0] sm:$0xff]  ;;  %v1558_v29 = vld [vmem:[%s6265_s12 + $0xa8] sm:$0xff] }
 0x67c   : > { %v1380_v33 = vpop.f32.mrf.mxu0  ;;  %1428 = vmatpush.msra.mxu1 %v1349_v31  ;;  %v1559_v31 = vld [vmem:[%s6265_s12 + $0xb0] sm:$0xff] }
 0x67d   : > { %v1386_v34 = vsel %vm900_vm10, %v1380_v33, -inf  ;;  %1618 = vmatpush.msra.mxu3 %v1559_v31  ;;  %v1825_v31 = vld [vmem:[%s6267_s14 + $0x68] sm:$0xff] }
 0x67e   : > { %1387 = vmax.xlane.f32.xlu0 %v1386_v34  ;;  %1429 = vmatpush.msra.mxu1 %v1346_v32  ;;  %v1560_v32 = vld [vmem:[%s6265_s12 + $0xb8] sm:$0xff] }
 0x67f   : > { %v1556_v34 = vld [vmem:[%s6265_s12 + $0x98] sm:$0xff] }
 0x680   : > { %1637 = vmatpush.msrb.mxu1 %v1572_v59  ;;  %1619 = vmatpush.msra.mxu3 %v1556_v34  ;;  %v1824_v34 = vld [vmem:[%s6267_s14 + $0x60] sm:$0xff] }
 0x682   : > { %1638 = vmatpush.msrb.mxu1 %v1569_v22  ;;  %v1858_v22 = vld [vmem:[%s6267_s14 + $0x170] sm:$0xff] }
 0x684   : > { %v1383_v36 = vpop.f32.mrf.mxu0  ;;  %1639 = vmatpush.msrb.mxu1 %v1566_v24  ;;  %v1856_v24 = vld [vmem:[%s6267_s14 + $0x160] sm:$0xff] }
 0x685   : > { %v1389_v37 = vsel %vm900_vm10, %v1383_v36, -inf }
 0x686   : > { %1390 = vmax.xlane.f32.xlu1 %v1389_v37  ;;  %1640 = vmatpush.msrb.mxu1 %v1563_v28  ;;  %v1552_v37 = vld [vmem:[%s6265_s12 + $0x78] sm:$0xff] }
 0x687   : > { %v1855_v28 = vld [vmem:[%s6267_s14 + $0x158] sm:$0xff] }
 0x688   : > { %1641 = vmatpush.msrb.mxu1 %v1560_v32  ;;  %v1841_v32 = vld [vmem:[%s6267_s14 + $0xe8] sm:$0xff] }
 0x6f1   : > { %v1388_v38 = vpop.xlane.xlu0 %1387 }
 0x6f2   : > { %v1392_v39 = vsub.f32 %v1380_v33, %v1388_v38  ;;  %v1555_v33 = vld [vmem:[%s6265_s12 + $0x90] sm:$0xff]  ;;  %v1553_v38 = vld [vmem:[%s6265_s12 + $0x80] sm:$0xff] }
 0x6f3   : > { %1620 = vmatpush.msra.mxu3 %v1553_v38 }
 0x6f4   : > { %v1394_v40 = vmul.f32 1.442695, %v1392_v39  ;;  %v1554_v39 = vld [vmem:[%s6265_s12 + $0x88] sm:$0xff] }
 0x6f6   : > { %3921 = vpow2.f32 %v1394_v40  ;;  %v1549_v40 = vld [vmem:[%s6265_s12 + $0x60] sm:$0xff] }
 0x6f9   : > { %v1391_v41 = vpop.xlane.xlu1 %1390 }
 0x6fa   : > { %v1393_v42 = vsub.f32 %v1383_v36, %v1391_v41  ;;  %v1557_v36 = vld [vmem:[%s6265_s12 + $0xa0] sm:$0xff]  ;;  %v1550_v41 = vld [vmem:[%s6265_s12 + $0x68] sm:$0xff] }
 0x6fb   : > { %1642 = vmatpush.msrb.mxu1 %v1557_v36  ;;  %1621 = vmatpush.msra.mxu3 %v1550_v41  ;;  %v1840_v36 = vld [vmem:[%s6267_s14 + $0xe0] sm:$0xff] }
 0x6fc   : > { %v3922_v43 = vpop.eup %3921  ;;  %v1396_v44 = vmul.f32 1.442695, %v1393_v42  ;;  %v1551_v42 = vld [vmem:[%s6265_s12 + $0x70] sm:$0xff]  ;;  %v1852_v41 = vld [vmem:[%s6267_s14 + $0x140] sm:$0xff] }
 0x6fd   : > { %v1398_v45 = vsel %vm900_vm10, %v3922_v43, 0.0  ;;  %1643 = vmatpush.msrb.mxu1 %v1554_v39  ;;  %v1823_v39 = vld [vmem:[%s6267_s14 + $0x58] sm:$0xff] }
 0x6fe   : > { %3923 = vpow2.f32 %v1396_v44  ;;  %1399 = vadd.xlane.f32.xlu2 %v1398_v45  ;;  %v1547_v44 = vld [vmem:[%s6265_s12 + $0x50] sm:$0xff]  ;;  %v1548_v45 = vld [vmem:[%s6265_s12 + $0x58] sm:$0xff] }
 0x6ff   : > { %1644 = vmatpush.msrb.mxu1 %v1551_v42  ;;  %1622 = vmatpush.msra.mxu3 %v1547_v44  ;;  %v1838_v44 = vld [vmem:[%s6267_s14 + $0xd0] sm:$0xff] }
 0x701   : > { %1645 = vmatpush.msrb.mxu1 %v1548_v45  ;;  %v1851_v45 = vld [vmem:[%s6267_s14 + $0x138] sm:$0xff] }
 0x703   : > { %1646 = vmatpush.msrb.mxu1 %v1545_v48 }
 0x704   : > { %v3924_v46 = vpop.eup %3923 }
 0x705   : > { %v1401_v47 = vsel %vm900_vm10, %v3924_v46, 0.0 }
 0x706   : > { %1402 = vadd.xlane.f32.xlu0 %v1401_v47  ;;  %v1544_v47 = vld [vmem:[%s6265_s12 + $0x38] sm:$0xff] }
 0x707   : > { %1623 = vmatpush.msra.mxu3 %v1544_v47 }
 0x709   : > { %1624 = vmatpush.msra.mxu3 %v1541_v50  ;;  %v1837_v50 = vld [vmem:[%s6267_s14 + $0xc8] sm:$0xff] }
 0x771   : > { %v1400_v51 = vpop.xlane.xlu2 %1399 }
 0x772   : > { %3925 = vrcp.f32 %v1400_v51  ;;  %v1542_v51 = vld [vmem:[%s6265_s12 + $0x28] sm:$0xff] }
 0x773   : > { %1647 = vmatpush.msrb.mxu1 %v1542_v51  ;;  %v1850_v51 = vld [vmem:[%s6267_s14 + $0x130] sm:$0xff] }
 0x778   : > { %v3926_v52 = vpop.eup %3925 }
 0x779   : > { %v1406_v53 = vmul.f32 %v3926_v52, %v3922_v43  ;;  %v1403_v54 = vpop.xlane.xlu0 %1402  ;;  %v1546_v43 = vld [vmem:[%s6265_s12 + $0x48] sm:$0xff]  ;;  %v1537_v52 = vld [vmem:[%s6265_s12] sm:$0xff] }
 0x77a   : > { %3927 = vrcp.f32 %v1403_v54  ;;  %v1539_v54 = vld [vmem:[%s6265_s12 + $0x10] sm:$0xff] }
 0x77b   : > { %3536 = vmatmul.msk.f32.vlgmr.msra.gmra.mxu1 %vm900_vm10, %v1406_v53  ;;  %v1538_v53 = vld [vmem:[%s6265_s12 + $0x8] sm:$0xff] }
 0x77c   : > { %1625 = vmatpush.msra.mxu3 %v1538_v53  ;;  %1648 = vmatpush.msrb.mxu1 %v1539_v54  ;;  %v1820_v53 = vld [vmem:[%s6267_s14 + $0x40] sm:$0xff] }
 0x77d   : > { %v1836_v54 = vld [vmem:[%s6267_s14 + $0xc0] sm:$0xff] }
 0x77e   : > { %1906 = vmatpush.msrb.mxu3 %v1859_v21  ;;  %v1816_v21 = vld [vmem:[%s6267_s14 + $0x20] sm:$0xff] }
 0x780   : > { %v3928_v55 = vpop.eup %3927  ;;  %1907 = vmatpush.msrb.mxu3 %v1858_v22  ;;  %v1832_v22 = vld [vmem:[%s6267_s14 + $0xa0] sm:$0xff] }
 0x781   : > { %v1407_v56 = vmul.f32 %v3928_v55, %v3924_v46  ;;  %v1543_v46 = vld [vmem:[%s6265_s12 + $0x30] sm:$0xff] }
 0x783   : > { %3537 = vmatmul.msk.f32.gmra.mxu1 %vm900_vm10, %v1407_v56 }
 0x7f8   : > { %v1431_v58 = vpop.f32.mrf.mxu1 }
 0x7f9   : > { %3542 = vmatmul.msk.f32.vlgmr.msrb.gmra.mxu0 %vm864_vm9, %v1431_v58 }
 0x800   : > { %v1434_v60 = vpop.f32.mrf.mxu1 }
 0x801   : > { %3543 = vmatmul.msk.f32.gmra.mxu0 %vm864_vm9, %v1434_v60 }
 0x876   : > { %v1465_v30 = vpop.f32.mrf.mxu0 }
 0x877   : > { %v1471_v62 = vadd.f32 %v1465_v30, %v1223_v61 }
 0x879   : > { %v1473_v0 = vadd.f32 %v1471_v62, %v4268_v12 }
 0x87b   : > { %v4772_v1 = vadd.f32 %v3878_v35, %v1473_v0 }
 0x87d   : > { %v1483_v2 = vsel %vm675_vm1, %v4772_v1, 0.0 }
 0x87e   : > { %1484 = vadd.xlane.f32.xlu1 %v1483_v2  ;;  %v1468_v3 = vpop.f32.mrf.mxu0 }
 0x87f   : > { %v1472_v4 = vadd.f32 %v1468_v3, %v1226_v25  ;;  %v1561_v25 = vld [vmem:[%s6265_s12 + $0xc0] sm:$0xff] }
 0x880   : > { %1594 = vmatpush.msra.mxu2 %v1561_v25  ;;  %v1826_v25 = vld [vmem:[%s6267_s14 + $0x70] sm:$0xff] }
 0x881   : > { %v1474_v5 = vadd.f32 %v1472_v4, %v4275_v17  ;;  %1861 = vmatpush.msra.mxu0 %v1826_v25  ;;  %v1831_v25 = vld [vmem:[%s6267_s14 + $0x98] sm:$0xff] }
 0x882   : > { %1595 = vmatpush.msra.mxu2 %v1558_v29  ;;  %v4949_v29 = vld [vmem:[%s6266_s13] sm:$0x7] }
 0x883   : > { %v4777_v6 = vadd.f32 %v3878_v35, %v1474_v5  ;;  %1862 = vmatpush.msra.mxu0 %v1825_v31  ;;  %v1577_v38 = vperm.slane %v4949_v29, 2  ;;  %v1575_v47 = vperm.slane %v4949_v29, 0  ;;  %v1576_v48 = vperm.slane %v4949_v29, 1  ;;  %v1844_v31 = vld [vmem:[%s6267_s14 + $0x100] sm:$0xff] }
 0x884   : > { %1596 = vmatpush.msra.mxu2 %v1555_v33  ;;  %v1854_v33 = vld [vmem:[%s6267_s14 + $0x150] sm:$0xff] }
 0x885   : > { %v1486_v7 = vsel %vm675_vm1, %v4777_v6, 0.0  ;;  %1863 = vmatpush.msra.mxu0 %v1824_v34 }
 0x886   : > { %1487 = vadd.xlane.f32.xlu2 %v1486_v7  ;;  %1597 = vmatpush.msra.mxu2 %v1552_v37  ;;  %v3879_v7 = vld [vmem:[%s6263_s10] ss:$0 sm:$0xff]  ;;  %v1853_v37 = vld [vmem:[%s6267_s14 + $0x148] sm:$0xff] }
 0x887   : > { %1864 = vmatpush.msra.mxu0 %v1823_v39 }
 0x888   : > { %1598 = vmatpush.msra.mxu2 %v1549_v40  ;;  %v1839_v40 = vld [vmem:[%s6267_s14 + $0xd8] sm:$0xff] }
 0x88a   : > { %1599 = vmatpush.msra.mxu2 %v1546_v43  ;;  %v1822_v43 = vld [vmem:[%s6267_s14 + $0x50] sm:$0xff] }
 0x88b   : > { %1865 = vmatpush.msra.mxu0 %v1822_v43  ;;  %v1829_v43 = vld [vmem:[%s6267_s14 + $0x88] sm:$0xff] }
 0x88c   : > { %1600 = vmatpush.msra.mxu2 %v1543_v46 }
 0x88e   : > { %1601 = vmatpush.msra.mxu2 %v1540_v49  ;;  %v1821_v49 = vld [vmem:[%s6267_s14 + $0x48] sm:$0xff] }
 0x88f   : > { %1866 = vmatpush.msra.mxu0 %v1821_v49  ;;  %v1828_v49 = vld [vmem:[%s6267_s14 + $0x80] sm:$0xff] }
 0x890   : > { %1602 = vmatpush.msra.mxu2 %v1537_v52 }
 0x891   : > { %1867 = vmatpush.msra.mxu0 %v1820_v53 }
 0x892   : > { %1883 = vmatpush.msrb.mxu2 %v1843_v63  ;;  %v1845_v63 = vld [vmem:[%s6267_s14 + $0x108] sm:$0xff] }
 0x894   : > { %1884 = vmatpush.msrb.mxu2 %v1842_v26 }
 0x896   : > { %1885 = vmatpush.msrb.mxu2 %v1841_v32  ;;  %v1814_v32 = vld [vmem:[%s6267_s14 + $0x10] sm:$0xff] }
 0x898   : > { %1886 = vmatpush.msrb.mxu2 %v1840_v36 }
 0x89a   : > { %1887 = vmatpush.msrb.mxu2 %v1839_v40  ;;  %v1813_v40 = vld [vmem:[%s6267_s14 + $0x8] sm:$0xff] }
 0x89c   : > { %1888 = vmatpush.msrb.mxu2 %v1838_v44  ;;  %v1812_v44 = vld [vmem:[%s6267_s14] sm:$0xff] }
 0x89e   : > { %1889 = vmatpush.msrb.mxu2 %v1837_v50 }
 0x8a0   : > { %1890 = vmatpush.msrb.mxu2 %v1836_v54 }
 0x8f1   : > { %v1485_v8 = vpop.xlane.xlu1 %1484 }
 0x8f2   : > { %v1489_v9 = vmul.f32 %v1485_v8, %v4285_v27 }
 0x8f4   : > { %v4783_v12 = vsub.f32 %v4772_v1, %v1489_v9 }
 0x8f6   : > { %v1493_v10 = vmul.f32 %v4783_v12, %v4783_v12 }
 0x8f8   : > { %v1495_v11 = vsel %vm675_vm1, %v1493_v10, 0.0 }
 0x8f9   : > { %1496 = vadd.xlane.f32.xlu0 %v1495_v11  ;;  %v1488_v13 = vpop.xlane.xlu2 %1487  ;;  %v3880_v11 = vld [vmem:[%s6264_s11] ss:$0 sm:$0xff] }
 0x8fa   : > { %v1490_v17 = vmul.f32 %v1488_v13, %v4285_v27 }
 0x8fc   : > { %v4790_v14 = vsub.f32 %v4777_v6, %v1490_v17 }
 0x8fe   : > { %v1494_v15 = vmul.f32 %v4790_v14, %v4790_v14 }
 0x900   : > { %v1498_v16 = vsel %vm675_vm1, %v1494_v15, 0.0 }
 0x901   : > { %1499 = vadd.xlane.f32.xlu1 %v1498_v16 }
 0x96c   : > { %v1497_v55 = vpop.xlane.xlu0 %1496 }
 0x96d   : > { %v1501_v56 = vmul.f32 %v1497_v55, %v4285_v27  ;;  %v1849_v55 = vld [vmem:[%s6267_s14 + $0x128] sm:$0xff] }
 0x96f   : > { %v1503_v57 = vadd.f32 1e-05, %v1501_v56 }
 0x971   : > { %3929 = vrsqrt.f32 %v1503_v57  ;;  %vm1511_vm12 = vweird.f32 %v1503_v57 }
 0x974   : > { %v1500_v58 = vpop.xlane.xlu1 %1499 }
 0x975   : > { %v1502_v60 = vmul.f32 %v1500_v58, %v4285_v27 }
 0x977   : > { %v3930_v61 = vpop.eup %3929  ;;  %v1504_v30 = vadd.f32 1e-05, %v1502_v60 }
 0x978   : > { %v1506_v62 = vmul.f32 %v3930_v61, %v1503_v57  ;;  %vm1512_vm11 = vweird.f32 %v3930_v61 }
 0x979   : > { %3931 = vrsqrt.f32 %v1504_v30  ;;  %vm1513_vm13 = vmor %vm1511_vm12, %vm1512_vm11  ;;  %vm1521_vm15 = vweird.f32 %v1504_v30 }
 0x97a   : > { %v1507_v35 = vmul.f32 %v3930_v61, %v1506_v62  ;;  %v1835_v62 = vld [vmem:[%s6267_s14 + $0xb8] sm:$0xff] }
 0x97b   : > { %1891 = vmatpush.msrb.mxu2 %v1835_v62 }
 0x97c   : > { %v1508_v0 = vmul.f32 0.5, %v1507_v35  ;;  %v1848_v35 = vld [vmem:[%s6267_s14 + $0x120] sm:$0xff] }
 0x97e   : > { %v1509_v2 = vsub.f32 1.5, %v1508_v0 }
 0x97f   : > { %v3932_v3 = vpop.eup %3931 }
 0x980   : > { %v1510_v4 = vmul.f32 %v3930_v61, %v1509_v2  ;;  %v1516_v5 = vmul.f32 %v3932_v3, %v1504_v30  ;;  %vm1522_vm14 = vweird.f32 %v3932_v3  ;;  %v1819_v30 = vld [vmem:[%s6267_s14 + $0x38] sm:$0xff] }
 0x981   : > { %vm1523_vm0 = vmor %vm1521_vm15, %vm1522_vm14  ;;  %1868 = vmatpush.msra.mxu0 %v1819_v30 }
 0x982   : > { %v1514_v8 = vsel %vm1513_vm13, %v3930_v61, %v1510_v4  ;;  %v1517_v9 = vmul.f32 %v3932_v3, %v1516_v5 }
 0x983   : > { %v1525_v10 = vmul.f32 %v1514_v8, %v4783_v12  ;;  %v1818_v8 = vld [vmem:[%s6267_s14 + $0x30] sm:$0xff] }
 0x984   : > { %v1518_v13 = vmul.f32 0.5, %v1517_v9  ;;  %v1834_v9 = vld [vmem:[%s6267_s14 + $0xb0] sm:$0xff]  ;;  %1869 = vmatpush.msra.mxu0 %v1818_v8 }
 0x985   : > { %v1530_v17 = vmul.f32 %v3879_v7, %v1525_v10  ;;  %v1847_v10 = vld [vmem:[%s6267_s14 + $0x118] sm:$0xff]  ;;  %1892 = vmatpush.msrb.mxu2 %v1834_v9 }
 0x986   : > { %v1519_v15 = vsub.f32 1.5, %v1518_v13 }
 0x987   : > { %v1535_v16 = vadd.f32 %v3880_v11, %v1530_v17  ;;  %v1817_v17 = vld [vmem:[%s6267_s14 + $0x28] sm:$0xff] }
 0x988   : > { %v1520_v18 = vmul.f32 %v3932_v3, %v1519_v15  ;;  %v1833_v15 = vld [vmem:[%s6267_s14 + $0xa8] sm:$0xff]  ;;  %1870 = vmatpush.msra.mxu0 %v1817_v17 }
 0x989   : > { %3544 = vmatmul.msk.f32.vlgmr.msra.gmra.mxu2 %vm675_vm1, %v1535_v16  ;;  %3546 = vmatmul.msk.f32.vlgmr.msra.gmra.mxu3 %vm675_vm1, %v1535_v16 }
 0x98a   : > { %v1524_v19 = vsel %vm1523_vm0, %v3932_v3, %v1520_v18  ;;  %3548 = vmatmul.msk.f32.vlgmr.msrb.gmra.mxu1 %vm675_vm1, %v1535_v16  ;;  %1893 = vmatpush.msrb.mxu2 %v1833_v15 }
 0x98b   : > { %v1526_v12 = vmul.f32 %v1524_v19, %v4790_v14  ;;  %v1857_v14 = vld [vmem:[%s6267_s14 + $0x168] sm:$0xff]  ;;  %1871 = vmatpush.msra.mxu0 %v1816_v21 }
 0x98c   : > { %1908 = vmatpush.msrb.mxu3 %v1857_v14  ;;  %1894 = vmatpush.msrb.mxu2 %v1832_v22 }
 0x98d   : > { %v1531_v59 = vmul.f32 %v3879_v7, %v1526_v12 }
 0x98e   : > { %1909 = vmatpush.msrb.mxu3 %v1856_v24  ;;  %v1815_v24 = vld [vmem:[%s6267_s14 + $0x18] sm:$0xff]  ;;  %1895 = vmatpush.msrb.mxu2 %v1831_v25  ;;  %v4084_v25 = vmov 1.0  }
 0x98f   : > { %v1536_v20 = vadd.f32 %v3880_v11, %v1531_v59  ;;  %1872 = vmatpush.msra.mxu0 %v1815_v24 }
 0x990   : > { %1910 = vmatpush.msrb.mxu3 %v1855_v28 }
 0x991   : > { %3545 = vmatmul.msk.f32.gmra.mxu2 %vm675_vm1, %v1536_v20  ;;  %3547 = vmatmul.msk.f32.gmra.mxu3 %vm675_vm1, %v1536_v20 }
 0x992   : > { %3549 = vmatmul.msk.f32.gmra.mxu1 %vm675_vm1, %v1536_v20  ;;  %1911 = vmatpush.msrb.mxu3 %v1854_v33  ;;  %v1846_v20 = vld [vmem:[%s6267_s14 + $0x110] sm:$0xff] }
 0x993   : > { %v1830_v33 = vld [vmem:[%s6267_s14 + $0x90] sm:$0xff]  ;;  %1873 = vmatpush.msra.mxu0 %v1814_v32 }
 0x994   : > { %1912 = vmatpush.msrb.mxu3 %v1853_v37  ;;  %1896 = vmatpush.msrb.mxu2 %v1830_v33 }
 0x995   : > { %1874 = vmatpush.msra.mxu0 %v1813_v40 }
 0x996   : > { %1913 = vmatpush.msrb.mxu3 %v1852_v41  ;;  %1897 = vmatpush.msrb.mxu2 %v1829_v43 }
 0x997   : > { %1875 = vmatpush.msra.mxu0 %v1812_v44 }
 0x998   : > { %1914 = vmatpush.msrb.mxu3 %v1851_v45  ;;  %1898 = vmatpush.msrb.mxu2 %v1828_v49 }
 0x99a   : > { %1915 = vmatpush.msrb.mxu3 %v1850_v51 }
 0x99c   : > { %1916 = vmatpush.msrb.mxu3 %v1849_v55 }
 0x99e   : > { %1917 = vmatpush.msrb.mxu3 %v1848_v35 }
 0x9a0   : > { %1918 = vmatpush.msrb.mxu3 %v1847_v10 }
 0x9a2   : > { %1919 = vmatpush.msrb.mxu3 %v1846_v20 }
 0x9a4   : > { %1920 = vmatpush.msrb.mxu3 %v1845_v63 }
 0x9a6   : > { %1921 = vmatpush.msrb.mxu3 %v1844_v31 }
 0xa07   : > { %v1650_v42 = vpop.f32.mrf.mxu1 }
 0xa08   : > { %v4988_v46 = vadd.f32 %v1650_v42, %v1577_v38 }
 0xa0a   : > { %v5002_v52 = vmul.f32 0.70710677, %v4988_v46 }
 0xa0c   : > { %v5014_v56 = vand.u32 2147483647, %v5002_v52  ;;  %v1604_v57 = vpop.f32.mrf.mxu2  ;;  %v1627_v58 = vpop.f32.mrf.mxu3  ;;  %vm1670_vm2 = vcmp.lt.f32.partialorder %v5002_v52, 0.0 }
 0xa0d   : > { %v5016_v60 = vadd.f32 %v1604_v57, %v1575_v47  ;;  %v5018_v61 = vadd.f32 %v1627_v58, %v1576_v48  ;;  %v1676_v31 = vsel %vm1670_vm2, -1.0, %v4084_v25 }
 0xa0e   : > { %v1688_v0 = vmul.f32 0.3275911, %v5014_v56  ;;  %v1760_v36 = vsub.f32 0.0, %v5014_v56 }
 0xa0f   : > { %v5031_v2 = vmul.f32 0.70710677, %v5016_v60  ;;  %v5034_v3 = vmul.f32 0.70710677, %v5018_v61  ;;  %v1653_v4 = vpop.f32.mrf.mxu1 }
 0xa10   : > { %v1694_v5 = vadd.f32 1.0, %v1688_v0  ;;  %v5036_v7 = vadd.f32 %v1653_v4, %v1577_v38  ;;  %v1766_v50 = vmul.f32 %v1760_v36, %v5014_v56 }
 0xa11   : > { %v5048_v11 = vand.u32 2147483647, %v5031_v2  ;;  %v5051_v13 = vand.u32 2147483647, %v5034_v3  ;;  %vm1668_vm3 = vcmp.lt.f32.partialorder %v5031_v2, 0.0  ;;  %vm1669_vm4 = vcmp.lt.f32.partialorder %v5034_v3, 0.0 }
 0xa12   : > { %3933 = vrcp.f32 %v1694_v5  ;;  %v5062_v19 = vmul.f32 0.70710677, %v5036_v7  ;;  %v1774_v5 = vmul.f32 1.442695, %v1766_v50 }
 0xa13   : > { %v1686_v16 = vmul.f32 0.3275911, %v5048_v11  ;;  %v1687_v18 = vmul.f32 0.3275911, %v5051_v13  ;;  %v1759_v51 = vsub.f32 0.0, %v5051_v13 }
 0xa14   : > { %v1607_v12 = vpop.f32.mrf.mxu2  ;;  %v1630_v59 = vpop.f32.mrf.mxu3  ;;  %v5083_v26 = vand.u32 2147483647, %v5062_v19  ;;  %vm1673_vm5 = vcmp.lt.f32.partialorder %v5062_v19, 0.0 }
 0xa15   : > { %v1692_v14 = vadd.f32 1.0, %v1686_v16  ;;  %v1693_v23 = vadd.f32 1.0, %v1687_v18  ;;  %v5085_v28 = vadd.f32 %v1607_v12, %v1575_v47  ;;  %v5087_v29 = vadd.f32 %v1630_v59, %v1576_v48 }
 0xa16   : > { %v1691_v37 = vmul.f32 0.3275911, %v5083_v26  ;;  %v1758_v47 = vsub.f32 0.0, %v5048_v11  ;;  %v1765_v9 = vmul.f32 %v1759_v51, %v5051_v13 }
 0xa17   : > { %3935 = vrcp.f32 %v1692_v14  ;;  %v5104_v39 = vmul.f32 0.70710677, %v5085_v28  ;;  %v5110_v42 = vmul.f32 0.70710677, %v5087_v29  ;;  %v1658_v14 = vmul.f32 0.5, %v4988_v46 }
 0xa18   : > { %v5098_v34 = vpop.eup %3933  ;;  %3937 = vrcp.f32 %v1693_v23  ;;  %v1697_v41 = vadd.f32 1.0, %v1691_v37  ;;  %v1764_v35 = vmul.f32 %v1758_v47, %v5048_v11  ;;  %v1763_v11 = vsub.f32 0.0, %v5083_v26 }
 0xa19   : > { %v1706_v38 = vmul.f32 1.0614054, %v5098_v34  ;;  %v5120_v48 = vand.u32 2147483647, %v5104_v39  ;;  %v5128_v53 = vand.u32 2147483647, %v5110_v42 }
 0xa1a   : > { %3939 = vrcp.f32 %v1697_v41  ;;  %v1770_v59 = vmul.f32 1.442695, %v1764_v35  ;;  %v1772_v22 = vmul.f32 1.442695, %v1765_v9  ;;  %v1769_v33 = vmul.f32 %v1763_v11, %v5083_v26 }
 0xa1b   : > { %v1712_v45 = vadd.f32 -1.4531521, %v1706_v38  ;;  %v1689_v57 = vmul.f32 0.3275911, %v5120_v48  ;;  %v1690_v56 = vmul.f32 0.3275911, %v5128_v53 }
 0xa1c   : > { %v1761_v36 = vsub.f32 0.0, %v5120_v48  ;;  %v1762_v52 = vsub.f32 0.0, %v5128_v53  ;;  %vm1671_vm6 = vcmp.lt.f32.partialorder %v5104_v39, 0.0  ;;  %vm1672_vm7 = vcmp.lt.f32.partialorder %v5110_v42, 0.0 }
 0xa1d   : > { %v5130_v54 = vpop.eup %3935  ;;  %v1718_v55 = vmul.f32 %v5098_v34, %v1712_v45  ;;  %v1695_v4 = vadd.f32 1.0, %v1689_v57  ;;  %v1696_v10 = vadd.f32 1.0, %v1690_v56  ;;  %v1659_v39 = vmul.f32 0.5, %v5085_v28 }
 0xa1e   : > { %v5134_v58 = vpop.eup %3937  ;;  %v1704_v30 = vmul.f32 1.0614054, %v5130_v54  ;;  %v1767_v57 = vmul.f32 %v1761_v36, %v5120_v48 }
 0xa1f   : > { %v1724_v62 = vadd.f32 1.4214138, %v1718_v55  ;;  %v1705_v0 = vmul.f32 1.0614054, %v5134_v58  ;;  %3941 = vrcp.f32 %v1695_v4  ;;  %v1780_v55 = vmul.f32 1.442695, %v1769_v33 }
 0xa20   : > { %v1710_v8 = vadd.f32 -1.4531521, %v1704_v30  ;;  %v5142_v16 = vpop.eup %3939  ;;  %3943 = vrcp.f32 %v1696_v10  ;;  %v1768_v4 = vmul.f32 %v1762_v52, %v5128_v53  ;;  %v1776_v11 = vmul.f32 1.442695, %v1767_v57 }
 0xa21   : > { %v1730_v17 = vmul.f32 %v5098_v34, %v1724_v62  ;;  %v1711_v15 = vadd.f32 -1.4531521, %v1705_v0  ;;  %v1709_v13 = vmul.f32 1.0614054, %v5142_v16  ;;  %3945 = vpow2.f32 %v1774_v5 }
 0xa22   : > { %v1716_v18 = vmul.f32 %v5130_v54, %v1710_v8  ;;  %3947 = vpow2.f32 %v1770_v59 }
 0xa23   : > { %v1736_v12 = vadd.f32 -0.28449672, %v1730_v17  ;;  %v1717_v20 = vmul.f32 %v5134_v58, %v1711_v15  ;;  %v1715_v24 = vadd.f32 -1.4531521, %v1709_v13  ;;  %3949 = vpow2.f32 %v1772_v22 }
 0xa24   : > { %v1722_v21 = vadd.f32 1.4214138, %v1716_v18  ;;  %3951 = vpow2.f32 %v1780_v55  ;;  %v1778_v22 = vmul.f32 1.442695, %v1768_v4 }
 0xa25   : > { %v1742_v23 = vmul.f32 %v5098_v34, %v1736_v12  ;;  %v1723_v63 = vadd.f32 1.4214138, %v1717_v20  ;;  %v5157_v37 = vpop.eup %3941  ;;  %v1721_v40 = vmul.f32 %v5142_v16, %v1715_v24  ;;  %3953 = vpow2.f32 %v1776_v11 }
 0xa26   : > { %v1728_v32 = vmul.f32 %v5130_v54, %v1722_v21  ;;  %v5161_v41 = vpop.eup %3943  ;;  %v1707_v44 = vmul.f32 1.0614054, %v5157_v37  ;;  %3955 = vpow2.f32 %v1778_v22 }
 0xa27   : > { %v1748_v38 = vadd.f32 0.2548296, %v1742_v23  ;;  %v1729_v46 = vmul.f32 %v5134_v58, %v1723_v63  ;;  %v1727_v47 = vadd.f32 1.4214138, %v1721_v40  ;;  %v1708_v49 = vmul.f32 1.0614054, %v5161_v41  ;;  %v3946_v50 = vpop.eup %3945 }
 0xa28   : > { %v1734_v43 = vadd.f32 -0.28449672, %v1728_v32  ;;  %v1713_v30 = vadd.f32 -1.4531521, %v1707_v44  ;;  %v3948_v8 = vpop.eup %3947  ;;  %v1675_v44 = vsel %vm1669_vm4, -1.0, %v4084_v25 }
 0xa29   : > { %v1754_v26 = vmul.f32 %v5098_v34, %v1748_v38  ;;  %v1735_v45 = vadd.f32 -0.28449672, %v1729_v46  ;;  %v1733_v35 = vmul.f32 %v5142_v16, %v1727_v47  ;;  %v1714_v0 = vadd.f32 -1.4531521, %v1708_v49  ;;  %v3950_v15 = vpop.eup %3949 }
 0xa2a   : > { %v1740_v51 = vmul.f32 %v5130_v54, %v1734_v43  ;;  %v1719_v5 = vmul.f32 %v5157_v37, %v1713_v30  ;;  %v3952_v43 = vpop.eup %3951  ;;  %v1656_v47 = vmul.f32 0.5, %v5016_v60 }
 0xa2b   : > { %v1784_v56 = vmul.f32 %v3946_v50, %v1754_v26  ;;  %v1741_v62 = vmul.f32 %v5134_v58, %v1735_v45  ;;  %v1739_v17 = vadd.f32 -0.28449672, %v1733_v35  ;;  %v1720_v48 = vmul.f32 %v5161_v41, %v1714_v0  ;;  %v3954_v57 = vpop.eup %3953 }
 0xa2c   : > { %v1746_v34 = vadd.f32 0.2548296, %v1740_v51  ;;  %v1725_v12 = vadd.f32 1.4214138, %v1719_v5  ;;  %v1657_v50 = vmul.f32 0.5, %v5018_v61  ;;  %v1661_v61 = vmul.f32 0.5, %v5036_v7 }
 0xa2d   : > { %v1790_v9 = vsub.f32 1.0, %v1784_v56  ;;  %v1747_v10 = vadd.f32 0.2548296, %v1741_v62  ;;  %v1745_v13 = vmul.f32 %v5142_v16, %v1739_v17  ;;  %v1726_v53 = vadd.f32 1.4214138, %v1720_v48 }
 0xa2e   : > { %v1752_v18 = vmul.f32 %v5130_v54, %v1746_v34  ;;  %v1731_v23 = vmul.f32 %v5157_v37, %v1725_v12  ;;  %v1679_v56 = vsel %vm1673_vm5, -1.0, %v4084_v25  ;;  %v3956_v34 = vpop.eup %3955  ;;  %v1660_v7 = vmul.f32 0.5, %v5087_v29 }
 0xa2f   : > { %v1796_v59 = vmul.f32 %v1790_v9, %v1676_v31  ;;  %v1753_v20 = vmul.f32 %v5134_v58, %v1747_v10  ;;  %v1751_v32 = vadd.f32 0.2548296, %v1745_v13  ;;  %v1732_v54 = vmul.f32 %v5161_v41, %v1726_v53 }
 0xa30   : > { %v1782_v21 = vmul.f32 %v3948_v8, %v1752_v18  ;;  %v1674_v31 = vsel %vm1668_vm3, -1.0, %v4084_v25  ;;  %v1737_v58 = vadd.f32 -0.28449672, %v1731_v23 }
 0xa31   : > { %v1802_v63 = vadd.f32 1.0, %v1796_v59  ;;  %v1783_v24 = vmul.f32 %v3950_v15, %v1753_v20  ;;  %v1757_v46 = vmul.f32 %v5142_v16, %v1751_v32  ;;  %v1738_v40 = vadd.f32 -0.28449672, %v1732_v54 }
 0xa32   : > { %v1788_v33 = vsub.f32 1.0, %v1782_v21  ;;  %v1743_v26 = vmul.f32 %v5157_v37, %v1737_v58  ;;  %v3881_v21 = vld [vmem:[%s6268_s15] ss:$0 sm:$0xff] }
 0xa33   : > { %v1808_v36 = vmul.f32 %v1802_v63, %v1658_v14  ;;  %v1789_v38 = vsub.f32 1.0, %v1783_v24  ;;  %v1787_v2 = vmul.f32 %v3952_v43, %v1757_v46  ;;  %v1744_v14 = vmul.f32 %v5161_v41, %v1738_v40 }
 0xa34   : > { %v1794_v52 = vmul.f32 %v1788_v33, %v1674_v31  ;;  %v1749_v49 = vadd.f32 0.2548296, %v1743_v26 }
 0xa35   : > { %v1795_v45 = vmul.f32 %v1789_v38, %v1675_v44  ;;  %1922 = vmatmul.f32.vlgmr.msrb.gmra.mxu3 %v1808_v36  ;;  %v1793_v55 = vsub.f32 1.0, %v1787_v2  ;;  %v1750_v3 = vadd.f32 0.2548296, %v1744_v14  ;;  %v3578_v36 = vld [vmem:[%s6309_s6 + $0x4d8] sm:$0xff]  ;;  %v3562_v14 = vld [vmem:[%s6309_s6 + $0x3b0] sm:$0xff] }
 0xa36   : > { %v1800_v16 = vadd.f32 1.0, %v1794_v52  ;;  %v1755_v62 = vmul.f32 %v5157_v37, %v1749_v49  ;;  %v1677_v37 = vsel %vm1671_vm6, -1.0, %v4084_v25  ;;  %2064 = vmatpush.msrb.mxu0 %v3578_v36  ;;  %v3576_v49 = vld [vmem:[%s6309_s6 + $0x4c8] sm:$0xff] }
 0xa37   : > { %v1801_v51 = vadd.f32 1.0, %v1795_v45  ;;  %v1799_v35 = vmul.f32 %v1793_v55, %v1679_v56  ;;  %v1756_v0 = vmul.f32 %v5161_v41, %v1750_v3  ;;  %v1678_v41 = vsel %vm1672_vm7, -1.0, %v4084_v25  ;;  %v3559_v55 = vld [vmem:[%s6309_s6 + $0x398] sm:$0xff]  ;;  %v3557_v56 = vld [vmem:[%s6309_s6 + $0x388] sm:$0xff] }
 0xa38   : > { %v1806_v30 = vmul.f32 %v1800_v16, %v1656_v47  ;;  %v1785_v60 = vmul.f32 %v3954_v57, %v1755_v62  ;;  %v3577_v47 = vld [vmem:[%s6309_s6 + $0x4d0] sm:$0xff]  ;;  %v3561_v16 = vld [vmem:[%s6309_s6 + $0x3a8] sm:$0xff]  ;;  %v3574_v3 = vld [vmem:[%s6309_s6 + $0x4b8] sm:$0xff] }
 0xa39   : > { %v1807_v19 = vmul.f32 %v1801_v51, %v1657_v50  ;;  %v1805_v4 = vadd.f32 1.0, %v1799_v35  ;;  %v1786_v5 = vmul.f32 %v3956_v34, %v1756_v0  ;;  %2065 = vmatpush.msrb.mxu0 %v3577_v47  ;;  %v3560_v50 = vld [vmem:[%s6309_s6 + $0x3a0] sm:$0xff]  ;;  %v3558_v57 = vld [vmem:[%s6309_s6 + $0x390] sm:$0xff]  ;;  %v3572_v62 = vld [vmem:[%s6309_s6 + $0x4a8] sm:$0xff] }
 0xa3a   : > { %1876 = vmatmul.f32.vlgmr.msra.gmra.mxu0 %v1806_v30  ;;  %v1791_v8 = vsub.f32 1.0, %v1785_v60  ;;  %v3575_v51 = vld [vmem:[%s6309_s6 + $0x4c0] sm:$0xff]  ;;  %v3573_v30 = vld [vmem:[%s6309_s6 + $0x4b0] sm:$0xff]  ;;  %v3555_v0 = vld [vmem:[%s6309_s6 + $0x378] sm:$0xff] }
 0xa3b   : > { %1899 = vmatmul.f32.vlgmr.msrb.gmra.mxu2 %v1807_v19  ;;  %v1811_v9 = vmul.f32 %v1805_v4, %v1661_v61  ;;  %v1792_v10 = vsub.f32 1.0, %v1786_v5  ;;  %2066 = vmatpush.msrb.mxu0 %v3576_v49  ;;  %v3556_v19 = vld [vmem:[%s6309_s6 + $0x380] sm:$0xff]  ;;  %v3570_v34 = vld [vmem:[%s6309_s6 + $0x498] sm:$0xff]  ;;  %v3554_v60 = vld [vmem:[%s6309_s6 + $0x370] sm:$0xff] }
 0xa3c   : > { %v1797_v17 = vmul.f32 %v1791_v8, %v1677_v37  ;;  %v3571_v35 = vld [vmem:[%s6309_s6 + $0x4a0] sm:$0xff]  ;;  %v3569_v61 = vld [vmem:[%s6309_s6 + $0x490] sm:$0xff]  ;;  %v3553_v4 = vld [vmem:[%s6309_s6 + $0x368] sm:$0xff] }
 0xa3d   : > { %1925 = vmatmul.f32.gmra.mxu3 %v1811_v9  ;;  %v1798_v48 = vmul.f32 %v1792_v10, %v1678_v41  ;;  %2067 = vmatpush.msrb.mxu0 %v3575_v51  ;;  %v3568_v5 = vld [vmem:[%s6309_s6 + $0x488] sm:$0xff]  ;;  %v3552_v8 = vld [vmem:[%s6309_s6 + $0x360] sm:$0xff]  ;;  %v3593_v37 = vld [vmem:[%s6309_s6 + $0x5f8] sm:$0xff] }
 0xa3e   : > { %v1803_v15 = vadd.f32 1.0, %v1797_v17  ;;  %v3567_v9 = vld [vmem:[%s6309_s6 + $0x480] sm:$0xff]  ;;  %v3618_v10 = vld [vmem:[%s6309_s6 + $0x418] sm:$0xff]  ;;  %v3592_v17 = vld [vmem:[%s6309_s6 + $0x5f0] sm:$0xff] }
 0xa3f   : > { %v1804_v18 = vadd.f32 1.0, %v1798_v48  ;;  %2068 = vmatpush.msrb.mxu0 %v3574_v3  ;;  %v3617_v41 = vld [vmem:[%s6309_s6 + $0x410] sm:$0xff]  ;;  %v3591_v48 = vld [vmem:[%s6309_s6 + $0x5e8] sm:$0xff]  ;;  %v3882_v47 = vld [vmem:[%s6310_s26 + $0x1] ss:$0 sm:$0xff] }
 0xa40   : > { %v1809_v42 = vmul.f32 %v1803_v15, %v1659_v39  ;;  %v3616_v39 = vld [vmem:[%s6309_s6 + $0x408] sm:$0xff] }
 0xa41   : > { %v1810_v11 = vmul.f32 %v1804_v18, %v1660_v7  ;;  %2069 = vmatpush.msrb.mxu0 %v3573_v30  ;;  %v3590_v18 = vld [vmem:[%s6309_s6 + $0x5e0] sm:$0xff] }
 0xa42   : > { %1879 = vmatmul.f32.gmra.mxu0 %v1809_v42  ;;  %v3615_v42 = vld [vmem:[%s6309_s6 + $0x400] sm:$0xff] }
 0xa43   : > { %1902 = vmatmul.f32.gmra.mxu2 %v1810_v11  ;;  %2070 = vmatpush.msrb.mxu0 %v3572_v62 }
 0xa45   : > { %2071 = vmatpush.msrb.mxu0 %v3571_v35 }
 0xa47   : > { %2072 = vmatpush.msrb.mxu0 %v3570_v34 }
 0xa49   : > { %2073 = vmatpush.msrb.mxu0 %v3569_v61 }
 0xa4b   : > { %2074 = vmatpush.msrb.mxu0 %v3568_v5 }
 0xa4d   : > { %2075 = vmatpush.msrb.mxu0 %v3567_v9 }
 0xa4f   : > { %2237 = vmatpush.msra.mxu0 %v3618_v10 }
 0xa51   : > { %2238 = vmatpush.msra.mxu0 %v3617_v41  ;;  %v3632_v41 = vld [vmem:[%s6309_s6 + $0x530] sm:$0xff] }
 0xa53   : > { %2239 = vmatpush.msra.mxu0 %v3616_v39  ;;  %v3630_v39 = vld [vmem:[%s6309_s6 + $0x520] sm:$0xff] }
 0xa55   : > { %2240 = vmatpush.msra.mxu0 %v3615_v42 }
 0xab7   : > { %v1877_v12 = vpop.f32.mrf.mxu0 }
 0xab8   : > { %v1923_v13 = vpop.f32.mrf.mxu3 }
 0xabe   : > { %v1900_v59 = vpop.f32.mrf.mxu2 }
 0xabf   : > { %v1901_v20 = vadd.f32 %v1900_v59, %v1877_v12  ;;  %v1880_v23 = vpop.f32.mrf.mxu0  ;;  %v3589_v12 = vld [vmem:[%s6309_s6 + $0x5d8] sm:$0xff] }
 0xac0   : > { %v1926_v32 = vpop.f32.mrf.mxu3  ;;  %v3614_v59 = vld [vmem:[%s6309_s6 + $0x3f8] sm:$0xff] }
 0xac1   : > { %v1924_v53 = vadd.f32 %v1923_v13, %v1901_v20  ;;  %2241 = vmatpush.msra.mxu0 %v3614_v59  ;;  %v3588_v20 = vld [vmem:[%s6309_s6 + $0x5d0] sm:$0xff]  ;;  %v3627_v59 = vld [vmem:[%s6309_s6 + $0x508] sm:$0xff] }
 0xac2   : > { %v3613_v13 = vld [vmem:[%s6309_s6 + $0x3f0] sm:$0xff] }
 0xac3   : > { %v1929_v22 = vadd.f32 %v1924_v53, %v4772_v1  ;;  %v3563_v1 = vld [vmem:[%s6309_s6 + $0x3b8] sm:$0xff]  ;;  %v3587_v53 = vld [vmem:[%s6309_s6 + $0x5c8] sm:$0xff]  ;;  %2242 = vmatpush.msra.mxu0 %v3613_v13  ;;  %v3626_v13 = vld [vmem:[%s6309_s6 + $0x500] sm:$0xff] }
 0xac4   : > { %2023 = vmatpush.msra.mxu1 %v3563_v1 }
 0xac5   : > { %v5207_v28 = vadd.f32 %v3881_v21, %v1929_v22  ;;  %v3586_v22 = vld [vmem:[%s6309_s6 + $0x5c0] sm:$0xff] }
 0xac6   : > { %v1903_v63 = vpop.f32.mrf.mxu2  ;;  %2024 = vmatpush.msra.mxu1 %v3562_v14 }
 0xac7   : > { %v1941_v29 = vsel %vm675_vm1, %v5207_v28, 0.0  ;;  %v1904_v24 = vadd.f32 %v1903_v63, %v1880_v23  ;;  %v3585_v23 = vld [vmem:[%s6309_s6 + $0x5b8] sm:$0xff] }
 0xac8   : > { %1942 = vadd.xlane.f32.xlu2 %v1941_v29  ;;  %2025 = vmatpush.msra.mxu1 %v3561_v16  ;;  %v3611_v29 = vld [vmem:[%s6309_s6 + $0x3e0] sm:$0xff]  ;;  %v3610_v63 = vld [vmem:[%s6309_s6 + $0x3d8] sm:$0xff] }
 0xac9   : > { %v1927_v54 = vadd.f32 %v1926_v32, %v1904_v24 }
 0xaca   : > { %2026 = vmatpush.msra.mxu1 %v3560_v50  ;;  %v3883_v50 = vld [vmem:[%s6311_s5 + $0x1] ss:$0 sm:$0xff]  ;;  %s3315_s5 = scalar_lea.sflag [#allocation3], %s620_s20 }
 0xacb   : > { %v1930_v31 = vadd.f32 %v1927_v54, %v4777_v6 }
 0xacc   : > { %2027 = vmatpush.msra.mxu1 %v3559_v55 }
 0xacd   : > { %v5212_v33 = vadd.f32 %v3881_v21, %v1930_v31  ;;  %v3612_v21 = vld [vmem:[%s6309_s6 + $0x3e8] sm:$0xff]  ;;  %v3584_v31 = vld [vmem:[%s6309_s6 + $0x5b0] sm:$0xff] }
 0xace   : > { %2028 = vmatpush.msra.mxu1 %v3558_v57  ;;  %2243 = vmatpush.msra.mxu0 %v3612_v21  ;;  %v3624_v21 = vld [vmem:[%s6309_s6 + $0x4f0] sm:$0xff] }
 0xacf   : > { %v1944_v58 = vsel %vm675_vm1, %v5212_v33, 0.0 }
 0xad0   : > { %1945 = vadd.xlane.f32.xlu0 %v1944_v58  ;;  %2029 = vmatpush.msra.mxu1 %v3557_v56  ;;  %v3609_v58 = vld [vmem:[%s6309_s6 + $0x3d0] sm:$0xff] }
 0xad1   : > { %2244 = vmatpush.msra.mxu0 %v3611_v29  ;;  %v3622_v29 = vld [vmem:[%s6309_s6 + $0x4e0] sm:$0xff] }
 0xad2   : > { %2030 = vmatpush.msra.mxu1 %v3556_v19 }
 0xad3   : > { %2245 = vmatpush.msra.mxu0 %v3610_v63 }
 0xad4   : > { %2031 = vmatpush.msra.mxu1 %v3555_v0 }
 0xad5   : > { %2246 = vmatpush.msra.mxu0 %v3609_v58  ;;  %v3888_v58 = vld [vmem:[%s6312_s7 + $0xd] ss:$0 sm:$0xff] }
 0xad6   : > { %2032 = vmatpush.msra.mxu1 %v3554_v60  ;;  %v3885_v60 = vld [vmem:[%s6312_s7 + $0xc] ss:$0 sm:$0xff] }
 0xad8   : > { %2033 = vmatpush.msra.mxu1 %v3553_v4 }
 0xada   : > { %2034 = vmatpush.msra.mxu1 %v3552_v8  ;;  %v3884_v8 = vld [vmem:[%s6312_s7 + $0x9] ss:$0 sm:$0xff] }
 0xadc   : > { %2105 = vmatpush.msrb.mxu1 %v3593_v37  ;;  %v3633_v37 = vld [vmem:[%s6309_s6 + $0x538] sm:$0xff] }
 0xade   : > { %2106 = vmatpush.msrb.mxu1 %v3592_v17 }
 0xae0   : > { %2107 = vmatpush.msrb.mxu1 %v3591_v48  ;;  %v3631_v48 = vld [vmem:[%s6309_s6 + $0x528] sm:$0xff] }
 0xae2   : > { %2108 = vmatpush.msrb.mxu1 %v3590_v18 }
 0xae4   : > { %2109 = vmatpush.msrb.mxu1 %v3589_v12 }
 0xae6   : > { %2110 = vmatpush.msrb.mxu1 %v3588_v20 }
 0xae8   : > { %2111 = vmatpush.msrb.mxu1 %v3587_v53  ;;  %v3625_v53 = vld [vmem:[%s6309_s6 + $0x4f8] sm:$0xff] }
 0xaea   : > { %2112 = vmatpush.msrb.mxu1 %v3586_v22  ;;  %v3623_v22 = vld [vmem:[%s6309_s6 + $0x4e8] sm:$0xff] }
 0xaec   : > { %2113 = vmatpush.msrb.mxu1 %v3585_v23 }
 0xaee   : > { %2114 = vmatpush.msrb.mxu1 %v3584_v31 }
 0xb3b   : > { %v1943_v38 = vpop.xlane.xlu2 %1942 }
 0xb3c   : > { %v1947_v46 = vmul.f32 %v1943_v38, %v4285_v27  ;;  %v3583_v38 = vld [vmem:[%s6309_s6 + $0x5a8] sm:$0xff] }
 0xb3d   : > { %2115 = vmatpush.msrb.mxu1 %v3583_v38  ;;  %v3887_v38 = vld [vmem:[%s6312_s7 + $0xa] ss:$0 sm:$0xff] }
 0xb3e   : > { %v5224_v6 = vsub.f32 %v5207_v28, %v1947_v46  ;;  %v3608_v46 = vld [vmem:[%s6309_s6 + $0x3c8] sm:$0xff] }
 0xb3f   : > { %2247 = vmatpush.msra.mxu0 %v3608_v46 }
 0xb40   : > { %v1951_v40 = vmul.f32 %v5224_v6, %v5224_v6 }
 0xb42   : > { %v1953_v43 = vsel %vm675_vm1, %v1951_v40, 0.0 }
 0xb43   : > { %1954 = vadd.xlane.f32.xlu1 %v1953_v43  ;;  %v1946_v52 = vpop.xlane.xlu0 %1945  ;;  %v3582_v43 = vld [vmem:[%s6309_s6 + $0x5a0] sm:$0xff] }
 0xb44   : > { %v1948_v44 = vmul.f32 %v1946_v52, %v4285_v27  ;;  %v3607_v52 = vld [vmem:[%s6309_s6 + $0x3c0] sm:$0xff]  ;;  %2116 = vmatpush.msrb.mxu1 %v3582_v43 }
 0xb45   : > { %2248 = vmatpush.msra.mxu0 %v3607_v52 }
 0xb46   : > { %v5231_v26 = vsub.f32 %v5212_v33, %v1948_v44 }
 0xb48   : > { %v1952_v45 = vmul.f32 %v5231_v26, %v5231_v26 }
 0xb4a   : > { %v1956_v2 = vsel %vm675_vm1, %v1952_v45, 0.0 }
 0xb4b   : > { %1957 = vadd.xlane.f32.xlu2 %v1956_v2 }
 0xbb6   : > { %v1955_v15 = vpop.xlane.xlu1 %1954 }
 0xbb7   : > { %v1959_v7 = vmul.f32 %v1955_v15, %v4285_v27  ;;  %v3629_v15 = vld [vmem:[%s6309_s6 + $0x518] sm:$0xff] }
 0xbb9   : > { %v1961_v11 = vadd.f32 1e-05, %v1959_v7  ;;  %v3886_v7 = vld [vmem:[%s6312_s7 + $0xf] ss:$0 sm:$0xff] }
 0xbbb   : > { %3957 = vrsqrt.f32 %v1961_v11  ;;  %vm1969_vm11 = vweird.f32 %v1961_v11 }
 0xbbe   : > { %v1958_v24 = vpop.xlane.xlu2 %1957 }
 0xbbf   : > { %v1960_v54 = vmul.f32 %v1958_v24, %v4285_v27 }
 0xbc1   : > { %v3958_v32 = vpop.eup %3957  ;;  %v1962_v36 = vadd.f32 1e-05, %v1960_v54 }
 0xbc2   : > { %v1964_v1 = vmul.f32 %v3958_v32, %v1961_v11  ;;  %vm1970_vm8 = vweird.f32 %v3958_v32  ;;  %v3628_v11 = vld [vmem:[%s6309_s6 + $0x510] sm:$0xff] }
 0xbc3   : > { %3959 = vrsqrt.f32 %v1962_v36  ;;  %vm1971_vm12 = vmor %vm1969_vm11, %vm1970_vm8  ;;  %vm1979_vm14 = vweird.f32 %v1962_v36 }
 0xbc4   : > { %v1965_v40 = vmul.f32 %v3958_v32, %v1964_v1 }
 0xbc6   : > { %v1966_v44 = vmul.f32 0.5, %v1965_v40 }
 0xbc8   : > { %v1967_v45 = vsub.f32 1.5, %v1966_v44 }
 0xbc9   : > { %v3960_v14 = vpop.eup %3959 }
 0xbca   : > { %v1968_v2 = vmul.f32 %v3958_v32, %v1967_v45  ;;  %v1974_v49 = vmul.f32 %v3960_v14, %v1962_v36  ;;  %vm1980_vm13 = vweird.f32 %v3960_v14 }
 0xbcb   : > { %vm1981_vm15 = vmor %vm1979_vm14, %vm1980_vm13 }
 0xbcc   : > { %v1972_v16 = vsel %vm1971_vm12, %v3958_v32, %v1968_v2  ;;  %v1975_v55 = vmul.f32 %v3960_v14, %v1974_v49 }
 0xbcd   : > { %v1983_v51 = vmul.f32 %v1972_v16, %v5224_v6 }
 0xbce   : > { %v1976_v57 = vmul.f32 0.5, %v1975_v55 }
 0xbcf   : > { %v1988_v3 = vmul.f32 %v3882_v47, %v1983_v51 }
 0xbd0   : > { %v1977_v56 = vsub.f32 1.5, %v1976_v57  ;;  %v3647_v57 = vld [vmem:[%s6309_s6 + $0x650] sm:$0xff] }
 0xbd1   : > { %v5383_v30 = vadd.f32 %v3883_v50, %v1988_v3  ;;  %v3648_v3 = vld [vmem:[%s6309_s6 + $0x658] sm:$0xff] }
 0xbd2   : > { %v1978_v62 = vmul.f32 %v3960_v14, %v1977_v56 }
 0xbd3   : > { %3565 = vmatmul.msk.f32.vlgmr.msra.gmra.mxu1 %vm675_vm1, %v5383_v30  ;;  %3580 = vmatmul.msk.f32.vlgmr.msrb.gmra.mxu0 %vm675_vm1, %v5383_v30 }
 0xbd4   : > { %v1982_v19 = vsel %vm1981_vm15, %v3960_v14, %v1978_v62 }
 0xbd5   : > { %v1984_v35 = vmul.f32 %v1982_v19, %v5231_v26 }
 0xbd7   : > { %v1989_v6 = vmul.f32 %v3882_v47, %v1984_v35 }
 0xbd9   : > { %v5390_v0 = vadd.f32 %v3883_v50, %v1989_v6  ;;  %v3646_v6 = vld [vmem:[%s6309_s6 + $0x648] sm:$0xff] }
 0xbdb   : > { %3566 = vmatmul.msk.f32.gmra.mxu1 %vm675_vm1, %v5390_v0  ;;  %3581 = vmatmul.msk.f32.gmra.mxu0 %vm675_vm1, %v5390_v0 }
 0xbe3   : > { %3595 = vmatmul.msk.f32.vlgmr.msrb.gmra.mxu1 %vm675_vm1, %v5383_v30  ;;  %3620 = vmatmul.msk.f32.vlgmr.msra.gmra.mxu0 %vm675_vm1, %v5383_v30 }
 0xbeb   : > { %3596 = vmatmul.msk.f32.gmra.mxu1 %vm675_vm1, %v5390_v0  ;;  %3621 = vmatmul.msk.f32.gmra.mxu0 %vm675_vm1, %v5390_v0 }
 0xc50   : > { %v2036_v26 = vpop.f32.mrf.mxu1  ;;  %v2077_v34 = vpop.f32.mrf.mxu0 }
 0xc51   : > { %v2078_v9 = vadd.f32 %v3885_v60, %v2077_v34  ;;  %v2037_v10 = vadd.f32 %v3884_v8, %v2036_v26  ;;  %v3645_v26 = vld [vmem:[%s6309_s6 + $0x640] sm:$0xff]  ;;  %v3644_v34 = vld [vmem:[%s6309_s6 + $0x638] sm:$0xff] }
 0xc58   : > { %v2039_v61 = vpop.f32.mrf.mxu1  ;;  %v2080_v4 = vpop.f32.mrf.mxu0 }
 0xc59   : > { %v2081_v5 = vadd.f32 %v3885_v60, %v2080_v4  ;;  %v2040_v18 = vadd.f32 %v3884_v8, %v2039_v61  ;;  %v3643_v60 = vld [vmem:[%s6309_s6 + $0x630] sm:$0xff]  ;;  %v3642_v61 = vld [vmem:[%s6309_s6 + $0x628] sm:$0xff]  ;;  %v3641_v4 = vld [vmem:[%s6309_s6 + $0x620] sm:$0xff] }
 0xc5a   : > { %v3639_v8 = vld [vmem:[%s6309_s6 + $0x610] sm:$0xff] }
 0xc5b   : > { %3597 = vmatpush.xpose.msk.msra.mxu2 %vm864_vm9, %v2081_v5  ;;  %v3640_v5 = vld [vmem:[%s6309_s6 + $0x618] sm:$0xff] }
 0xc5f   : > { %3598 = vmatpush.xpose.msk.msra.mxu2 %vm864_vm9, %v2078_v9  ;;  %v3638_v9 = vld [vmem:[%s6309_s6 + $0x608] sm:$0xff] }
 0xc60   : > { %v2118_v17 = vpop.f32.mrf.mxu1  ;;  %v2250_v31 = vpop.f32.mrf.mxu0 }
 0xc61   : > { %v2119_v20 = vadd.f32 %v3886_v7, %v2118_v17  ;;  %v2251_v43 = vadd.f32 %v3887_v38, %v2250_v31 }
 0xc62   : > { %3599 = vmatmul.msk.f32.vlgmr.msra.gmra.mxu2 %vm864_vm9, %v2037_v10 }
 0xc63   : > { %2278 = vmatpush.msrb.mxu2 %v3633_v37  ;;  %v3637_v37 = vld [vmem:[%s6309_s6 + $0x600] sm:$0xff] }
 0xc65   : > { %2279 = vmatpush.msrb.mxu2 %v3632_v41 }
 0xc67   : > { %2280 = vmatpush.msrb.mxu2 %v3631_v48 }
 0xc68   : > { %v2121_v42 = vpop.f32.mrf.mxu1  ;;  %v2253_v46 = vpop.f32.mrf.mxu0 }
 0xc69   : > { %2281 = vmatpush.msrb.mxu2 %v3630_v39  ;;  %v2122_v12 = vadd.f32 %v3886_v7, %v2121_v42  ;;  %v2254_v52 = vadd.f32 %v3887_v38, %v2253_v46  ;;  %v3677_v39 = vld [vmem:[%s6309_s6 + $0x478] sm:$0xff]  ;;  %v3675_v7 = vld [vmem:[%s6309_s6 + $0x468] sm:$0xff] }
 0xc6a   : > { %3600 = vmatmul.msk.f32.gmra.mxu2 %vm864_vm9, %v2040_v18  ;;  %v3674_v18 = vld [vmem:[%s6309_s6 + $0x460] sm:$0xff] }
 0xc6b   : > { %2282 = vmatpush.msrb.mxu2 %v3629_v15  ;;  %2201 = vmatpush.msra.mxu3 %v2122_v12  ;;  %v3676_v15 = vld [vmem:[%s6309_s6 + $0x470] sm:$0xff]  ;;  %v3673_v12 = vld [vmem:[%s6309_s6 + $0x458] sm:$0xff] }
 0xc6d   : > { %2283 = vmatpush.msrb.mxu2 %v3628_v11  ;;  %2202 = vmatpush.msra.mxu3 %v2119_v20  ;;  %v3671_v20 = vld [vmem:[%s6309_s6 + $0x448] sm:$0xff] }
 0xc6f   : > { %2284 = vmatpush.msrb.mxu2 %v3627_v59  ;;  %2319 = vmatpush.msrb.mxu3 %v3648_v3  ;;  %v3672_v59 = vld [vmem:[%s6309_s6 + $0x450] sm:$0xff] }
 0xc71   : > { %2285 = vmatpush.msrb.mxu2 %v3626_v13  ;;  %2320 = vmatpush.msrb.mxu3 %v3647_v57  ;;  %v3670_v13 = vld [vmem:[%s6309_s6 + $0x440] sm:$0xff] }
 0xc73   : > { %2286 = vmatpush.msrb.mxu2 %v3625_v53  ;;  %2321 = vmatpush.msrb.mxu3 %v3646_v6  ;;  %v3669_v53 = vld [vmem:[%s6309_s6 + $0x438] sm:$0xff] }
 0xc75   : > { %2287 = vmatpush.msrb.mxu2 %v3624_v21  ;;  %2322 = vmatpush.msrb.mxu3 %v3645_v26  ;;  %v3606_v21 = vld [vmem:[%s6261_s8 + $0x78] sm:$0xff]  ;;  %v3687_v26 = vld [vmem:[%s6309_s6 + $0x570] sm:$0xff] }
 0xc77   : > { %2288 = vmatpush.msrb.mxu2 %v3623_v22  ;;  %2323 = vmatpush.msrb.mxu3 %v3644_v34  ;;  %v3605_v22 = vld [vmem:[%s6261_s8 + $0x70] sm:$0xff] }
 0xc79   : > { %2289 = vmatpush.msrb.mxu2 %v3622_v29  ;;  %2324 = vmatpush.msrb.mxu3 %v3643_v60  ;;  %v3668_v29 = vld [vmem:[%s6309_s6 + $0x430] sm:$0xff]  ;;  %v3686_v60 = vld [vmem:[%s6309_s6 + $0x568] sm:$0xff] }
 0xc7a   : > { %3635 = vmatmul.msk.f32.vlgmr.msrb.gmra.mxu2 %vm675_vm1, %v5383_v30 }
 0xc7b   : > { %2325 = vmatpush.msrb.mxu3 %v3642_v61  ;;  %v3685_v61 = vld [vmem:[%s6309_s6 + $0x560] sm:$0xff] }
 0xc7d   : > { %2326 = vmatpush.msrb.mxu3 %v3641_v4  ;;  %v3684_v4 = vld [vmem:[%s6309_s6 + $0x558] sm:$0xff] }
 0xc7f   : > { %2327 = vmatpush.msrb.mxu3 %v3640_v5  ;;  %v3683_v5 = vld [vmem:[%s6309_s6 + $0x550] sm:$0xff] }
 0xc81   : > { %2328 = vmatpush.msrb.mxu3 %v3639_v8  ;;  %v3682_v8 = vld [vmem:[%s6309_s6 + $0x548] sm:$0xff] }
 0xc82   : > { %3636 = vmatmul.msk.f32.gmra.mxu2 %vm675_vm1, %v5390_v0 }
 0xc83   : > { %2329 = vmatpush.msrb.mxu3 %v3638_v9  ;;  %v3681_v9 = vld [vmem:[%s6309_s6 + $0x540] sm:$0xff] }
 0xc85   : > { %2330 = vmatpush.msrb.mxu3 %v3637_v37  ;;  %v3661_v37 = vld [vmem:[%s6261_s8 + $0x98] sm:$0xff] }
 0xce5   : > { %v2153_v23 = vpop.f32.mrf.mxu2 }
 0xce6   : > { %v2159_v63 = vsel %vm900_vm10, %v2153_v23, -inf }
 0xce7   : > { %2160 = vmax.xlane.f32.xlu0 %v2159_v63  ;;  %v3667_v63 = vld [vmem:[%s6309_s6 + $0x428] sm:$0xff] }
 0xced   : > { %v2156_v24 = vpop.f32.mrf.mxu2 }
 0xcee   : > { %v2162_v32 = vsel %vm900_vm10, %v2156_v24, -inf }
 0xcef   : > { %2163 = vmax.xlane.f32.xlu1 %v2162_v32 }
 0xcfd   : > { %v2291_v54 = vpop.f32.mrf.mxu2 }
 0xcfe   : > { %v2292_v40 = vadd.f32 %v3888_v58, %v2291_v54 }
 0xd05   : > { %v2294_v1 = vpop.f32.mrf.mxu2 }
 0xd06   : > { %v2295_v36 = vadd.f32 %v3888_v58, %v2294_v1 }
 0xd08   : > { %3652 = vmatpush.xpose.msk.msra.mxu1 %vm864_vm9, %v2295_v36  ;;  %3822 = vmatpush.xpose.msk.msra.mxu2 %vm864_vm9, %v2295_v36 }
 0xd0c   : > { %3653 = vmatpush.xpose.msk.msra.mxu1 %vm864_vm9, %v2292_v40  ;;  %3823 = vmatpush.xpose.msk.msra.mxu2 %vm864_vm9, %v2292_v40 }
 0xd0f   : > { %3654 = vmatmul.msk.f32.vlgmr.msra.gmra.mxu1 %vm864_vm9, %v2251_v43  ;;  %3655 = vmatmul.msk.f32.vlgmr.msra.gmra.mxu2 %vm864_vm9, %v2254_v52  ;;  %v3603_v52 = vld [vmem:[%s6261_s8 + $0x60] sm:$0xff] }
 0xd10   : > { %2476 = vmatpush.msrb.mxu2 %v3606_v21  ;;  %2447 = vmatpush.msrb.mxu1 %v3661_v37 }
 0xd12   : > { %2477 = vmatpush.msrb.mxu2 %v3605_v22 }
 0xd5a   : > { %v2161_v44 = vpop.xlane.xlu0 %2160 }
 0xd5b   : > { %v2165_v45 = vsub.f32 %v2153_v23, %v2161_v44  ;;  %v3604_v23 = vld [vmem:[%s6261_s8 + $0x68] sm:$0xff] }
 0xd5c   : > { %2478 = vmatpush.msrb.mxu2 %v3604_v23  ;;  %v3891_v23 = vld [vmem:[%s6312_s7 + $0xe] ss:$0 sm:$0xff] }
 0xd5d   : > { %v2167_v2 = vmul.f32 1.442695, %v2165_v45 }
 0xd5e   : > { %2479 = vmatpush.msrb.mxu2 %v3603_v52  ;;  %v3892_v52 = vld [vmem:[%s6312_s7 + $0x11] ss:$0 sm:$0xff] }
 0xd5f   : > { %3961 = vpow2.f32 %v2167_v2 }
 0xd62   : > { %v2164_v14 = vpop.xlane.xlu1 %2163 }
 0xd63   : > { %v2166_v47 = vsub.f32 %v2156_v24, %v2164_v14  ;;  %v3666_v24 = vld [vmem:[%s6309_s6 + $0x420] sm:$0xff]  ;;  %v3889_v14 = vld [vmem:[%s6312_s7 + $0x10] ss:$0 sm:$0xff] }
 0xd65   : > { %v3962_v16 = vpop.eup %3961  ;;  %v2169_v49 = vmul.f32 1.442695, %v2166_v47 }
 0xd66   : > { %v2171_v50 = vsel %vm900_vm10, %v3962_v16, 0.0 }
 0xd67   : > { %3963 = vpow2.f32 %v2169_v49  ;;  %2172 = vadd.xlane.f32.xlu2 %v2171_v50 }
 0xd6d   : > { %v3964_v51 = vpop.eup %3963 }
 0xd6e   : > { %v2174_v55 = vsel %vm900_vm10, %v3964_v51, 0.0 }
 0xd6f   : > { %2175 = vadd.xlane.f32.xlu0 %v2174_v55  ;;  %v3691_v55 = vld [vmem:[%s6309_s6 + $0x590] sm:$0xff] }
 0xd8c   : > { %v5479_v56 = vpop.f32.mrf.mxu1 }
 0xd8d   : > { %v2373_v62 = vsel %vm900_vm10, %v5479_v56, -inf }
 0xd8e   : > { %2374 = vmax.xlane.f32.xlu1 %v2373_v62  ;;  %v3690_v62 = vld [vmem:[%s6309_s6 + $0x588] sm:$0xff] }
 0xd92   : > { %v5483_v19 = vpop.f32.mrf.mxu2 }
 0xd93   : > { %v2376_v35 = vsel %vm900_vm10, %v5483_v19, -inf }
 0xd94   : > { %2377 = vmax.xlane.f32.xlu2 %v2376_v35  ;;  %v3688_v35 = vld [vmem:[%s6309_s6 + $0x578] sm:$0xff] }
 0xdda   : > { %v2173_v10 = vpop.xlane.xlu2 %2172 }
 0xddb   : > { %3965 = vrcp.f32 %v2173_v10  ;;  %v3660_v10 = vld [vmem:[%s6261_s8 + $0x90] sm:$0xff] }
 0xddc   : > { %2448 = vmatpush.msrb.mxu1 %v3660_v10  ;;  %v3717_v10 = vld [vmem:[%s6261_s8 + $0xa0] sm:$0xff] }
 0xde1   : > { %v3966_v17 = vpop.eup %3965 }
 0xde2   : > { %v2179_v41 = vmul.f32 %v3966_v17, %v3962_v16  ;;  %v2176_v48 = vpop.xlane.xlu0 %2175  ;;  %v3659_v17 = vld [vmem:[%s6261_s8 + $0x88] sm:$0xff] }
 0xde3   : > { %3967 = vrcp.f32 %v2176_v48  ;;  %2449 = vmatpush.msrb.mxu1 %v3659_v17  ;;  %v3707_v48 = vld [vmem:[%s6309_s6 + $0x6b8] sm:$0xff] }
 0xde4   : > { %3601 = vmatmul.msk.f32.vlgmr.msra.gmra.mxu3 %vm900_vm10, %v2179_v41  ;;  %v3658_v41 = vld [vmem:[%s6261_s8 + $0x80] sm:$0xff] }
 0xde5   : > { %2509 = vmatpush.msra.mxu3 %v3677_v39  ;;  %2450 = vmatpush.msrb.mxu1 %v3658_v41  ;;  %v3706_v39 = vld [vmem:[%s6309_s6 + $0x6b0] sm:$0xff] }
 0xde7   : > { %2510 = vmatpush.msra.mxu3 %v3676_v15  ;;  %2591 = vmatpush.msra.mxu1 %v3707_v48  ;;  %v3705_v15 = vld [vmem:[%s6309_s6 + $0x6a8] sm:$0xff] }
 0xde9   : > { %v3968_v42 = vpop.eup %3967  ;;  %2511 = vmatpush.msra.mxu3 %v3675_v7  ;;  %2592 = vmatpush.msra.mxu1 %v3706_v39  ;;  %v3704_v7 = vld [vmem:[%s6309_s6 + $0x6a0] sm:$0xff] }
 0xdea   : > { %v2180_v11 = vmul.f32 %v3968_v42, %v3964_v51  ;;  %v3692_v51 = vld [vmem:[%s6309_s6 + $0x598] sm:$0xff]  ;;  %v3702_v42 = vld [vmem:[%s6309_s6 + $0x690] sm:$0xff] }
 0xdeb   : > { %2512 = vmatpush.msra.mxu3 %v3674_v18  ;;  %2593 = vmatpush.msra.mxu1 %v3705_v15  ;;  %v3703_v18 = vld [vmem:[%s6309_s6 + $0x698] sm:$0xff] }
 0xdec   : > { %3602 = vmatmul.msk.f32.gmra.mxu3 %vm900_vm10, %v2180_v11  ;;  %v3701_v11 = vld [vmem:[%s6309_s6 + $0x688] sm:$0xff] }
 0xded   : > { %2513 = vmatpush.msra.mxu3 %v3673_v12  ;;  %2594 = vmatpush.msra.mxu1 %v3704_v7  ;;  %v3700_v12 = vld [vmem:[%s6309_s6 + $0x680] sm:$0xff] }
 0xdee   : > { %v3893_v7 = vld [vmem:[%s6262_s9 + $0x1] ss:$0 sm:$0xff] }
 0xdef   : > { %2514 = vmatpush.msra.mxu3 %v3672_v59  ;;  %2595 = vmatpush.msra.mxu1 %v3703_v18  ;;  %v3699_v59 = vld [vmem:[%s6309_s6 + $0x678] sm:$0xff] }
 0xdf1   : > { %2515 = vmatpush.msra.mxu3 %v3671_v20  ;;  %2596 = vmatpush.msra.mxu1 %v3702_v42  ;;  %v3698_v20 = vld [vmem:[%s6309_s6 + $0x670] sm:$0xff] }
 0xdf3   : > { %2516 = vmatpush.msra.mxu3 %v3670_v13  ;;  %2597 = vmatpush.msra.mxu1 %v3701_v11  ;;  %v3697_v13 = vld [vmem:[%s6309_s6 + $0x668] sm:$0xff] }
 0xdf4   : > { %3650 = vmatmul.msk.f32.vlgmr.msrb.gmra.mxu3 %vm675_vm1, %v5383_v30 }
 0xdf5   : > { %2517 = vmatpush.msra.mxu3 %v3669_v53  ;;  %2598 = vmatpush.msra.mxu1 %v3700_v12  ;;  %v3696_v53 = vld [vmem:[%s6309_s6 + $0x660] sm:$0xff] }
 0xdf7   : > { %2518 = vmatpush.msra.mxu3 %v3668_v29  ;;  %2599 = vmatpush.msra.mxu1 %v3699_v59 }
 0xdf9   : > { %2519 = vmatpush.msra.mxu3 %v3667_v63  ;;  %2600 = vmatpush.msra.mxu1 %v3698_v20 }
 0xdfb   : > { %2520 = vmatpush.msra.mxu3 %v3666_v24  ;;  %2601 = vmatpush.msra.mxu1 %v3697_v13 }
 0xdfc   : > { %3651 = vmatmul.msk.f32.gmra.mxu3 %vm675_vm1, %v5390_v0 }
 0xdfd   : > { %2602 = vmatpush.msra.mxu1 %v3696_v53 }
 0xe01   : > { %v2375_v32 = vpop.xlane.xlu1 %2374 }
 0xe02   : > { %v2379_v54 = vsub.f32 %v5479_v56, %v2375_v32 }
 0xe04   : > { %v2381_v31 = vmul.f32 1.442695, %v2379_v54  ;;  %3679 = vmatmul.msk.f32.vlgmr.msra.gmra.mxu3 %vm675_vm1, %v5383_v30  ;;  %v3890_v54 = vld [vmem:[%s6312_s7 + $0xb] ss:$0 sm:$0xff] }
 0xe06   : > { %3969 = vpow2.f32 %v2381_v31 }
 0xe07   : > { %v2378_v58 = vpop.xlane.xlu2 %2377 }
 0xe08   : > { %v2380_v1 = vsub.f32 %v5483_v19, %v2378_v58  ;;  %v3689_v19 = vld [vmem:[%s6309_s6 + $0x580] sm:$0xff]  ;;  %s4033_s6 = sshra.s32 %s3328_s19, 4  ;;  %s4034_s6 = int_to_ptr.hbm [resolvable:$true] %s4033_s6 }
 0xe09   : > { %s4035_s7 = scalar_lea.hbm %s4034_s6, 1  ;;  %p4040_p0 = scmp.lt.s32.totalorder %s4034_s6, %s6313_s30 }
 0xe0a   : > { %v2383_v36 = vmul.f32 1.442695, %v2380_v1  ;;  %p4036_p11 = scmp.ne.s32.totalorder %s4034_s6, %s4035_s7  ;;  %p4041_p1 = scmp.lt.s32.totalorder %s4039_s27, %s4035_s7 }
 0xe0c   : > { %v3970_v38 = vpop.eup %3969  ;;  %3971 = vpow2.f32 %v2383_v36  ;;  %3680 = vmatmul.msk.f32.gmra.mxu3 %vm675_vm1, %v5390_v0  ;;  %p4037_p12 = pnand %p4036_p11, %p4229_p5  ;;  %p4042_p2 = por %p4041_p1, %p4040_p0 }
 0xe0d   : > { %v2385_v46 = vsel %vm900_vm10, %v3970_v38, 0.0 }
 0xe0e   : > { %2386 = vadd.xlane.f32.xlu0 %v2385_v46  ;;  %p4038_p13 = pneg %p4037_p12 }
 0xe10   : > { %p4043_p3 = pnand %p4042_p2, %p4038_p13 }
 0xe12   : > { %v3972_v40 = vpop.eup %3971 }
 0xe13   : > { %v2388_v43 = vsel %vm900_vm10, %v3972_v40, 0.0 }
 0xe14   : > { %2389 = vadd.xlane.f32.xlu1 %v2388_v43 }
 0xe67   : > { %v2204_v44 = vpop.f32.mrf.mxu3 }
 0xe68   : > { %3664 = vmatmul.msk.f32.vlgmr.msrb.gmra.mxu2 %vm864_vm9, %v2204_v44 }
 0xe6f   : > { %v2207_v45 = vpop.f32.mrf.mxu3 }
 0xe70   : > { %3665 = vmatmul.msk.f32.gmra.mxu2 %vm864_vm9, %v2207_v45 }
 0xe77   : > { %v2332_v2 = vpop.f32.mrf.mxu3 }
 0xe78   : > { %v2333_v50 = vadd.f32 %v3889_v14, %v2332_v2 }
 0xe7f   : > { %v2335_v16 = vpop.f32.mrf.mxu3 }
 0xe80   : > { %v2336_v49 = vadd.f32 %v3889_v14, %v2335_v16 }
 0xe81   : > { %v2387_v47 = vpop.xlane.xlu0 %2386 }
 0xe82   : > { %3973 = vrcp.f32 %v2387_v47  ;;  %2415 = vmatpush.msrb.mxu0 %v2336_v49 }
 0xe84   : > { %2416 = vmatpush.msrb.mxu0 %v2333_v50 }
 0xe86   : > { %2550 = vmatpush.msra.mxu0 %v3692_v51 }
 0xe87   : > { %v2390_v3 = vpop.xlane.xlu1 %2389  ;;  %v2522_v32 = vpop.f32.mrf.mxu3 }
 0xe88   : > { %v3974_v57 = vpop.eup %3973  ;;  %3975 = vrcp.f32 %v2390_v3  ;;  %2551 = vmatpush.msra.mxu0 %v3691_v55 }
 0xe89   : > { %v2393_v56 = vmul.f32 %v3974_v57, %v3970_v38 }
 0xe8a   : > { %2552 = vmatpush.msra.mxu0 %v3690_v62 }
 0xe8b   : > { %3656 = vmatmul.msk.f32.vlgmr.msrb.gmra.mxu0 %vm900_vm10, %v2393_v56 }
 0xe8c   : > { %2553 = vmatpush.msra.mxu0 %v3689_v19 }
 0xe8e   : > { %v3976_v6 = vpop.eup %3975  ;;  %2554 = vmatpush.msra.mxu0 %v3688_v35 }
 0xe8f   : > { %v2394_v34 = vmul.f32 %v3976_v6, %v3972_v40 }
 0xe90   : > { %2555 = vmatpush.msra.mxu0 %v3687_v26  ;;  %v3720_v26 = vld [vmem:[%s6261_s8 + $0xb8] sm:$0xff] }
 0xe92   : > { %2556 = vmatpush.msra.mxu0 %v3686_v60  ;;  %v3718_v60 = vld [vmem:[%s6261_s8 + $0xa8] sm:$0xff] }
 0xe93   : > { %3657 = vmatmul.msk.f32.gmra.mxu0 %vm900_vm10, %v2394_v34  ;;  %v3719_v34 = vld [vmem:[%s6261_s8 + $0xb0] sm:$0xff] }
 0xe94   : > { %2557 = vmatpush.msra.mxu0 %v3685_v61 }
 0xe96   : > { %2558 = vmatpush.msra.mxu0 %v3684_v4 }
 0xe98   : > { %2559 = vmatpush.msra.mxu0 %v3683_v5 }
 0xe9a   : > { %2560 = vmatpush.msra.mxu0 %v3682_v8 }
 0xe9c   : > { %2561 = vmatpush.msra.mxu0 %v3681_v9 }
 0xe9d   : > { %3694 = vmatmul.msk.f32.vlgmr.msra.gmra.mxu0 %vm675_vm1, %v5383_v30 }
 0xea5   : > { %3695 = vmatmul.msk.f32.gmra.mxu0 %vm675_vm1, %v5390_v0 }
 0xeeb   : > { %v2481_v1 = vpop.f32.mrf.mxu2 }
 0xef3   : > { %v2484_v38 = vpop.f32.mrf.mxu2 }
 0xf08   : > { %v2418_v21 = vpop.f32.mrf.mxu0 }
 0xf09   : > { %3662 = vmatmul.msk.f32.vlgmr.msrb.gmra.mxu1 %vm864_vm9, %v2418_v21 }
 0xf10   : > { %v2421_v22 = vpop.f32.mrf.mxu0 }
 0xf11   : > { %3663 = vmatmul.msk.f32.gmra.mxu1 %vm864_vm9, %v2421_v22 }
 0xf19   : > { %3709 = vmatmul.msk.f32.vlgmr.msra.gmra.mxu1 %vm675_vm1, %v5383_v30  ;;  %v2523_v30 = vadd.f32 %v3890_v54, %v2522_v32 }
 0xf1a   : > { %v2563_v29 = vpop.f32.mrf.mxu0 }
 0xf1b   : > { %v2564_v31 = vadd.f32 %v3891_v23, %v2563_v29 }
 0xf21   : > { %3710 = vmatmul.msk.f32.gmra.mxu1 %vm675_vm1, %v5390_v0  ;;  %v2525_v0 = vpop.f32.mrf.mxu3 }
 0xf22   : > { %v2566_v63 = vpop.f32.mrf.mxu0  ;;  %v2526_v58 = vadd.f32 %v3890_v54, %v2525_v0  ;;  %v3761_v0 = vld [vmem:[%s6265_s12 + $0x238] sm:$0xff] }
 0xf23   : > { %v2567_v24 = vadd.f32 %v3891_v23, %v2566_v63 }
 0xf25   : > { %3711 = vmatpush.xpose.msk.msra.mxu2 %vm864_vm9, %v2567_v24 }
 0xf29   : > { %3712 = vmatpush.xpose.msk.msra.mxu2 %vm864_vm9, %v2564_v31  ;;  %v3759_v31 = vld [vmem:[%s6265_s12 + $0x228] sm:$0xff] }
 0xf2a   : > { %2855 = vmatpush.msrb.mxu0 %v3759_v31 }
 0xf2c   : > { %3713 = vmatmul.msk.f32.vlgmr.msra.gmra.mxu2 %vm864_vm9, %v2523_v30  ;;  %v3760_v30 = vld [vmem:[%s6265_s12 + $0x230] sm:$0xff] }
 0xf2d   : > { %2719 = vmatpush.msrb.mxu2 %v3720_v26  ;;  %2878 = vmatpush.msrb.mxu1 %v3760_v30  ;;  %v3733_v26 = vld [vmem:[%s6265_s12 + $0x158] sm:$0xff] }
 0xf2f   : > { %2720 = vmatpush.msrb.mxu2 %v3719_v34  ;;  %v3734_v34 = vld [vmem:[%s6265_s12 + $0x160] sm:$0xff] }
 0xf31   : > { %2721 = vmatpush.msrb.mxu2 %v3718_v60  ;;  %v3729_v60 = vld [vmem:[%s6265_s12 + $0x138] sm:$0xff] }
 0xf33   : > { %2722 = vmatpush.msrb.mxu2 %v3717_v10 }
 0xf34   : > { %3714 = vmatmul.msk.f32.gmra.mxu2 %vm864_vm9, %v2526_v58  ;;  %v3756_v58 = vld [vmem:[%s6265_s12 + $0x210] sm:$0xff] }
 0xf35   : > { %2856 = vmatpush.msrb.mxu0 %v3756_v58 }
 0xf86   : > { %v2452_v36 = vpop.f32.mrf.mxu1 }
 0xf87   : > { %v2482_v48 = vadd.f32 %v2481_v1, %v2452_v36  ;;  %v3757_v1 = vld [vmem:[%s6265_s12 + $0x218] sm:$0xff]  ;;  %v3758_v36 = vld [vmem:[%s6265_s12 + $0x220] sm:$0xff] }
 0xf88   : > { %2879 = vmatpush.msrb.mxu1 %v3757_v1 }
 0xf8e   : > { %v2455_v46 = vpop.f32.mrf.mxu1 }
 0xf8f   : > { %v2485_v40 = vadd.f32 %v2484_v38, %v2455_v46  ;;  %v3753_v38 = vld [vmem:[%s6265_s12 + $0x1f8] sm:$0xff]  ;;  %v3754_v46 = vld [vmem:[%s6265_s12 + $0x200] sm:$0xff] }
 0xf90   : > { %2857 = vmatpush.msrb.mxu0 %v3753_v38  ;;  %2880 = vmatpush.msrb.mxu1 %v3754_v46  ;;  %v3800_v38 = vld [vmem:[%s6267_s14 + $0x278] sm:$0xff]  ;;  %v3799_v46 = vld [vmem:[%s6267_s14 + $0x270] sm:$0xff] }
 0xf96   : > { %v2604_v43 = vpop.f32.mrf.mxu1 }
 0xf97   : > { %v2605_v2 = vadd.f32 %v3892_v52, %v2604_v43  ;;  %v3750_v43 = vld [vmem:[%s6265_s12 + $0x1e0] sm:$0xff] }
 0xf98   : > { %2858 = vmatpush.msrb.mxu0 %v3750_v43  ;;  %v3798_v43 = vld [vmem:[%s6267_s14 + $0x268] sm:$0xff] }
 0xf9e   : > { %v2607_v44 = vpop.f32.mrf.mxu1 }
 0xf9f   : > { %v2608_v45 = vadd.f32 %v3892_v52, %v2607_v44  ;;  %v3751_v52 = vld [vmem:[%s6265_s12 + $0x1e8] sm:$0xff]  ;;  %v3752_v44 = vld [vmem:[%s6265_s12 + $0x1f0] sm:$0xff] }
 0xfa0   : > { %2881 = vmatpush.msrb.mxu1 %v3751_v52  ;;  %v5885_v52 = vld [vmem:[%s6266_s13 + $0x3] sm:$0x7] }
 0xfa1   : > { %2687 = vmatpush.msrb.mxu3 %v2608_v45  ;;  %v3747_v45 = vld [vmem:[%s6265_s12 + $0x1c8] sm:$0xff] }
 0xfa2   : > { %2859 = vmatpush.msrb.mxu0 %v3747_v45  ;;  %v3797_v45 = vld [vmem:[%s6267_s14 + $0x260] sm:$0xff] }
 0xfa3   : > { %2688 = vmatpush.msrb.mxu3 %v2605_v2  ;;  %v3748_v2 = vld [vmem:[%s6265_s12 + $0x1d0] sm:$0xff] }
 0xfa4   : > { %2882 = vmatpush.msrb.mxu1 %v3748_v2  ;;  %v3816_v2 = vld [vmem:[%s6267_s14 + $0x2f8] sm:$0xff] }
 0xfa5   : > { %2901 = vmatpush.msra.mxu3 %v3761_v0 }
 0xfa7   : > { %2902 = vmatpush.msra.mxu3 %v3758_v36  ;;  %v3784_v36 = vld [vmem:[%s6267_s14 + $0x1f8] sm:$0xff] }
 0xfa8   : > { %3125 = vmatpush.msra.mxu2 %v3784_v36 }
 0xfaf   : > { %v2639_v14 = vpop.f32.mrf.mxu2 }
 0xfb0   : > { %v2645_v47 = vsel %vm900_vm10, %v2639_v14, -inf }
 0xfb1   : > { %2646 = vmax.xlane.f32.xlu2 %v2645_v47  ;;  %v3744_v47 = vld [vmem:[%s6265_s12 + $0x1b0] sm:$0xff] }
 0xfb2   : > { %2860 = vmatpush.msrb.mxu0 %v3744_v47  ;;  %v2840_v47 = vperm.slane %v5885_v52, 1 }
 0xfb7   : > { %v2642_v16 = vpop.f32.mrf.mxu2 }
 0xfb8   : > { %v2648_v49 = vsel %vm900_vm10, %v2642_v16, -inf }
 0xfb9   : > { %2649 = vmax.xlane.f32.xlu0 %v2648_v49  ;;  %v3746_v49 = vld [vmem:[%s6265_s12 + $0x1c0] sm:$0xff] }
0x1024   : > { %v2647_v50 = vpop.xlane.xlu2 %2646 }
0x1025   : > { %v2651_v51 = vsub.f32 %v2639_v14, %v2647_v50  ;;  %v3749_v14 = vld [vmem:[%s6265_s12 + $0x1d8] sm:$0xff] }
0x1026   : > { %v3741_v50 = vld [vmem:[%s6265_s12 + $0x198] sm:$0xff] }
0x1027   : > { %v2653_v55 = vmul.f32 1.442695, %v2651_v51  ;;  %v3742_v51 = vld [vmem:[%s6265_s12 + $0x1a0] sm:$0xff]  ;;  %2861 = vmatpush.msrb.mxu0 %v3741_v50  ;;  %v3815_v50 = vld [vmem:[%s6267_s14 + $0x2f0] sm:$0xff] }
0x1029   : > { %3977 = vpow2.f32 %v2653_v55  ;;  %v3743_v55 = vld [vmem:[%s6265_s12 + $0x1a8] sm:$0xff] }
0x102c   : > { %v2650_v3 = vpop.xlane.xlu0 %2649 }
0x102d   : > { %v2652_v57 = vsub.f32 %v2642_v16, %v2650_v3  ;;  %v3745_v16 = vld [vmem:[%s6265_s12 + $0x1b8] sm:$0xff]  ;;  %v3738_v3 = vld [vmem:[%s6265_s12 + $0x180] sm:$0xff] }
0x102e   : > { %2883 = vmatpush.msrb.mxu1 %v3745_v16  ;;  %2862 = vmatpush.msrb.mxu0 %v3738_v3  ;;  %v3780_v16 = vld [vmem:[%s6267_s14 + $0x1d8] sm:$0xff]  ;;  %v3814_v3 = vld [vmem:[%s6267_s14 + $0x2e8] sm:$0xff] }
0x102f   : > { %v3978_v56 = vpop.eup %3977  ;;  %v2655_v62 = vmul.f32 1.442695, %v2652_v57  ;;  %v3739_v57 = vld [vmem:[%s6265_s12 + $0x188] sm:$0xff] }
0x1030   : > { %v2657_v19 = vsel %vm900_vm10, %v3978_v56, 0.0  ;;  %2884 = vmatpush.msrb.mxu1 %v3742_v51  ;;  %v3779_v51 = vld [vmem:[%s6267_s14 + $0x1d0] sm:$0xff] }
0x1031   : > { %3979 = vpow2.f32 %v2655_v62  ;;  %2658 = vadd.xlane.f32.xlu1 %v2657_v19  ;;  %v3735_v62 = vld [vmem:[%s6265_s12 + $0x168] sm:$0xff]  ;;  %v3736_v19 = vld [vmem:[%s6265_s12 + $0x170] sm:$0xff] }
0x1032   : > { %2885 = vmatpush.msrb.mxu1 %v3739_v57  ;;  %2863 = vmatpush.msrb.mxu0 %v3735_v62 }
0x1034   : > { %2886 = vmatpush.msrb.mxu1 %v3736_v19 }
0x1036   : > { %2887 = vmatpush.msrb.mxu1 %v3733_v26  ;;  %v3813_v26 = vld [vmem:[%s6267_s14 + $0x2e0] sm:$0xff] }
0x1037   : > { %v3980_v35 = vpop.eup %3979 }
0x1038   : > { %v2660_v6 = vsel %vm900_vm10, %v3980_v35, 0.0 }
0x1039   : > { %2661 = vadd.xlane.f32.xlu2 %v2660_v6  ;;  %v3732_v6 = vld [vmem:[%s6265_s12 + $0x150] sm:$0xff] }
0x103a   : > { %2864 = vmatpush.msrb.mxu0 %v3732_v6  ;;  %v3794_v6 = vld [vmem:[%s6267_s14 + $0x248] sm:$0xff] }
0x103c   : > { %2865 = vmatpush.msrb.mxu0 %v3729_v60 }
0x10a4   : > { %v2659_v61 = vpop.xlane.xlu1 %2658 }
0x10a5   : > { %3981 = vrcp.f32 %v2659_v61  ;;  %v3730_v61 = vld [vmem:[%s6265_s12 + $0x140] sm:$0xff] }
0x10a6   : > { %2888 = vmatpush.msrb.mxu1 %v3730_v61  ;;  %v2841_v61 = vperm.slane %v5885_v52, 2 }
0x10ab   : > { %v3982_v4 = vpop.eup %3981 }
0x10ac   : > { %v2665_v5 = vmul.f32 %v3982_v4, %v3978_v56  ;;  %v2662_v8 = vpop.xlane.xlu2 %2661  ;;  %v3740_v56 = vld [vmem:[%s6265_s12 + $0x190] sm:$0xff]  ;;  %v3731_v4 = vld [vmem:[%s6265_s12 + $0x148] sm:$0xff] }
0x10ad   : > { %3983 = vrcp.f32 %v2662_v8  ;;  %v3727_v8 = vld [vmem:[%s6265_s12 + $0x128] sm:$0xff] }
0x10ae   : > { %3715 = vmatmul.msk.f32.vlgmr.msrb.gmra.mxu3 %vm900_vm10, %v2665_v5  ;;  %v3726_v5 = vld [vmem:[%s6265_s12 + $0x120] sm:$0xff]  ;;  %2889 = vmatpush.msrb.mxu1 %v3727_v8  ;;  %v3812_v8 = vld [vmem:[%s6267_s14 + $0x2d8] sm:$0xff] }
0x10af   : > { %2866 = vmatpush.msrb.mxu0 %v3726_v5  ;;  %v3793_v5 = vld [vmem:[%s6267_s14 + $0x240] sm:$0xff] }
0x10b0   : > { %3171 = vmatpush.msra.mxu1 %v3816_v2 }
0x10b1   : > { %3148 = vmatpush.msra.mxu0 %v3800_v38 }
0x10b2   : > { %3172 = vmatpush.msra.mxu1 %v3815_v50 }
0x10b3   : > { %v3984_v9 = vpop.eup %3983  ;;  %3149 = vmatpush.msra.mxu0 %v3799_v46 }
0x10b4   : > { %v2666_v37 = vmul.f32 %v3984_v9, %v3980_v35  ;;  %v3737_v35 = vld [vmem:[%s6265_s12 + $0x178] sm:$0xff]  ;;  %v3728_v9 = vld [vmem:[%s6265_s12 + $0x130] sm:$0xff]  ;;  %3173 = vmatpush.msra.mxu1 %v3814_v3 }
0x10b5   : > { %3150 = vmatpush.msra.mxu0 %v3798_v43  ;;  %v3771_v43 = vld [vmem:[%s6267_s14 + $0x190] sm:$0xff] }
0x10b6   : > { %3716 = vmatmul.msk.f32.gmra.mxu3 %vm900_vm10, %v2666_v37  ;;  %3174 = vmatpush.msra.mxu1 %v3813_v26 }
0x10b7   : > { %3151 = vmatpush.msra.mxu0 %v3797_v45  ;;  %v3806_v45 = vld [vmem:[%s6267_s14 + $0x2a8] sm:$0xff] }
0x10b8   : > { %3175 = vmatpush.msra.mxu1 %v3812_v8  ;;  %v3785_v8 = vld [vmem:[%s6267_s14 + $0x200] sm:$0xff] }
0x1131   : > { %v2690_v17 = vpop.f32.mrf.mxu3 }
0x1132   : > { %3721 = vmatmul.msk.f32.vlgmr.msrb.gmra.mxu2 %vm864_vm9, %v2690_v17 }
0x1139   : > { %v2693_v41 = vpop.f32.mrf.mxu3 }
0x113a   : > { %3722 = vmatmul.msk.f32.gmra.mxu2 %vm864_vm9, %v2693_v41 }
0x11b5   : > { %v2724_v39 = vpop.f32.mrf.mxu2 }
0x11b6   : > { %v2730_v15 = vadd.f32 %v2724_v39, %v2482_v48 }
0x11b8   : > { %v2732_v18 = vadd.f32 %v2730_v15, %v5207_v28 }
0x11ba   : > { %v5717_v42 = vadd.f32 %v3893_v7, %v2732_v18 }
0x11bc   : > { %v2745_v11 = vsel %vm675_vm1, %v5717_v42, 0.0 }
0x11bd   : > { %2746 = vadd.xlane.f32.xlu0 %v2745_v11  ;;  %v2727_v12 = vpop.f32.mrf.mxu2 }
0x11be   : > { %v2731_v59 = vadd.f32 %v2727_v12, %v2485_v40  ;;  %v3755_v40 = vld [vmem:[%s6265_s12 + $0x208] sm:$0xff] }
0x11bf   : > { %2903 = vmatpush.msra.mxu3 %v3755_v40  ;;  %v3782_v40 = vld [vmem:[%s6267_s14 + $0x1e8] sm:$0xff] }
0x11c0   : > { %v2733_v20 = vadd.f32 %v2731_v59, %v5212_v33 }
0x11c1   : > { %2904 = vmatpush.msra.mxu3 %v3752_v44  ;;  %v3781_v44 = vld [vmem:[%s6267_s14 + $0x1e0] sm:$0xff] }
0x11c2   : > { %v5722_v13 = vadd.f32 %v3893_v7, %v2733_v20 }
0x11c3   : > { %2905 = vmatpush.msra.mxu3 %v3749_v14  ;;  %v2839_v14 = vperm.slane %v5885_v52, 0  ;;  %v3805_v52 = vld [vmem:[%s6267_s14 + $0x2a0] sm:$0xff] }
0x11c4   : > { %v2748_v53 = vsel %vm675_vm1, %v5722_v13, 0.0 }
0x11c5   : > { %2749 = vadd.xlane.f32.xlu1 %v2748_v53  ;;  %2906 = vmatpush.msra.mxu3 %v3746_v49  ;;  %v3796_v49 = vld [vmem:[%s6267_s14 + $0x258] sm:$0xff] }
0x11c6   : > { %3152 = vmatpush.msra.mxu0 %v3796_v49 }
0x11c7   : > { %2907 = vmatpush.msra.mxu3 %v3743_v55  ;;  %v3795_v55 = vld [vmem:[%s6267_s14 + $0x250] sm:$0xff] }
0x11c8   : > { %3153 = vmatpush.msra.mxu0 %v3795_v55 }
0x11c9   : > { %2908 = vmatpush.msra.mxu3 %v3740_v56 }
0x11ca   : > { %3154 = vmatpush.msra.mxu0 %v3794_v6 }
0x11cb   : > { %2909 = vmatpush.msra.mxu3 %v3737_v35  ;;  %v3778_v35 = vld [vmem:[%s6267_s14 + $0x1c8] sm:$0xff] }
0x11cc   : > { %3155 = vmatpush.msra.mxu0 %v3793_v5  ;;  %v3769_v5 = vld [vmem:[%s6267_s14 + $0x180] sm:$0xff] }
0x11cd   : > { %2910 = vmatpush.msra.mxu3 %v3734_v34 }
0x11cf   : > { %2911 = vmatpush.msra.mxu3 %v3731_v4  ;;  %v3777_v4 = vld [vmem:[%s6267_s14 + $0x1c0] sm:$0xff] }
0x11d1   : > { %2912 = vmatpush.msra.mxu3 %v3728_v9 }
0x1230   : > { %v2747_v21 = vpop.xlane.xlu0 %2746 }
0x1231   : > { %v2751_v22 = vmul.f32 %v2747_v21, %v4285_v27  ;;  %v3894_v21 = vld [vmem:[%s6263_s10 + $0x1] ss:$0 sm:$0xff] }
0x1233   : > { %v5728_v28 = vsub.f32 %v5717_v42, %v2751_v22 }
0x1235   : > { %v2755_v29 = vmul.f32 %v5728_v28, %v5728_v28 }
0x1237   : > { %v2757_v23 = vsel %vm675_vm1, %v2755_v29, 0.0 }
0x1238   : > { %2758 = vadd.xlane.f32.xlu2 %v2757_v23  ;;  %v2750_v63 = vpop.xlane.xlu1 %2749 }
0x1239   : > { %v2752_v33 = vmul.f32 %v2750_v63, %v4285_v27  ;;  %v3895_v63 = vld [vmem:[%s6264_s11 + $0x1] ss:$0 sm:$0xff] }
0x123b   : > { %v5735_v24 = vsub.f32 %v5722_v13, %v2752_v33 }
0x123d   : > { %v2756_v32 = vmul.f32 %v5735_v24, %v5735_v24 }
0x123f   : > { %v2760_v54 = vsel %vm675_vm1, %v2756_v32, 0.0 }
0x1240   : > { %2761 = vadd.xlane.f32.xlu0 %v2760_v54 }
0x12ab   : > { %v2759_v37 = vpop.xlane.xlu2 %2758 }
0x12ac   : > { %v2763_v10 = vmul.f32 %v2759_v37, %v4285_v27 }
0x12ae   : > { %v2765_v17 = vadd.f32 1e-05, %v2763_v10  ;;  %v3776_v10 = vld [vmem:[%s6267_s14 + $0x1b8] sm:$0xff] }
0x12b0   : > { %3985 = vrsqrt.f32 %v2765_v17  ;;  %vm2773_vm10 = vweird.f32 %v2765_v17 }
0x12b3   : > { %v2762_v41 = vpop.xlane.xlu0 %2761 }
0x12b4   : > { %v2764_v48 = vmul.f32 %v2762_v41, %v4285_v27  ;;  %v3811_v41 = vld [vmem:[%s6267_s14 + $0x2d0] sm:$0xff] }
0x12b5   : > { %3176 = vmatpush.msra.mxu1 %v3811_v41  ;;  %v3804_v41 = vld [vmem:[%s6267_s14 + $0x298] sm:$0xff] }
0x12b6   : > { %v3986_v39 = vpop.eup %3985  ;;  %v2766_v15 = vadd.f32 1e-05, %v2764_v48 }
0x12b7   : > { %v2768_v7 = vmul.f32 %v3986_v39, %v2765_v17  ;;  %vm2774_vm9 = vweird.f32 %v3986_v39  ;;  %v3792_v17 = vld [vmem:[%s6267_s14 + $0x238] sm:$0xff] }
0x12b8   : > { %3987 = vrsqrt.f32 %v2766_v15  ;;  %vm2775_vm0 = vmor %vm2773_vm10, %vm2774_vm9  ;;  %vm2783_vm3 = vweird.f32 %v2766_v15  ;;  %3156 = vmatpush.msra.mxu0 %v3792_v17 }
0x12b9   : > { %v2769_v18 = vmul.f32 %v3986_v39, %v2768_v7 }
0x12bb   : > { %v2770_v11 = vmul.f32 0.5, %v2769_v18 }
0x12bd   : > { %v2771_v12 = vsub.f32 1.5, %v2770_v11 }
0x12be   : > { %v3988_v59 = vpop.eup %3987 }
0x12bf   : > { %v2772_v20 = vmul.f32 %v3986_v39, %v2771_v12  ;;  %v2778_v53 = vmul.f32 %v3988_v59, %v2766_v15  ;;  %vm2784_vm2 = vweird.f32 %v3988_v59  ;;  %v3775_v12 = vld [vmem:[%s6267_s14 + $0x1b0] sm:$0xff] }
0x12c0   : > { %vm2785_vm4 = vmor %vm2783_vm3, %vm2784_vm2  ;;  %vm3312_vm3 = vcmask 24576  }
0x12c1   : > { %v2776_v22 = vsel %vm2775_vm0, %v3986_v39, %v2772_v20  ;;  %v2779_v29 = vmul.f32 %v3988_v59, %v2778_v53  ;;  %v3810_v20 = vld [vmem:[%s6267_s14 + $0x2c8] sm:$0xff] }
0x12c2   : > { %v2787_v23 = vmul.f32 %v2776_v22, %v5728_v28  ;;  %v3774_v22 = vld [vmem:[%s6267_s14 + $0x1a8] sm:$0xff]  ;;  %3177 = vmatpush.msra.mxu1 %v3810_v20 }
0x12c3   : > { %v2780_v33 = vmul.f32 0.5, %v2779_v29  ;;  %v3790_v29 = vld [vmem:[%s6267_s14 + $0x228] sm:$0xff] }
0x12c4   : > { %v2792_v32 = vmul.f32 %v3894_v21, %v2787_v23  ;;  %v3809_v23 = vld [vmem:[%s6267_s14 + $0x2c0] sm:$0xff] }
0x12c5   : > { %v2781_v54 = vsub.f32 1.5, %v2780_v33  ;;  %3178 = vmatpush.msra.mxu1 %v3809_v23 }
0x12c6   : > { %v2797_v31 = vadd.f32 %v3895_v63, %v2792_v32 }
0x12c7   : > { %v2782_v30 = vmul.f32 %v3988_v59, %v2781_v54  ;;  %v3773_v54 = vld [vmem:[%s6267_s14 + $0x1a0] sm:$0xff] }
0x12c8   : > { %3763 = vmatmul.msk.f32.vlgmr.msrb.gmra.mxu0 %vm675_vm1, %v2797_v31  ;;  %3765 = vmatmul.msk.f32.vlgmr.msrb.gmra.mxu1 %vm675_vm1, %v2797_v31 }
0x12c9   : > { %v2786_v0 = vsel %vm2785_vm4, %v3988_v59, %v2782_v30  ;;  %3767 = vmatmul.msk.f32.vlgmr.msra.gmra.mxu3 %vm675_vm1, %v2797_v31  ;;  %v3791_v59 = vld [vmem:[%s6267_s14 + $0x230] sm:$0xff]  ;;  %v3789_v31 = vld [vmem:[%s6267_s14 + $0x220] sm:$0xff] }
0x12ca   : > { %v2788_v28 = vmul.f32 %v2786_v0, %v5735_v24  ;;  %v3783_v24 = vld [vmem:[%s6267_s14 + $0x1f0] sm:$0xff]  ;;  %3157 = vmatpush.msra.mxu0 %v3791_v59  ;;  %v3808_v0 = vld [vmem:[%s6267_s14 + $0x2b8] sm:$0xff] }
0x12cb   : > { %3126 = vmatpush.msra.mxu2 %v3783_v24  ;;  %3179 = vmatpush.msra.mxu1 %v3808_v0  ;;  %v3807_v24 = vld [vmem:[%s6267_s14 + $0x2b0] sm:$0xff] }
0x12cc   : > { %v2793_v58 = vmul.f32 %v3894_v21, %v2788_v28  ;;  %3158 = vmatpush.msra.mxu0 %v3790_v29 }
0x12cd   : > { %3127 = vmatpush.msra.mxu2 %v3782_v40  ;;  %3180 = vmatpush.msra.mxu1 %v3807_v24 }
0x12ce   : > { %v2798_v1 = vadd.f32 %v3895_v63, %v2793_v58  ;;  %3159 = vmatpush.msra.mxu0 %v3789_v31  ;;  %v3772_v58 = vld [vmem:[%s6267_s14 + $0x198] sm:$0xff] }
0x12cf   : > { %3128 = vmatpush.msra.mxu2 %v3781_v44  ;;  %v3787_v44 = vld [vmem:[%s6267_s14 + $0x210] sm:$0xff]  ;;  %3181 = vmatpush.msra.mxu1 %v3806_v45 }
0x12d0   : > { %3764 = vmatmul.msk.f32.gmra.mxu0 %vm675_vm1, %v2798_v1  ;;  %3766 = vmatmul.msk.f32.gmra.mxu1 %vm675_vm1, %v2798_v1 }
0x12d1   : > { %3768 = vmatmul.msk.f32.gmra.mxu3 %vm675_vm1, %v2798_v1  ;;  %3129 = vmatpush.msra.mxu2 %v3780_v16  ;;  %v3788_v1 = vld [vmem:[%s6267_s14 + $0x218] sm:$0xff] }
0x12d2   : > { %3160 = vmatpush.msra.mxu0 %v3788_v1  ;;  %3182 = vmatpush.msra.mxu1 %v3805_v52 }
0x12d3   : > { %3130 = vmatpush.msra.mxu2 %v3779_v51 }
0x12d4   : > { %3161 = vmatpush.msra.mxu0 %v3787_v44  ;;  %3183 = vmatpush.msra.mxu1 %v3804_v41 }
0x12d5   : > { %3131 = vmatpush.msra.mxu2 %v3778_v35 }
0x12d7   : > { %3132 = vmatpush.msra.mxu2 %v3777_v4 }
0x12d9   : > { %3133 = vmatpush.msra.mxu2 %v3776_v10 }
0x12db   : > { %3134 = vmatpush.msra.mxu2 %v3775_v12 }
0x12dd   : > { %3135 = vmatpush.msra.mxu2 %v3774_v22  ;;  %v3801_v22 = vld [vmem:[%s6267_s14 + $0x280] sm:$0xff] }
0x12df   : > { %3136 = vmatpush.msra.mxu2 %v3773_v54 }
0x12e1   : > { %3137 = vmatpush.msra.mxu2 %v3772_v58 }
0x12e3   : > { %3138 = vmatpush.msra.mxu2 %v3771_v43 }
0x1345   : > { %v2868_v57 = vpop.f32.mrf.mxu0  ;;  %v2891_v56 = vpop.f32.mrf.mxu1 }
0x1346   : > { %v5916_v62 = vadd.f32 %v2868_v57, %v2839_v14  ;;  %v5918_v19 = vadd.f32 %v2891_v56, %v2840_v47  ;;  %v3770_v57 = vld [vmem:[%s6267_s14 + $0x188] sm:$0xff] }
0x1347   : > { %v3786_v56 = vld [vmem:[%s6267_s14 + $0x208] sm:$0xff]  ;;  %3139 = vmatpush.msra.mxu2 %v3770_v57 }
0x1348   : > { %v5930_v34 = vmul.f32 0.70710677, %v5916_v62  ;;  %v5933_v60 = vmul.f32 0.70710677, %v5918_v19  ;;  %3162 = vmatpush.msra.mxu0 %v3786_v56  ;;  %v6093_v0 = vmul.f32 0.5, %v5916_v62 }
0x1349   : > { %3140 = vmatpush.msra.mxu2 %v3769_v5 }
0x134a   : > { %v5946_v9 = vand.u32 2147483647, %v5930_v34  ;;  %v5949_v37 = vand.u32 2147483647, %v5933_v60  ;;  %3163 = vmatpush.msra.mxu0 %v3785_v8  ;;  %vm2932_vm5 = vcmp.lt.f32.partialorder %v5930_v34, 0.0  ;;  %vm2933_vm6 = vcmp.lt.f32.partialorder %v5933_v60, 0.0 }
0x134c   : > { %v2950_v48 = vmul.f32 0.3275911, %v5946_v9  ;;  %v2951_v39 = vmul.f32 0.3275911, %v5949_v37  ;;  %v2914_v15 = vpop.f32.mrf.mxu3  ;;  %v3022_v2 = vsub.f32 0.0, %v5946_v9  ;;  %v3023_v55 = vsub.f32 0.0, %v5949_v37 }
0x134d   : > { %v5964_v7 = vadd.f32 %v2914_v15, %v2841_v61  ;;  %v2871_v18 = vpop.f32.mrf.mxu0  ;;  %v2894_v11 = vpop.f32.mrf.mxu1  ;;  %v3803_v15 = vld [vmem:[%s6267_s14 + $0x290] sm:$0xff] }
0x134e   : > { %v2956_v53 = vadd.f32 1.0, %v2950_v48  ;;  %v2957_v21 = vadd.f32 1.0, %v2951_v39  ;;  %v5987_v33 = vadd.f32 %v2871_v18, %v2839_v14  ;;  %v5989_v32 = vadd.f32 %v2894_v11, %v2840_v47  ;;  %v3802_v11 = vld [vmem:[%s6267_s14 + $0x288] sm:$0xff]  ;;  %3184 = vmatpush.msra.mxu1 %v3803_v15 }
0x134f   : > { %v5985_v63 = vmul.f32 0.70710677, %v5964_v7  ;;  %v3028_v4 = vmul.f32 %v3022_v2, %v5946_v9  ;;  %v3029_v48 = vmul.f32 %v3023_v55, %v5949_v37 }
0x1350   : > { %3989 = vrcp.f32 %v2956_v53  ;;  %v6004_v28 = vmul.f32 0.70710677, %v5987_v33  ;;  %v6014_v38 = vmul.f32 0.70710677, %v5989_v32  ;;  %3185 = vmatpush.msra.mxu1 %v3802_v11  ;;  %v2938_v11 = vsel %vm2932_vm5, -1.0, %v4084_v25 }
0x1351   : > { %3991 = vrcp.f32 %v2957_v21  ;;  %v5998_v30 = vand.u32 2147483647, %v5985_v63  ;;  %v3034_v20 = vmul.f32 1.442695, %v3028_v4  ;;  %v3036_v23 = vmul.f32 1.442695, %v3029_v48 }
0x1352   : > { %v6020_v46 = vand.u32 2147483647, %v6004_v28  ;;  %v6036_v49 = vand.u32 2147483647, %v6014_v38  ;;  %3186 = vmatpush.msra.mxu1 %v3801_v22  ;;  %vm2934_vm7 = vcmp.lt.f32.partialorder %v5985_v63, 0.0  ;;  %vm2935_vm8 = vcmp.lt.f32.partialorder %v6004_v28, 0.0 }
0x1353   : > { %v2952_v36 = vmul.f32 0.3275911, %v5998_v30  ;;  %v3024_v37 = vsub.f32 0.0, %v5998_v30  ;;  %vm2936_vm11 = vcmp.lt.f32.partialorder %v6014_v38, 0.0  ;;  %v2941_v28 = vsel %vm2935_vm8, -1.0, %v4084_v25 }
0x1354   : > { %v2917_v40 = vpop.f32.mrf.mxu3  ;;  %v2953_v16 = vmul.f32 0.3275911, %v6020_v46  ;;  %v2954_v26 = vmul.f32 0.3275911, %v6036_v49  ;;  %v2924_v38 = vmul.f32 0.5, %v5989_v32 }
0x1355   : > { %v2958_v14 = vadd.f32 1.0, %v2952_v36  ;;  %v6044_v3 = vadd.f32 %v2917_v40, %v2841_v61  ;;  %v3030_v24 = vmul.f32 %v3024_v37, %v5998_v30  ;;  %v3025_v40 = vsub.f32 0.0, %v6020_v46 }
0x1356   : > { %v6032_v47 = vpop.eup %3989  ;;  %v2959_v6 = vadd.f32 1.0, %v2953_v16  ;;  %v2960_v17 = vadd.f32 1.0, %v2954_v26  ;;  %v3026_v16 = vsub.f32 0.0, %v6036_v49 }
0x1357   : > { %v6038_v50 = vpop.eup %3991  ;;  %v2968_v51 = vmul.f32 1.0614054, %v6032_v47  ;;  %3993 = vrcp.f32 %v2958_v14  ;;  %v6070_v39 = vmul.f32 0.70710677, %v6044_v3  ;;  %v3031_v26 = vmul.f32 %v3025_v40, %v6020_v46 }
0x1358   : > { %v2969_v35 = vmul.f32 1.0614054, %v6038_v50  ;;  %3995 = vrcp.f32 %v2959_v6  ;;  %v3038_v6 = vmul.f32 1.442695, %v3030_v24 }
0x1359   : > { %v2974_v61 = vadd.f32 -1.4531521, %v2968_v51  ;;  %3997 = vrcp.f32 %v2960_v17  ;;  %v6088_v54 = vand.u32 2147483647, %v6070_v39  ;;  %v3032_v17 = vmul.f32 %v3026_v16, %v6036_v49 }
0x135a   : > { %v2975_v10 = vadd.f32 -1.4531521, %v2969_v35  ;;  %3999 = vpow2.f32 %v3034_v20  ;;  %vm2937_vm12 = vcmp.lt.f32.partialorder %v6070_v39, 0.0  ;;  %v3896_v39 = vld [vmem:[%s6268_s15 + $0x1] ss:$0 sm:$0xff] }
0x135b   : > { %v2980_v9 = vmul.f32 %v6032_v47, %v2974_v61  ;;  %v2955_v43 = vmul.f32 0.3275911, %v6088_v54  ;;  %4001 = vpow2.f32 %v3036_v23  ;;  %v3042_v22 = vmul.f32 1.442695, %v3032_v17 }
0x135c   : > { %v2981_v18 = vmul.f32 %v6038_v50, %v2975_v10  ;;  %v2921_v10 = vmul.f32 0.5, %v5918_v19  ;;  %v3027_v34 = vsub.f32 0.0, %v6088_v54 }
0x135d   : > { %v6079_v12 = vpop.eup %3993  ;;  %v2986_v59 = vadd.f32 1.4214138, %v2980_v9  ;;  %v2961_v51 = vadd.f32 1.0, %v2955_v43 }
0x135e   : > { %v2987_v53 = vadd.f32 1.4214138, %v2981_v18  ;;  %v2970_v21 = vmul.f32 1.0614054, %v6079_v12  ;;  %v6090_v31 = vpop.eup %3995 }
0x135f   : > { %v2992_v29 = vmul.f32 %v6032_v47, %v2986_v59  ;;  %v2971_v62 = vmul.f32 1.0614054, %v6090_v31  ;;  %v6102_v2 = vpop.eup %3997  ;;  %4003 = vrcp.f32 %v2961_v51 }
0x1360   : > { %v2993_v58 = vmul.f32 %v6038_v50, %v2987_v53  ;;  %v2976_v1 = vadd.f32 -1.4531521, %v2970_v21  ;;  %v2972_v56 = vmul.f32 1.0614054, %v6102_v2  ;;  %v4000_v41 = vpop.eup %3999  ;;  %4005 = vpow2.f32 %v3038_v6 }
0x1361   : > { %v2998_v36 = vadd.f32 -0.28449672, %v2992_v29  ;;  %v2977_v57 = vadd.f32 -1.4531521, %v2971_v62  ;;  %v4002_v18 = vpop.eup %4001  ;;  %v2939_v21 = vsel %vm2933_vm6, -1.0, %v4084_v25 }
0x1362   : > { %v2999_v44 = vadd.f32 -0.28449672, %v2993_v58  ;;  %v2982_v45 = vmul.f32 %v6079_v12, %v2976_v1  ;;  %v2978_v5 = vadd.f32 -1.4531521, %v2972_v56 }
0x1363   : > { %v3004_v14 = vmul.f32 %v6032_v47, %v2998_v36  ;;  %v2983_v4 = vmul.f32 %v6090_v31, %v2977_v57 }
0x1364   : > { %v3005_v30 = vmul.f32 %v6038_v50, %v2999_v44  ;;  %v2988_v55 = vadd.f32 1.4214138, %v2982_v45  ;;  %v2984_v15 = vmul.f32 %v6102_v2, %v2978_v5 }
0x1365   : > { %v3010_v35 = vadd.f32 0.2548296, %v3004_v14  ;;  %v2989_v46 = vadd.f32 1.4214138, %v2983_v4  ;;  %v6122_v53 = vpop.eup %4003  ;;  %v3033_v14 = vmul.f32 %v3027_v34, %v6088_v54  ;;  %v2940_v54 = vsel %vm2934_vm7, -1.0, %v4084_v25 }
0x1366   : > { %v3011_v52 = vadd.f32 0.2548296, %v3005_v30  ;;  %v2994_v61 = vmul.f32 %v6079_v12, %v2988_v55  ;;  %v2990_v37 = vadd.f32 1.4214138, %v2984_v15  ;;  %v2973_v24 = vmul.f32 1.0614054, %v6122_v53  ;;  %v4006_v45 = vpop.eup %4005 }
0x1367   : > { %v3016_v8 = vmul.f32 %v6032_v47, %v3010_v35  ;;  %v3040_v47 = vmul.f32 1.442695, %v3031_v26  ;;  %v2995_v49 = vmul.f32 %v6090_v31, %v2989_v46 }
0x1368   : > { %v3017_v9 = vmul.f32 %v6038_v50, %v3011_v52  ;;  %v3000_v48 = vadd.f32 -0.28449672, %v2994_v61  ;;  %v2996_v1 = vmul.f32 %v6102_v2, %v2990_v37  ;;  %v2979_v16 = vadd.f32 -1.4531521, %v2973_v24 }
0x1369   : > { %v3046_v59 = vmul.f32 %v4000_v41, %v3016_v8  ;;  %v3001_v58 = vadd.f32 -0.28449672, %v2995_v49  ;;  %4007 = vpow2.f32 %v3040_v47  ;;  %v3044_v8 = vmul.f32 1.442695, %v3033_v14 }
0x136a   : > { %v3047_v19 = vmul.f32 %v4002_v18, %v3017_v9  ;;  %v3006_v20 = vmul.f32 %v6079_v12, %v3000_v48  ;;  %v3002_v44 = vadd.f32 -0.28449672, %v2996_v1  ;;  %4009 = vpow2.f32 %v3042_v22 }
0x136b   : > { %v3052_v50 = vsub.f32 1.0, %v3046_v59  ;;  %v3007_v60 = vmul.f32 %v6090_v31, %v3001_v58  ;;  %v2985_v35 = vmul.f32 %v6122_v53, %v2979_v16  ;;  %v2922_v41 = vmul.f32 0.5, %v5964_v7 }
0x136c   : > { %v3053_v29 = vsub.f32 1.0, %v3047_v19  ;;  %v3012_v23 = vadd.f32 0.2548296, %v3006_v20  ;;  %v3008_v57 = vmul.f32 %v6102_v2, %v3002_v44  ;;  %4011 = vpow2.f32 %v3044_v8  ;;  %v3287_v8 = vld [vmem:[%s6271_s18 + $0x58] sm:$0xff] }
0x136d   : > { %v3058_v36 = vmul.f32 %v3052_v50, %v2938_v11  ;;  %v3013_v55 = vadd.f32 0.2548296, %v3007_v60  ;;  %v2991_v4 = vadd.f32 1.4214138, %v2985_v35  ;;  %v2942_v59 = vsel %vm2936_vm11, -1.0, %v4084_v25  ;;  %3296 = vmatpush.msrb.mxu3 %v3287_v8 }
0x136e   : > { %v3059_v40 = vmul.f32 %v3053_v29, %v2939_v21  ;;  %v3018_v43 = vmul.f32 %v6079_v12, %v3012_v23  ;;  %v3014_v52 = vadd.f32 0.2548296, %v3008_v57  ;;  %v2923_v7 = vmul.f32 0.5, %v5987_v33 }
0x136f   : > { %v3064_v62 = vadd.f32 1.0, %v3058_v36  ;;  %v3019_v26 = vmul.f32 %v6090_v31, %v3013_v55  ;;  %v4008_v61 = vpop.eup %4007  ;;  %v2997_v31 = vmul.f32 %v6122_v53, %v2991_v4  ;;  %v2943_v33 = vsel %vm2937_vm12, -1.0, %v4084_v25 }
0x1370   : > { %v3065_v51 = vadd.f32 1.0, %v3059_v40  ;;  %v3048_v30 = vmul.f32 %v4006_v45, %v3018_v43  ;;  %v3020_v17 = vmul.f32 %v6102_v2, %v3014_v52  ;;  %v2925_v58 = vmul.f32 0.5, %v6044_v3 }
0x1371   : > { %v3070_v56 = vmul.f32 %v3064_v62, %v6093_v0  ;;  %v3049_v0 = vmul.f32 %v4008_v61, %v3019_v26  ;;  %v3003_v46 = vadd.f32 -0.28449672, %v2997_v31  ;;  %v3284_v31 = vld [vmem:[%s6271_s18 + $0x40] sm:$0xff] }
0x1372   : > { %v3071_v6 = vmul.f32 %v3065_v51, %v2921_v10  ;;  %v3054_v12 = vsub.f32 1.0, %v3048_v30  ;;  %v4010_v10 = vpop.eup %4009 }
0x1373   : > { %3141 = vmatmul.f32.vlgmr.msra.gmra.mxu2 %v3070_v56  ;;  %v3055_v63 = vsub.f32 1.0, %v3049_v0  ;;  %v3050_v48 = vmul.f32 %v4010_v10, %v3020_v17  ;;  %v3009_v2 = vmul.f32 %v6122_v53, %v3003_v46  ;;  %v4012_v21 = vpop.eup %4011  ;;  %v3286_v0 = vld [vmem:[%s6271_s18 + $0x50] sm:$0xff]  ;;  %v3285_v17 = vld [vmem:[%s6271_s18 + $0x48] sm:$0xff] }
0x1374   : > { %v3060_v5 = vmul.f32 %v3054_v12, %v2940_v54  ;;  %3164 = vmatmul.f32.vlgmr.msra.gmra.mxu0 %v3071_v6  ;;  %3297 = vmatpush.msrb.mxu3 %v3286_v0 }
0x1375   : > { %v3061_v18 = vmul.f32 %v3055_v63, %v2941_v28  ;;  %v3056_v11 = vsub.f32 1.0, %v3050_v48  ;;  %v3015_v20 = vadd.f32 0.2548296, %v3009_v2  ;;  %v3283_v48 = vld [vmem:[%s6271_s18 + $0x38] sm:$0xff]  ;;  %v3282_v28 = vld [vmem:[%s6271_s18 + $0x30] sm:$0xff] }
0x1376   : > { %v3066_v9 = vadd.f32 1.0, %v3060_v5  ;;  %3298 = vmatpush.msrb.mxu3 %v3285_v17 }
0x1377   : > { %v3067_v47 = vadd.f32 1.0, %v3061_v18  ;;  %v3062_v19 = vmul.f32 %v3056_v11, %v2942_v59  ;;  %v3021_v50 = vmul.f32 %v6122_v53, %v3015_v20  ;;  %v3281_v18 = vld [vmem:[%s6271_s18 + $0x28] sm:$0xff]  ;;  %v3280_v59 = vld [vmem:[%s6271_s18 + $0x20] sm:$0xff] }
0x1378   : > { %v3072_v15 = vmul.f32 %v3066_v9, %v2922_v41  ;;  %3299 = vmatpush.msrb.mxu3 %v3284_v31 }
0x1379   : > { %v3073_v49 = vmul.f32 %v3067_v47, %v2923_v7  ;;  %v3068_v37 = vadd.f32 1.0, %v3062_v19  ;;  %v3051_v34 = vmul.f32 %v4012_v21, %v3021_v50  ;;  %v3279_v7 = vld [vmem:[%s6271_s18 + $0x18] sm:$0xff]  ;;  %v3277_v19 = vld [vmem:[%s6271_s18 + $0x8] sm:$0xff] }
0x137a   : > { %3187 = vmatmul.f32.vlgmr.msra.gmra.mxu1 %v3072_v15  ;;  %3300 = vmatpush.msrb.mxu3 %v3283_v48 }
0x137b   : > { %3144 = vmatmul.f32.gmra.mxu2 %v3073_v49  ;;  %v3074_v22 = vmul.f32 %v3068_v37, %v2924_v38  ;;  %v3057_v29 = vsub.f32 1.0, %v3051_v34  ;;  %v3276_v49 = vld [vmem:[%s6271_s18] sm:$0xff] }
0x137c   : > { %3301 = vmatpush.msrb.mxu3 %v3282_v28  ;;  %v3897_v34 = vld [vmem:[%s6269_s16] ss:$0 sm:$0xff] }
0x137d   : > { %3167 = vmatmul.f32.gmra.mxu0 %v3074_v22  ;;  %v3063_v23 = vmul.f32 %v3057_v29, %v2943_v33  ;;  %v4085_v22 = vmov 16.0  }
0x137e   : > { %3302 = vmatpush.msrb.mxu3 %v3281_v18 }
0x137f   : > { %v3069_v1 = vadd.f32 1.0, %v3063_v23 }
0x1380   : > { %3303 = vmatpush.msrb.mxu3 %v3280_v59 }
0x1381   : > { %v3075_v36 = vmul.f32 %v3069_v1, %v2925_v58  ;;  %v3898_v58 = vld [vmem:[%s6270_s17] ss:$0 sm:$0xff] }
0x1382   : > { %3304 = vmatpush.msrb.mxu3 %v3279_v7 }
0x1383   : > { %3190 = vmatmul.f32.gmra.mxu1 %v3075_v36 }
0x13f1   : > { %v3165_v32 = vpop.f32.mrf.mxu0 }
0x13f6   : > { %v3142_v24 = vpop.f32.mrf.mxu2 }
0x13f7   : > { %v3166_v40 = vadd.f32 %v3165_v32, %v3142_v24  ;;  %v3188_v53 = vpop.f32.mrf.mxu1 }
0x13f9   : > { %v3189_v43 = vadd.f32 %v3188_v53, %v3166_v40 }
0x13fa   : > { %v3168_v3 = vpop.f32.mrf.mxu0 }
0x13fb   : > { %v3194_v60 = vadd.f32 %v3189_v43, %v5717_v42 }
0x13fd   : > { %v3201_v44 = vadd.f32 %v3896_v39, %v3194_v60 }
0x13fe   : > { %v3145_v45 = vpop.f32.mrf.mxu2 }
0x13ff   : > { %v3205_v25 = vsel %vm675_vm1, %v3201_v44, 0.0  ;;  %v3169_v62 = vadd.f32 %v3168_v3, %v3145_v45 }
0x1400   : > { %3206 = vadd.xlane.f32.xlu1 %v3205_v25  ;;  %v3191_v14 = vpop.f32.mrf.mxu1 }
0x1401   : > { %v3192_v16 = vadd.f32 %v3191_v14, %v3169_v62 }
0x1403   : > { %v3195_v51 = vadd.f32 %v3192_v16, %v5722_v13 }
0x1405   : > { %v3202_v30 = vadd.f32 %v3896_v39, %v3195_v51 }
0x1407   : > { %v3208_v55 = vsel %vm675_vm1, %v3202_v30, 0.0 }
0x1408   : > { %3209 = vadd.xlane.f32.xlu2 %v3208_v55 }
0x1473   : > { %v3207_v57 = vpop.xlane.xlu1 %3206 }
0x1474   : > { %v3211_v56 = vmul.f32 %v3207_v57, %v4285_v27 }
0x1476   : > { %v3213_v35 = vsub.f32 %v3201_v44, %v3211_v56 }
0x1478   : > { %v3215_v42 = vmul.f32 %v3213_v35, %v3213_v35 }
0x147a   : > { %v3217_v6 = vsel %vm675_vm1, %v3215_v42, 0.0  ;;  %v3288_v42 = vld [vmem:[%s6314_s3] sm:$0x1] }
0x147b   : > { %3218 = vadd.xlane.f32.xlu0 %v3217_v6  ;;  %v3210_v12 = vpop.xlane.xlu2 %3209 }
0x147c   : > { %v3212_v26 = vmul.f32 %v3210_v12, %v4285_v27 }
0x147e   : > { %v6165_v52 = vsub.f32 %v3202_v30, %v3212_v26 }
0x1480   : > { %v3216_v13 = vmul.f32 %v6165_v52, %v6165_v52 }
0x1482   : > { %v3220_v61 = vsel %vm675_vm1, %v3216_v13, 0.0 }
0x1483   : > { %3221 = vadd.xlane.f32.xlu1 %v3220_v61 }
0x14ee   : > { %v3219_v54 = vpop.xlane.xlu0 %3218 }
0x14ef   : > { %v3223_v4 = vmul.f32 %v3219_v54, %v4285_v27 }
0x14f1   : > { %v3225_v5 = vadd.f32 1e-05, %v3223_v4 }
0x14f3   : > { %4013 = vrsqrt.f32 %v3225_v5  ;;  %vm3233_vm14 = vweird.f32 %v3225_v5 }
0x14f6   : > { %v3222_v63 = vpop.xlane.xlu1 %3221 }
0x14f7   : > { %v3224_v46 = vmul.f32 %v3222_v63, %v4285_v27  ;;  %v3278_v27 = vld [vmem:[%s6271_s18 + $0x10] sm:$0xff] }
0x14f8   : > { %3305 = vmatpush.msrb.mxu3 %v3278_v27 }
0x14f9   : > { %v4014_v10 = vpop.eup %4013  ;;  %v3226_v11 = vadd.f32 1e-05, %v3224_v46 }
0x14fa   : > { %v3228_v41 = vmul.f32 %v4014_v10, %v3225_v5  ;;  %vm3234_vm13 = vweird.f32 %v4014_v10  ;;  %3306 = vmatpush.msrb.mxu3 %v3277_v19 }
0x14fb   : > { %4015 = vrsqrt.f32 %v3226_v11  ;;  %vm3235_vm15 = vmor %vm3233_vm14, %vm3234_vm13  ;;  %vm3243_vm10 = vweird.f32 %v3226_v11 }
0x14fc   : > { %v3229_v9 = vmul.f32 %v4014_v10, %v3228_v41  ;;  %3307 = vmatpush.msrb.mxu3 %v3276_v49  ;;  %4017 = vrcp.f32 %v4085_v22 }
0x14fe   : > { %v3230_v15 = vmul.f32 0.5, %v3229_v9 }
0x1500   : > { %v3231_v2 = vsub.f32 1.5, %v3230_v15 }
0x1501   : > { %v4016_v20 = vpop.eup %4015 }
0x1502   : > { %v3232_v47 = vmul.f32 %v4014_v10, %v3231_v2  ;;  %v3238_v38 = vmul.f32 %v4016_v20, %v3226_v11  ;;  %vm3244_vm9 = vweird.f32 %v4016_v20  ;;  %v4018_v36 = vpop.eup %4017 }
0x1503   : > { %vm3245_vm0 = vmor %vm3243_vm10, %vm3244_vm9  ;;  %v3269_v43 = vmul.f32 16.0, %v4018_v36  ;;  %vm3273_vm2 = vweird.f32 %v4018_v36 }
0x1504   : > { %v3236_v37 = vsel %vm3235_vm15, %v4014_v10, %v3232_v47  ;;  %v3239_v50 = vmul.f32 %v4016_v20, %v3238_v38 }
0x1505   : > { %v3247_v29 = vmul.f32 %v3236_v37, %v3213_v35  ;;  %v3270_v25 = vsub.f32 1.0, %v3269_v43 }
0x1506   : > { %v3240_v21 = vmul.f32 0.5, %v3239_v50 }
0x1507   : > { %v3252_v1 = vmul.f32 %v3897_v34, %v3247_v29  ;;  %v3271_v62 = vmul.f32 %v4018_v36, %v3270_v25 }
0x1508   : > { %v3241_v33 = vsub.f32 1.5, %v3240_v21 }
0x1509   : > { %v3257_v40 = vadd.f32 %v3898_v58, %v3252_v1  ;;  %v3272_v51 = vadd.f32 %v4018_v36, %v3271_v62 }
0x150a   : > { %v3242_v23 = vmul.f32 %v4016_v20, %v3241_v33 }
0x150b   : > { %v3259_v60 = vsel %vm675_vm1, %v3257_v40, 0.0  ;;  %v3274_v57 = vsel %vm3273_vm2, %v4018_v36, %v3272_v51 }
0x150c   : > { %v3246_v32 = vsel %vm3245_vm0, %v4016_v20, %v3242_v23 }
0x150d   : > { %v3248_v24 = vmul.f32 %v3246_v32, %v6165_v52 }
0x150f   : > { %v3253_v53 = vmul.f32 %v3897_v34, %v3248_v24 }
0x1511   : > { %v3258_v39 = vadd.f32 %v3898_v58, %v3253_v53 }
0x1513   : > { %v3260_v44 = vsel %vm675_vm1, %v3258_v39, 0.0 }
0x1514   : > { %v3261_v45 = vadd.f32 %v3260_v44, %v3259_v60 }
0x1516   : > { %v3262_v3 = vrot.slane %v3261_v45, 4 }
0x1518   : > { %v3263_v14 = vadd.f32 %v3262_v3, %v3261_v45 }
0x151a   : > { %v3264_v16 = vrot.slane %v3263_v14, 2 }
0x151c   : > { %v3265_v30 = vadd.f32 %v3264_v16, %v3263_v14 }
0x151e   : > { %v3266_v55 = vrot.slane %v3265_v30, 1 }
0x1520   : > { %v3267_v56 = vadd.f32 %v3266_v55, %v3265_v30 }
0x1522   : > { %v3275_v35 = vmul.f32 %v3274_v57, %v3267_v56 }
0x1524   : > { %3818 = vmatmul.msk.f32.vlgmr.msrb.gmra.mxu3 %vm675_vm1, %v3275_v35 }
0x15a7   : > { %v3309_v6 = vpop.f32.mrf.mxu3 }
0x15a8   : > { %v3310_v12 = vadd.f32 %v3309_v6, %v3288_v42 }
0x15aa   : > { %3313 = vst.msk [vmem:[%s621_s24] sm:$0x1] %vm3312_vm3, %v3310_v12 }
0x15ab   : > { %4046 = shalt.err (!%p4043_p3)
}
0x15ac   : > { %3824 = dma.vmem_to_hbm [thread:$0]  (%p4229_p5), %s3326_s28, 16, %s3328_s19, %s3315_s5  }
0x15ad PF: > { %s6316_s20 = sld [smem:[#allocation7_spill]] }
0x15ae   : > { %s6317_s23 = sld [smem:[#allocation5_spill]] }
0x15b3   : > { %p3830_p4 = scmp.ge.s32.totalorder %s6316_s20, 2 }
0x15b4   : > { %s3339_s24 = sand.u32 1, %s6317_s23  }
0x15b5   : > { %p3827_p7 = pnand %p3830_p4, %p4233_p6  ;;  %s3340_s2 = scalar_lea.sflag [#allocation3], %s3339_s24 }
0x15b7   : > { %p3828_p8 = pneg %p3827_p7 }
0x15b9   : > { %4064 = dma.done.wait (%p3828_p8), %s3340_s2, 16  }
0x15ba   : > { %4066 = vsyncadd (%p3828_p8), %s3340_s2, 4294967280  ;;  %s6319_s24 = sld [smem:[#allocation8_spill]]  ;;  %s6322_s1 = smov %s4073_s22 }
0x15bb   : > { %s6320_s6 = sld [smem:[#allocation6_spill]] }
0x15bc   : > { %s6321_s23 = sld [smem:[#allocation9_spill]] }
0x15c0   : > { %p30_p9 = scmp.ge.s32.totalorder %s6319_s24, 4  }
0x15c1   : > { %s6323_s22 = smov %s6320_s6 }
0x15c2   :  { %32 = sbr.rel (!%p30_p9) target bundleno = 14 (0xe), region = 183 }
0x15c7   :  { %3345 = vsyncpa [#allocation3], 1 }
0x15c8   :  { %3347 = vsyncpa [#allocation3 + $0x1], 1 }

</bundles_post_ra>
